<compile_context>
chip_gen: v5e
topology: v5e:2x2
jax: 0.10.0
libtpu: 0.0.40
codegen_flags: <defaults>
</compile_context>

<pallas_src>
import jax
import jax.numpy as jnp
from jax import lax
from jax.experimental import pallas as pl
from jax.experimental.pallas import tpu as pltpu

T_TILE = 1024        # time steps per grid step
UNROLL = 4           # manual unroll factor of the fused time loop (kept at 4 to avoid vreg spills)
GATE_LANES = 128     # each gate's output block starts on a 128-lane (vreg) boundary


def _sigmoid(v):
    # single-EUP logistic: sigmoid(x) = 0.5*tanh(0.5*x) + 0.5  (one tanh instead of exp+divide)
    return 0.5 * jnp.tanh(0.5 * v) + 0.5


def _amp_kernel(
    # --- inputs ---
    x_ref,        # (T_TILE, B, 1)  audio, time-major block
    c_ref,        # (B, 4)          conditioning knobs [bass, mid, treble, gain]
    l_wa_ref,     # (4, 1, HL)      LSTM W_ih audio column, per gate (i, f, g, o)
    l_wg_ref,     # (4, 1, HL)      LSTM W_ih gain column, per gate
    l_w512_ref,   # (HL, 4*128)     merged LSTM W_hh (right-multiply), gate k at lanes [128k,128k+HL)
    l_b_ref,      # (4, 1, HL)      LSTM b_ih + b_hh per gate
    l_lw_ref,     # (1, HL)         preamp output linear weight
    l_lb_ref,     # (1, 1)
    t_w1_ref,     # (3, 16)         tone-stack cond MLP layer 1
    t_b1_ref,     # (1, 16)
    t_w2_ref,     # (16, 4)         tone-stack cond MLP layer 2 -> [b0, b1, a1, g]
    t_b2_ref,     # (1, 4)
    g_wih_ref,    # (3, 1, HG)      GRU W_ih per gate (r, z, n)
    g_w384_ref,   # (HG, 3*128)     merged GRU W_hh (right-multiply), gate k at lanes [128k,128k+HG)
    g_bih_ref,    # (3, 1, HG)
    g_bhh_ref,    # (3, 1, HG)
    g_lw_ref,     # (1, HG)         poweramp output linear weight
    g_lb_ref,     # (1, 1)
    # --- output ---
    out_ref,      # (T_TILE, B, 1)
    # --- carried state (VMEM scratch persists across grid steps) ---
    hL_ref,       # (B, HL)  LSTM hidden
    cL_ref,       # (B, HL)  LSTM cell
    hG_ref,       # (B, HG)  GRU hidden
    tsx_ref,      # (B, 1)   tone-stack IIR x[n-1] (previous preamp out)
    tsy_ref,      # (B, 1)   tone-stack IIR y[n-1] (previous tone-stack out)
):
    T, B, _ = x_ref.shape
    HL = l_wa_ref.shape[2]           # 40
    HG = g_wih_ref.shape[2]          # 8
    f32 = jnp.float32

    @pl.when(pl.program_id(0) == 0)
    def _init_state():
        hL_ref[...] = jnp.zeros_like(hL_ref)
        cL_ref[...] = jnp.zeros_like(cL_ref)
        hG_ref[...] = jnp.zeros_like(hG_ref)
        tsx_ref[...] = jnp.zeros_like(tsx_ref)
        tsy_ref[...] = jnp.zeros_like(tsy_ref)

    # ---------------- hoisted per-tile constants ----------------
    c = c_ref[...]
    gain = c[:, 3:4]                                       # (B, 1), constant over time

    l_wa = l_wa_ref[...]
    l_wg = l_wg_ref[...]
    l_b = l_b_ref[...]
    # gain knob folded into per-batch biases; audio weights pre-broadcast to (B, HL)
    l_wa_b = [jnp.broadcast_to(l_wa[k], (B, HL)) for k in range(4)]
    l_bias = [gain * l_wg[k] + l_b[k] for k in range(4)]   # (B, HL) each
    l_lw_b = jnp.broadcast_to(l_lw_ref[...], (B, HL))
    l_lb = l_lb_ref[...]                                   # (1, 1)

    # Tone-stack conditioning -> first-order IIR coefficients, computed once per tile.
    # TODO(synk): ToneStackSimple source not provided; cond-MLP -> [b0, b1, a1, gain] IIR stand-in.
    cond = c[:, 0:3]
    tw1 = t_w1_ref[...]
    h1 = jnp.tanh(cond[:, 0:1] * tw1[0:1, :] + cond[:, 1:2] * tw1[1:2, :]
                  + cond[:, 2:3] * tw1[2:3, :] + t_b1_ref[...])
    coef = jnp.dot(h1, t_w2_ref[...], preferred_element_type=f32) + t_b2_ref[...]
    ts_b0 = coef[:, 0:1]
    ts_b1 = coef[:, 1:2]
    ts_a1 = 0.9 * jnp.tanh(coef[:, 2:3])                   # keep the pole stable
    ts_g = coef[:, 3:4]

    g_wih = g_wih_ref[...]
    g_bih = g_bih_ref[...]
    g_bhh = g_bhh_ref[...]
    g_wih_b = [jnp.broadcast_to(g_wih[k], (B, HG)) for k in range(3)]
    g_brz = [jnp.broadcast_to(g_bih[k] + g_bhh[k], (B, HG)) for k in range(2)]   # r, z combined bias
    g_bin = jnp.broadcast_to(g_bih[2], (B, HG))            # n: input-side bias (outside r*(...))
    g_bhn = jnp.broadcast_to(g_bhh[2], (B, HG))            # n: hidden-side bias (inside r*(...))
    g_lw_b = jnp.broadcast_to(g_lw_ref[...], (B, HG))
    g_lb = g_lb_ref[...]                                   # (1, 1)

    # ---------------- per-step functions ----------------
    def lstm_ts(xt, h, cst, xp, yp):
        """LSTM step (+ output linear + skip) followed by the tone-stack IIR step."""
        # x-dependent gate terms: independent of h -> off the recurrent critical path
        xg = [xt * l_wa_b[k] + l_bias[k] for k in range(4)]            # 4 x (B, HL)
        # ONE merged recurrent matmul (was 4); gate slices are 128-lane aligned -> free
        acts = jnp.dot(h, l_w512_ref[...], preferred_element_type=f32)  # (B, 4*128)
        gi = acts[:, 0 * GATE_LANES:0 * GATE_LANES + HL] + xg[0]
        gf = acts[:, 1 * GATE_LANES:1 * GATE_LANES + HL] + xg[1]
        gg = acts[:, 2 * GATE_LANES:2 * GATE_LANES + HL] + xg[2]
        go = acts[:, 3 * GATE_LANES:3 * GATE_LANES + HL] + xg[3]
        i = _sigmoid(gi)
        f = _sigmoid(gf)
        g = jnp.tanh(gg)
        o = _sigmoid(go)
        cst = f * cst + i * g
        h = o * jnp.tanh(cst)
        # preamp output linear + skip connection on the audio channel of the input
        pre = jnp.sum(h * l_lw_b, axis=1, keepdims=True) + l_lb + xt
        # tone-stack first-order IIR
        ts = ts_g * (ts_b0 * pre + ts_b1 * xp - ts_a1 * yp)
        return h, cst, pre, ts

    def gru(ts_in, h):
        """GRU step on one tone-stack sample (+ output linear + skip)."""
        xb = jnp.broadcast_to(ts_in, (B, HG))
        acts = jnp.dot(h, g_w384_ref[...], preferred_element_type=f32)  # (B, 3*128), ONE matmul
        ar = acts[:, 0 * GATE_LANES:0 * GATE_LANES + HG]
        az = acts[:, 1 * GATE_LANES:1 * GATE_LANES + HG]
        an = acts[:, 2 * GATE_LANES:2 * GATE_LANES + HG]
        r = _sigmoid(xb * g_wih_b[0] + ar + g_brz[0])
        z = _sigmoid(xb * g_wih_b[1] + az + g_brz[1])
        n = jnp.tanh(xb * g_wih_b[2] + g_bin + r * (an + g_bhn))
        h = (1.0 - z) * n + z * h
        y = jnp.sum(h * g_lw_b, axis=1, keepdims=True) + g_lb + ts_in
        return h, y

    def slot(xt, carry):
        # GRU consumes the *lagged* tone-stack sample (step t-1) while the LSTM advances to t;
        # the two recurrent chains are independent within a slot, so they overlap.
        h_l, c_l, xp, ts, h_g = carry
        h_g, y_prev = gru(ts, h_g)
        h_l, c_l, pre, ts_new = lstm_ts(xt, h_l, c_l, xp, ts)
        return (h_l, c_l, pre, ts_new, h_g), y_prev

    # ---------------- fused, lagged time loop over this tile ----------------
    h_l = hL_ref[...]
    c_l = cL_ref[...]
    h_g = hG_ref[...]
    xp = tsx_ref[...]
    yp = tsy_ref[...]

    # prologue: LSTM + tone stack for local step 0 (the GRU is one step behind)
    h_l, c_l, pre, ts = lstm_ts(x_ref[0], h_l, c_l, xp, yp)
    carry = (h_l, c_l, pre, ts, h_g)

    n_main = T - 1
    n_peel = n_main % UNROLL
    for t in range(1, 1 + n_peel):                         # static peel -> exact trip count below
        carry, y = slot(x_ref[t], carry)
        out_ref[t - 1] = y

    def body(k, carry):
        base = 1 + n_peel + k * UNROLL
        x_grp = x_ref[pl.ds(base, UNROLL)]                 # one dynamic load per unrolled group
        ys = []
        for u in range(UNROLL):                            # manual unroll
            carry, y = slot(x_grp[u], carry)
            ys.append(y)
        # one grouped store of the UNROLL lagged GRU outputs (instead of UNROLL 1-lane stores)
        out_ref[pl.ds(base - 1, UNROLL)] = jnp.concatenate([yy[None] for yy in ys], axis=0)
        return carry

    carry = lax.fori_loop(0, (n_main - n_peel) // UNROLL, body, carry)
    h_l, c_l, xp, ts, h_g = carry

    # epilogue: flush the lagged GRU for the last step of this tile
    h_g, y_last = gru(ts, h_g)
    out_ref[T - 1] = y_last

    # write back carried state for the next tile
    hL_ref[...] = h_l
    cL_ref[...] = c_l
    hG_ref[...] = h_g
    tsx_ref[...] = xp
    tsy_ref[...] = ts


def _rep_spec(shape):
    nd = len(shape)
    return pl.BlockSpec(shape, lambda i, _nd=nd: (0,) * _nd)


@jax.jit
def amp_model_gain(x, c, params):
    """x: (B, T, 1) float32 audio, c: (B, 4) float32 knobs -> (B, T, 1) float32."""
    B, T, _ = x.shape
    x = x.astype(jnp.float32)
    c = c.astype(jnp.float32)

    n_tiles = pl.cdiv(T, T_TILE)
    T_pad = n_tiles * T_TILE
    if T_pad != T:
        # zero-pad the tail; the recurrence is causal so padded steps never affect real outputs
        x = jnp.pad(x, ((0, 0), (0, T_pad - T), (0, 0)))

    # Time-major (T, B, 1). The gain knob is not streamed; it is folded into the LSTM bias
    # inside the kernel (constant over time).
    x_tm = jnp.transpose(x, (1, 0, 2))

    HL = params[0].shape[2]       # l_wa:  (4, 1, HL)
    HG = params[10].shape[2]      # g_wih: (3, 1, HG)

    inputs = (x_tm, c) + tuple(params)
    stream_spec = pl.BlockSpec((T_TILE, B, 1), lambda i: (i, 0, 0))
    in_specs = [stream_spec] + [_rep_spec(a.shape) for a in inputs[1:]]

    out_tm = pl.pallas_call(
        _amp_kernel,
        out_shape=jax.ShapeDtypeStruct((T_pad, B, 1), jnp.float32),
        grid=(n_tiles,),
        in_specs=in_specs,
        out_specs=stream_spec,
        scratch_shapes=[
            pltpu.VMEM((B, HL), jnp.float32),   # LSTM hidden
            pltpu.VMEM((B, HL), jnp.float32),   # LSTM cell
            pltpu.VMEM((B, HG), jnp.float32),   # GRU hidden
            pltpu.VMEM((B, 1), jnp.float32),    # tone-stack x[n-1]
            pltpu.VMEM((B, 1), jnp.float32),    # tone-stack y[n-1]
        ],
        compiler_params=pltpu.CompilerParams(
            # recurrent state carries across grid steps -> the time-tile axis must stay sequential
            dimension_semantics=("arbitrary",),
            # (T_TILE, B, 1) stream blocks pad their last dim to 128 lanes; at T_TILE=1024 the
            # double-buffered x/out streams are ~16 MiB, so raise the scoped VMEM limit (v5e
            # default is 16 MiB); 32 MiB is safe on all generations (<= v7x's 64 MiB physical).
            vmem_limit_bytes=32 * 1024 * 1024,
        ),
    )(*inputs)

    out = jnp.transpose(out_tm, (1, 0, 2))
    return out[:, :T]


def pack_params(l_w_ih, l_w_hh, l_b_ih, l_b_hh, l_lin_w, l_lin_b,
                t_w1, t_b1, t_w2, t_b2,
                g_w_ih, g_w_hh, g_b_ih, g_b_hh, g_lin_w, g_lin_b):
    """PyTorch layout -> merged, lane-aligned, right-multiply kernel layout."""
    HL = l_w_hh.shape[1]
    HG = g_w_hh.shape[1]
    # LSTM (PyTorch gate order i, f, g, o)
    w_ih = l_w_ih.reshape(4, HL, 2)
    l_wa = w_ih[:, :, 0][:, None, :]                               # (4, 1, HL) audio column
    l_wg = w_ih[:, :, 1][:, None, :]                               # (4, 1, HL) gain column
    l_whh_t = jnp.transpose(l_w_hh.reshape(4, HL, HL), (0, 2, 1))  # (4, HL, HL) right-multiply
    l_w512 = jnp.zeros((HL, 4 * GATE_LANES), jnp.float32)          # merged RHS, gate k at lane 128k
    for k in range(4):
        l_w512 = l_w512.at[:, k * GATE_LANES:k * GATE_LANES + HL].set(l_whh_t[k])
    l_b = (l_b_ih + l_b_hh).reshape(4, 1, HL)
    l_lw = l_lin_w.reshape(1, HL)
    l_lb = l_lin_b.reshape(1, 1)
    # Tone-stack placeholder MLP (Linear(3,16) -> tanh -> Linear(16,4))
    tw1 = t_w1.T
    tb1 = t_b1.reshape(1, -1)
    tw2 = t_w2.T
    tb2 = t_b2.reshape(1, -1)
    # GRU (PyTorch gate order r, z, n)
    g_wih = jnp.transpose(g_w_ih.reshape(3, HG, 1), (0, 2, 1))     # (3, 1, HG)
    g_whh_t = jnp.transpose(g_w_hh.reshape(3, HG, HG), (0, 2, 1))  # (3, HG, HG) right-multiply
    g_w384 = jnp.zeros((HG, 3 * GATE_LANES), jnp.float32)          # merged RHS, gate k at lane 128k
    for k in range(3):
        g_w384 = g_w384.at[:, k * GATE_LANES:k * GATE_LANES + HG].set(g_whh_t[k])
    g_bih = g_b_ih.reshape(3, 1, HG)
    g_bhh = g_b_hh.reshape(3, 1, HG)
    g_lw = g_lin_w.reshape(1, HG)
    g_lb = g_lin_b.reshape(1, 1)
    return (l_wa, l_wg, l_w512, l_b, l_lw, l_lb,
            tw1, tb1, tw2, tb2,
            g_wih, g_w384, g_bih, g_bhh, g_lw, g_lb)


def init_params(key):
    """Deterministic synthetic parameters in PyTorch layout, packed for the kernel."""
    HL, HG, TC = 40, 8, 16

    def u(k, shape, scale):
        return jax.random.uniform(k, shape, jnp.float32, minval=-scale, maxval=scale)

    ks = jax.random.split(key, 16)
    kl = 1.0 / jnp.sqrt(HL)
    kg = 1.0 / jnp.sqrt(HG)

    # preamp: LSTM(2 -> 40) + Linear(40 -> 1)
    l_w_ih = u(ks[0], (4 * HL, 2), kl)
    l_w_hh = u(ks[1], (4 * HL, HL), kl)
    l_b_ih = u(ks[2], (4 * HL,), kl)
    l_b_hh = u(ks[3], (4 * HL,), kl)
    l_lin_w = u(ks[4], (1, HL), kl)
    l_lin_b = u(ks[5], (1,), kl)

    # tone-stack cond block: Linear(3 -> 16) -> tanh -> Linear(16 -> 4)
    t_w1 = u(ks[6], (TC, 3), 1.0 / jnp.sqrt(3.0))
    t_b1 = u(ks[7], (TC,), 1.0 / jnp.sqrt(3.0))
    t_w2 = u(ks[8], (4, TC), 1.0 / jnp.sqrt(TC))
    t_b2 = u(ks[9], (4,), 1.0 / jnp.sqrt(TC))

    # poweramp: GRU(1 -> 8) + Linear(8 -> 1)
    g_w_ih = u(ks[10], (3 * HG, 1), kg)
    g_w_hh = u(ks[11], (3 * HG, HG), kg)
    g_b_ih = u(ks[12], (3 * HG,), kg)
    g_b_hh = u(ks[13], (3 * HG,), kg)
    g_lin_w = u(ks[14], (1, HG), kg)
    g_lin_b = u(ks[15], (1,), kg)

    return pack_params(l_w_ih, l_w_hh, l_b_ih, l_b_hh, l_lin_w, l_lin_b,
                       t_w1, t_b1, t_w2, t_b2,
                       g_w_ih, g_w_hh, g_b_ih, g_b_hh, g_lin_w, g_lin_b)


if __name__ == "__main__":
    key = jax.random.PRNGKey(0)
    k_x, k_c, k_p = jax.random.split(key, 3)

    B, T = 8, 300                      # small demo; T deliberately not a multiple of T_TILE
    x = jax.random.normal(k_x, (B, T, 1), jnp.float32)   # audio
    c = jax.random.uniform(k_c, (B, 4), jnp.float32)     # [bass, mid, treble, gain]
    params = init_params(k_p)

    out = amp_model_gain(x, c, params)
    jax.block_until_ready(out)
    assert out.shape == (B, T, 1) and out.dtype == jnp.float32
    assert bool(jnp.all(jnp.isfinite(out)))
    print("KERNEL_OK")
</pallas_src>

<mosaic_0001>
module attributes {stable_mosaic.version = 11 : i64} {
  func.func @_amp_kernel(%arg0: i32, %arg1: memref<1024x8x1xf32, #tpu.memory_space<vmem>>, %arg2: memref<8x4xf32, #tpu.memory_space<vmem>>, %arg3: memref<4x1x40xf32, #tpu.memory_space<vmem>>, %arg4: memref<4x1x40xf32, #tpu.memory_space<vmem>>, %arg5: memref<40x512xf32, #tpu.memory_space<vmem>>, %arg6: memref<4x1x40xf32, #tpu.memory_space<vmem>>, %arg7: memref<1x40xf32, #tpu.memory_space<vmem>>, %arg8: memref<1x1xf32, #tpu.memory_space<vmem>>, %arg9: memref<3x16xf32, #tpu.memory_space<vmem>>, %arg10: memref<1x16xf32, #tpu.memory_space<vmem>>, %arg11: memref<16x4xf32, #tpu.memory_space<vmem>>, %arg12: memref<1x4xf32, #tpu.memory_space<vmem>>, %arg13: memref<3x1x8xf32, #tpu.memory_space<vmem>>, %arg14: memref<8x384xf32, #tpu.memory_space<vmem>>, %arg15: memref<3x1x8xf32, #tpu.memory_space<vmem>>, %arg16: memref<3x1x8xf32, #tpu.memory_space<vmem>>, %arg17: memref<1x8xf32, #tpu.memory_space<vmem>>, %arg18: memref<1x1xf32, #tpu.memory_space<vmem>>, %arg19: memref<1024x8x1xf32, #tpu.memory_space<vmem>>, %arg20: memref<8x40xf32, #tpu.memory_space<vmem>>, %arg21: memref<8x40xf32, #tpu.memory_space<vmem>>, %arg22: memref<8x8xf32, #tpu.memory_space<vmem>>, %arg23: memref<8x1xf32, #tpu.memory_space<vmem>>, %arg24: memref<8x1xf32, #tpu.memory_space<vmem>>) attributes {dimension_semantics = [#tpu.dimension_semantics<arbitrary>], iteration_bounds = array<i64: 1>, scalar_prefetch = 0 : i64, scratch_operands = 5 : i64, tpu.core_type = #tpu.core_type<tc>, window_params = [{transform_indices = @transform_0, window_bounds = array<i64: 1024, 8, 1>}, {pipeline_mode = #tpu.pipeline_mode<synchronous>, transform_indices = @transform_1, window_bounds = array<i64: 8, 4>}, {pipeline_mode = #tpu.pipeline_mode<synchronous>, transform_indices = @transform_2, window_bounds = array<i64: 4, 1, 40>}, {pipeline_mode = #tpu.pipeline_mode<synchronous>, transform_indices = @transform_3, window_bounds = array<i64: 4, 1, 40>}, {pipeline_mode = #tpu.pipeline_mode<synchronous>, transform_indices = @transform_4, window_bounds = array<i64: 40, 512>}, {pipeline_mode = #tpu.pipeline_mode<synchronous>, transform_indices = @transform_5, window_bounds = array<i64: 4, 1, 40>}, {pipeline_mode = #tpu.pipeline_mode<synchronous>, transform_indices = @transform_6, window_bounds = array<i64: 1, 40>}, {pipeline_mode = #tpu.pipeline_mode<synchronous>, transform_indices = @transform_7, window_bounds = array<i64: 1, 1>}, {pipeline_mode = #tpu.pipeline_mode<synchronous>, transform_indices = @transform_8, window_bounds = array<i64: 3, 16>}, {pipeline_mode = #tpu.pipeline_mode<synchronous>, transform_indices = @transform_9, window_bounds = array<i64: 1, 16>}, {pipeline_mode = #tpu.pipeline_mode<synchronous>, transform_indices = @transform_10, window_bounds = array<i64: 16, 4>}, {pipeline_mode = #tpu.pipeline_mode<synchronous>, transform_indices = @transform_11, window_bounds = array<i64: 1, 4>}, {pipeline_mode = #tpu.pipeline_mode<synchronous>, transform_indices = @transform_12, window_bounds = array<i64: 3, 1, 8>}, {pipeline_mode = #tpu.pipeline_mode<synchronous>, transform_indices = @transform_13, window_bounds = array<i64: 8, 384>}, {pipeline_mode = #tpu.pipeline_mode<synchronous>, transform_indices = @transform_14, window_bounds = array<i64: 3, 1, 8>}, {pipeline_mode = #tpu.pipeline_mode<synchronous>, transform_indices = @transform_15, window_bounds = array<i64: 3, 1, 8>}, {pipeline_mode = #tpu.pipeline_mode<synchronous>, transform_indices = @transform_16, window_bounds = array<i64: 1, 8>}, {pipeline_mode = #tpu.pipeline_mode<synchronous>, transform_indices = @transform_17, window_bounds = array<i64: 1, 1>}, {transform_indices = @transform_18, window_bounds = array<i64: 1024, 8, 1>}]} {
    %c0_i32 = arith.constant 0 : i32
    %0 = arith.cmpi eq, %arg0, %c0_i32 : i32
    %1 = arith.extui %0 : i1 to i32
    %c0_i32_0 = arith.constant 0 : i32
    %2 = arith.cmpi ne, %1, %c0_i32_0 : i32
    scf.if %2 {
      %cst_175 = arith.constant 0.000000e+00 : f32
      %592 = vector.broadcast %cst_175 : f32 to vector<8x40xf32>
      %c0_176 = arith.constant 0 : index
      %c0_177 = arith.constant 0 : index
      %593 = vector.load %arg20[%c0_176, %c0_177] : memref<8x40xf32, #tpu.memory_space<vmem>>, vector<8x40xf32>
      tpu.vector_store %arg20[%c0_176, %c0_177], %592 {strides = array<i32>} : memref<8x40xf32, #tpu.memory_space<vmem>>, vector<8x40xf32>,
      %cst_178 = arith.constant 0.000000e+00 : f32
      %594 = vector.broadcast %cst_178 : f32 to vector<8x40xf32>
      %c0_179 = arith.constant 0 : index
      %c0_180 = arith.constant 0 : index
      %595 = vector.load %arg21[%c0_179, %c0_180] : memref<8x40xf32, #tpu.memory_space<vmem>>, vector<8x40xf32>
      tpu.vector_store %arg21[%c0_179, %c0_180], %594 {strides = array<i32>} : memref<8x40xf32, #tpu.memory_space<vmem>>, vector<8x40xf32>,
      %cst_181 = arith.constant 0.000000e+00 : f32
      %596 = vector.broadcast %cst_181 : f32 to vector<8x8xf32>
      %c0_182 = arith.constant 0 : index
      %c0_183 = arith.constant 0 : index
      %597 = vector.load %arg22[%c0_182, %c0_183] : memref<8x8xf32, #tpu.memory_space<vmem>>, vector<8x8xf32>
      tpu.vector_store %arg22[%c0_182, %c0_183], %596 {strides = array<i32>} : memref<8x8xf32, #tpu.memory_space<vmem>>, vector<8x8xf32>,
      %cst_184 = arith.constant 0.000000e+00 : f32
      %598 = vector.broadcast %cst_184 : f32 to vector<8x1xf32>
      %c0_185 = arith.constant 0 : index
      %c0_186 = arith.constant 0 : index
      %599 = vector.load %arg23[%c0_185, %c0_186] : memref<8x1xf32, #tpu.memory_space<vmem>>, vector<8x1xf32>
      tpu.vector_store %arg23[%c0_185, %c0_186], %598 {strides = array<i32>} : memref<8x1xf32, #tpu.memory_space<vmem>>, vector<8x1xf32>,
      %cst_187 = arith.constant 0.000000e+00 : f32
      %600 = vector.broadcast %cst_187 : f32 to vector<8x1xf32>
      %c0_188 = arith.constant 0 : index
      %c0_189 = arith.constant 0 : index
      %601 = vector.load %arg24[%c0_188, %c0_189] : memref<8x1xf32, #tpu.memory_space<vmem>>, vector<8x1xf32>
      tpu.vector_store %arg24[%c0_188, %c0_189], %600 {strides = array<i32>} : memref<8x1xf32, #tpu.memory_space<vmem>>, vector<8x1xf32>,
    } else {
    }
    %c0 = arith.constant 0 : index
    %c0_1 = arith.constant 0 : index
    %3 = vector.load %arg2[%c0, %c0_1] : memref<8x4xf32, #tpu.memory_space<vmem>>, vector<8x4xf32>
    %4 = vector.extract_strided_slice %3 {offsets = [0, 3], sizes = [8, 1], strides = [1, 1]} : vector<8x4xf32> to vector<8x1xf32>
    %c0_2 = arith.constant 0 : index
    %c0_3 = arith.constant 0 : index
    %c0_4 = arith.constant 0 : index
    %5 = vector.load %arg3[%c0_2, %c0_3, %c0_4] : memref<4x1x40xf32, #tpu.memory_space<vmem>>, vector<4x1x40xf32>
    %c0_5 = arith.constant 0 : index
    %c0_6 = arith.constant 0 : index
    %c0_7 = arith.constant 0 : index
    %6 = vector.load %arg4[%c0_5, %c0_6, %c0_7] : memref<4x1x40xf32, #tpu.memory_space<vmem>>, vector<4x1x40xf32>
    %c0_8 = arith.constant 0 : index
    %c0_9 = arith.constant 0 : index
    %c0_10 = arith.constant 0 : index
    %7 = vector.load %arg6[%c0_8, %c0_9, %c0_10] : memref<4x1x40xf32, #tpu.memory_space<vmem>>, vector<4x1x40xf32>
    %8 = vector.extract_strided_slice %5 {offsets = [0, 0, 0], sizes = [1, 1, 40], strides = [1, 1, 1]} : vector<4x1x40xf32> to vector<1x1x40xf32>
    %9 = vector.shape_cast %8 : vector<1x1x40xf32> to vector<1x40xf32>
    %10 = vector.shape_cast %9 : vector<1x40xf32> to vector<1x40xf32>
    %11 = vector.broadcast %10 : vector<1x40xf32> to vector<8x40xf32>
    %12 = vector.extract_strided_slice %5 {offsets = [1, 0, 0], sizes = [1, 1, 40], strides = [1, 1, 1]} : vector<4x1x40xf32> to vector<1x1x40xf32>
    %13 = vector.shape_cast %12 : vector<1x1x40xf32> to vector<1x40xf32>
    %14 = vector.shape_cast %13 : vector<1x40xf32> to vector<1x40xf32>
    %15 = vector.broadcast %14 : vector<1x40xf32> to vector<8x40xf32>
    %16 = vector.extract_strided_slice %5 {offsets = [2, 0, 0], sizes = [1, 1, 40], strides = [1, 1, 1]} : vector<4x1x40xf32> to vector<1x1x40xf32>
    %17 = vector.shape_cast %16 : vector<1x1x40xf32> to vector<1x40xf32>
    %18 = vector.shape_cast %17 : vector<1x40xf32> to vector<1x40xf32>
    %19 = vector.broadcast %18 : vector<1x40xf32> to vector<8x40xf32>
    %20 = vector.extract_strided_slice %5 {offsets = [3, 0, 0], sizes = [1, 1, 40], strides = [1, 1, 1]} : vector<4x1x40xf32> to vector<1x1x40xf32>
    %21 = vector.shape_cast %20 : vector<1x1x40xf32> to vector<1x40xf32>
    %22 = vector.shape_cast %21 : vector<1x40xf32> to vector<1x40xf32>
    %23 = vector.broadcast %22 : vector<1x40xf32> to vector<8x40xf32>
    %24 = vector.extract_strided_slice %6 {offsets = [0, 0, 0], sizes = [1, 1, 40], strides = [1, 1, 1]} : vector<4x1x40xf32> to vector<1x1x40xf32>
    %25 = vector.shape_cast %24 : vector<1x1x40xf32> to vector<1x40xf32>
    %26 = vector.broadcast %4 : vector<8x1xf32> to vector<8x40xf32>
    %27 = vector.broadcast %25 : vector<1x40xf32> to vector<8x40xf32>
    %28 = arith.mulf %26, %27 : vector<8x40xf32>
    %29 = vector.extract_strided_slice %7 {offsets = [0, 0, 0], sizes = [1, 1, 40], strides = [1, 1, 1]} : vector<4x1x40xf32> to vector<1x1x40xf32>
    %30 = vector.shape_cast %29 : vector<1x1x40xf32> to vector<1x40xf32>
    %31 = vector.broadcast %30 : vector<1x40xf32> to vector<8x40xf32>
    %32 = arith.addf %28, %31 : vector<8x40xf32>
    %33 = vector.extract_strided_slice %6 {offsets = [1, 0, 0], sizes = [1, 1, 40], strides = [1, 1, 1]} : vector<4x1x40xf32> to vector<1x1x40xf32>
    %34 = vector.shape_cast %33 : vector<1x1x40xf32> to vector<1x40xf32>
    %35 = vector.broadcast %4 : vector<8x1xf32> to vector<8x40xf32>
    %36 = vector.broadcast %34 : vector<1x40xf32> to vector<8x40xf32>
    %37 = arith.mulf %35, %36 : vector<8x40xf32>
    %38 = vector.extract_strided_slice %7 {offsets = [1, 0, 0], sizes = [1, 1, 40], strides = [1, 1, 1]} : vector<4x1x40xf32> to vector<1x1x40xf32>
    %39 = vector.shape_cast %38 : vector<1x1x40xf32> to vector<1x40xf32>
    %40 = vector.broadcast %39 : vector<1x40xf32> to vector<8x40xf32>
    %41 = arith.addf %37, %40 : vector<8x40xf32>
    %42 = vector.extract_strided_slice %6 {offsets = [2, 0, 0], sizes = [1, 1, 40], strides = [1, 1, 1]} : vector<4x1x40xf32> to vector<1x1x40xf32>
    %43 = vector.shape_cast %42 : vector<1x1x40xf32> to vector<1x40xf32>
    %44 = vector.broadcast %4 : vector<8x1xf32> to vector<8x40xf32>
    %45 = vector.broadcast %43 : vector<1x40xf32> to vector<8x40xf32>
    %46 = arith.mulf %44, %45 : vector<8x40xf32>
    %47 = vector.extract_strided_slice %7 {offsets = [2, 0, 0], sizes = [1, 1, 40], strides = [1, 1, 1]} : vector<4x1x40xf32> to vector<1x1x40xf32>
    %48 = vector.shape_cast %47 : vector<1x1x40xf32> to vector<1x40xf32>
    %49 = vector.broadcast %48 : vector<1x40xf32> to vector<8x40xf32>
    %50 = arith.addf %46, %49 : vector<8x40xf32>
    %51 = vector.extract_strided_slice %6 {offsets = [3, 0, 0], sizes = [1, 1, 40], strides = [1, 1, 1]} : vector<4x1x40xf32> to vector<1x1x40xf32>
    %52 = vector.shape_cast %51 : vector<1x1x40xf32> to vector<1x40xf32>
    %53 = vector.broadcast %4 : vector<8x1xf32> to vector<8x40xf32>
    %54 = vector.broadcast %52 : vector<1x40xf32> to vector<8x40xf32>
    %55 = arith.mulf %53, %54 : vector<8x40xf32>
    %56 = vector.extract_strided_slice %7 {offsets = [3, 0, 0], sizes = [1, 1, 40], strides = [1, 1, 1]} : vector<4x1x40xf32> to vector<1x1x40xf32>
    %57 = vector.shape_cast %56 : vector<1x1x40xf32> to vector<1x40xf32>
    %58 = vector.broadcast %57 : vector<1x40xf32> to vector<8x40xf32>
    %59 = arith.addf %55, %58 : vector<8x40xf32>
    %c0_11 = arith.constant 0 : index
    %c0_12 = arith.constant 0 : index
    %60 = vector.load %arg7[%c0_11, %c0_12] : memref<1x40xf32, #tpu.memory_space<vmem>>, vector<1x40xf32>
    %61 = vector.shape_cast %60 : vector<1x40xf32> to vector<1x40xf32>
    %62 = vector.broadcast %61 : vector<1x40xf32> to vector<8x40xf32>
    %c0_13 = arith.constant 0 : index
    %c0_14 = arith.constant 0 : index
    %63 = vector.load %arg8[%c0_13, %c0_14] : memref<1x1xf32, #tpu.memory_space<vmem>>, vector<1x1xf32>
    %64 = vector.extract_strided_slice %3 {offsets = [0, 0], sizes = [8, 3], strides = [1, 1]} : vector<8x4xf32> to vector<8x3xf32>
    %c0_15 = arith.constant 0 : index
    %c0_16 = arith.constant 0 : index
    %65 = vector.load %arg9[%c0_15, %c0_16] : memref<3x16xf32, #tpu.memory_space<vmem>>, vector<3x16xf32>
    %66 = vector.extract_strided_slice %64 {offsets = [0, 0], sizes = [8, 1], strides = [1, 1]} : vector<8x3xf32> to vector<8x1xf32>
    %67 = vector.extract_strided_slice %65 {offsets = [0, 0], sizes = [1, 16], strides = [1, 1]} : vector<3x16xf32> to vector<1x16xf32>
    %68 = vector.broadcast %66 : vector<8x1xf32> to vector<8x16xf32>
    %69 = vector.broadcast %67 : vector<1x16xf32> to vector<8x16xf32>
    %70 = arith.mulf %68, %69 : vector<8x16xf32>
    %71 = vector.extract_strided_slice %64 {offsets = [0, 1], sizes = [8, 1], strides = [1, 1]} : vector<8x3xf32> to vector<8x1xf32>
    %72 = vector.extract_strided_slice %65 {offsets = [1, 0], sizes = [1, 16], strides = [1, 1]} : vector<3x16xf32> to vector<1x16xf32>
    %73 = vector.broadcast %71 : vector<8x1xf32> to vector<8x16xf32>
    %74 = vector.broadcast %72 : vector<1x16xf32> to vector<8x16xf32>
    %75 = arith.mulf %73, %74 : vector<8x16xf32>
    %76 = arith.addf %70, %75 : vector<8x16xf32>
    %77 = vector.extract_strided_slice %64 {offsets = [0, 2], sizes = [8, 1], strides = [1, 1]} : vector<8x3xf32> to vector<8x1xf32>
    %78 = vector.extract_strided_slice %65 {offsets = [2, 0], sizes = [1, 16], strides = [1, 1]} : vector<3x16xf32> to vector<1x16xf32>
    %79 = vector.broadcast %77 : vector<8x1xf32> to vector<8x16xf32>
    %80 = vector.broadcast %78 : vector<1x16xf32> to vector<8x16xf32>
    %81 = arith.mulf %79, %80 : vector<8x16xf32>
    %82 = arith.addf %76, %81 : vector<8x16xf32>
    %c0_17 = arith.constant 0 : index
    %c0_18 = arith.constant 0 : index
    %83 = vector.load %arg10[%c0_17, %c0_18] : memref<1x16xf32, #tpu.memory_space<vmem>>, vector<1x16xf32>
    %84 = vector.broadcast %83 : vector<1x16xf32> to vector<8x16xf32>
    %85 = arith.addf %82, %84 : vector<8x16xf32>
    %86 = math.tanh %85 : vector<8x16xf32>
    %c0_19 = arith.constant 0 : index
    %c0_20 = arith.constant 0 : index
    %87 = vector.load %arg11[%c0_19, %c0_20] : memref<16x4xf32, #tpu.memory_space<vmem>>, vector<16x4xf32>
    %cst = arith.constant dense<0.000000e+00> : vector<8x4xf32>
    %88 = tpu.matmul %86, %87, %cst {dimension_numbers = #tpu.dot_dimension_numbers<[1], [0], [0], [1], [0, 0, 1, 1], [], []>} : vector<8x16xf32>, vector<16x4xf32>, vector<8x4xf32> -> vector<8x4xf32>
    %c0_21 = arith.constant 0 : index
    %c0_22 = arith.constant 0 : index
    %89 = vector.load %arg12[%c0_21, %c0_22] : memref<1x4xf32, #tpu.memory_space<vmem>>, vector<1x4xf32>
    %90 = vector.broadcast %89 : vector<1x4xf32> to vector<8x4xf32>
    %91 = arith.addf %88, %90 : vector<8x4xf32>
    %92 = vector.extract_strided_slice %91 {offsets = [0, 0], sizes = [8, 1], strides = [1, 1]} : vector<8x4xf32> to vector<8x1xf32>
    %93 = vector.extract_strided_slice %91 {offsets = [0, 1], sizes = [8, 1], strides = [1, 1]} : vector<8x4xf32> to vector<8x1xf32>
    %94 = vector.extract_strided_slice %91 {offsets = [0, 2], sizes = [8, 1], strides = [1, 1]} : vector<8x4xf32> to vector<8x1xf32>
    %95 = math.tanh %94 : vector<8x1xf32>
    %cst_23 = arith.constant 0.899999976 : f32
    %96 = vector.broadcast %cst_23 : f32 to vector<8x1xf32>
    %97 = arith.mulf %96, %95 : vector<8x1xf32>
    %98 = vector.extract_strided_slice %91 {offsets = [0, 3], sizes = [8, 1], strides = [1, 1]} : vector<8x4xf32> to vector<8x1xf32>
    %c0_24 = arith.constant 0 : index
    %c0_25 = arith.constant 0 : index
    %c0_26 = arith.constant 0 : index
    %99 = vector.load %arg13[%c0_24, %c0_25, %c0_26] : memref<3x1x8xf32, #tpu.memory_space<vmem>>, vector<3x1x8xf32>
    %c0_27 = arith.constant 0 : index
    %c0_28 = arith.constant 0 : index
    %c0_29 = arith.constant 0 : index
    %100 = vector.load %arg15[%c0_27, %c0_28, %c0_29] : memref<3x1x8xf32, #tpu.memory_space<vmem>>, vector<3x1x8xf32>
    %c0_30 = arith.constant 0 : index
    %c0_31 = arith.constant 0 : index
    %c0_32 = arith.constant 0 : index
    %101 = vector.load %arg16[%c0_30, %c0_31, %c0_32] : memref<3x1x8xf32, #tpu.memory_space<vmem>>, vector<3x1x8xf32>
    %102 = vector.extract_strided_slice %99 {offsets = [0, 0, 0], sizes = [1, 1, 8], strides = [1, 1, 1]} : vector<3x1x8xf32> to vector<1x1x8xf32>
    %103 = vector.shape_cast %102 : vector<1x1x8xf32> to vector<1x8xf32>
    %104 = vector.shape_cast %103 : vector<1x8xf32> to vector<1x8xf32>
    %105 = vector.broadcast %104 : vector<1x8xf32> to vector<8x8xf32>
    %106 = vector.extract_strided_slice %99 {offsets = [1, 0, 0], sizes = [1, 1, 8], strides = [1, 1, 1]} : vector<3x1x8xf32> to vector<1x1x8xf32>
    %107 = vector.shape_cast %106 : vector<1x1x8xf32> to vector<1x8xf32>
    %108 = vector.shape_cast %107 : vector<1x8xf32> to vector<1x8xf32>
    %109 = vector.broadcast %108 : vector<1x8xf32> to vector<8x8xf32>
    %110 = vector.extract_strided_slice %99 {offsets = [2, 0, 0], sizes = [1, 1, 8], strides = [1, 1, 1]} : vector<3x1x8xf32> to vector<1x1x8xf32>
    %111 = vector.shape_cast %110 : vector<1x1x8xf32> to vector<1x8xf32>
    %112 = vector.shape_cast %111 : vector<1x8xf32> to vector<1x8xf32>
    %113 = vector.broadcast %112 : vector<1x8xf32> to vector<8x8xf32>
    %114 = vector.extract_strided_slice %100 {offsets = [0, 0, 0], sizes = [1, 1, 8], strides = [1, 1, 1]} : vector<3x1x8xf32> to vector<1x1x8xf32>
    %115 = vector.shape_cast %114 : vector<1x1x8xf32> to vector<1x8xf32>
    %116 = vector.extract_strided_slice %101 {offsets = [0, 0, 0], sizes = [1, 1, 8], strides = [1, 1, 1]} : vector<3x1x8xf32> to vector<1x1x8xf32>
    %117 = vector.shape_cast %116 : vector<1x1x8xf32> to vector<1x8xf32>
    %118 = arith.addf %115, %117 : vector<1x8xf32>
    %119 = vector.shape_cast %118 : vector<1x8xf32> to vector<1x8xf32>
    %120 = vector.broadcast %119 : vector<1x8xf32> to vector<8x8xf32>
    %121 = vector.extract_strided_slice %100 {offsets = [1, 0, 0], sizes = [1, 1, 8], strides = [1, 1, 1]} : vector<3x1x8xf32> to vector<1x1x8xf32>
    %122 = vector.shape_cast %121 : vector<1x1x8xf32> to vector<1x8xf32>
    %123 = vector.extract_strided_slice %101 {offsets = [1, 0, 0], sizes = [1, 1, 8], strides = [1, 1, 1]} : vector<3x1x8xf32> to vector<1x1x8xf32>
    %124 = vector.shape_cast %123 : vector<1x1x8xf32> to vector<1x8xf32>
    %125 = arith.addf %122, %124 : vector<1x8xf32>
    %126 = vector.shape_cast %125 : vector<1x8xf32> to vector<1x8xf32>
    %127 = vector.broadcast %126 : vector<1x8xf32> to vector<8x8xf32>
    %128 = vector.extract_strided_slice %100 {offsets = [2, 0, 0], sizes = [1, 1, 8], strides = [1, 1, 1]} : vector<3x1x8xf32> to vector<1x1x8xf32>
    %129 = vector.shape_cast %128 : vector<1x1x8xf32> to vector<1x8xf32>
    %130 = vector.shape_cast %129 : vector<1x8xf32> to vector<1x8xf32>
    %131 = vector.broadcast %130 : vector<1x8xf32> to vector<8x8xf32>
    %132 = vector.extract_strided_slice %101 {offsets = [2, 0, 0], sizes = [1, 1, 8], strides = [1, 1, 1]} : vector<3x1x8xf32> to vector<1x1x8xf32>
    %133 = vector.shape_cast %132 : vector<1x1x8xf32> to vector<1x8xf32>
    %134 = vector.shape_cast %133 : vector<1x8xf32> to vector<1x8xf32>
    %135 = vector.broadcast %134 : vector<1x8xf32> to vector<8x8xf32>
    %c0_33 = arith.constant 0 : index
    %c0_34 = arith.constant 0 : index
    %136 = vector.load %arg17[%c0_33, %c0_34] : memref<1x8xf32, #tpu.memory_space<vmem>>, vector<1x8xf32>
    %137 = vector.shape_cast %136 : vector<1x8xf32> to vector<1x8xf32>
    %138 = vector.broadcast %137 : vector<1x8xf32> to vector<8x8xf32>
    %c0_35 = arith.constant 0 : index
    %c0_36 = arith.constant 0 : index
    %139 = vector.load %arg18[%c0_35, %c0_36] : memref<1x1xf32, #tpu.memory_space<vmem>>, vector<1x1xf32>
    %c0_37 = arith.constant 0 : index
    %c0_38 = arith.constant 0 : index
    %140 = vector.load %arg20[%c0_37, %c0_38] : memref<8x40xf32, #tpu.memory_space<vmem>>, vector<8x40xf32>
    %c0_39 = arith.constant 0 : index
    %c0_40 = arith.constant 0 : index
    %141 = vector.load %arg21[%c0_39, %c0_40] : memref<8x40xf32, #tpu.memory_space<vmem>>, vector<8x40xf32>
    %c0_41 = arith.constant 0 : index
    %c0_42 = arith.constant 0 : index
    %142 = vector.load %arg22[%c0_41, %c0_42] : memref<8x8xf32, #tpu.memory_space<vmem>>, vector<8x8xf32>
    %c0_43 = arith.constant 0 : index
    %c0_44 = arith.constant 0 : index
    %143 = vector.load %arg23[%c0_43, %c0_44] : memref<8x1xf32, #tpu.memory_space<vmem>>, vector<8x1xf32>
    %c0_45 = arith.constant 0 : index
    %c0_46 = arith.constant 0 : index
    %144 = vector.load %arg24[%c0_45, %c0_46] : memref<8x1xf32, #tpu.memory_space<vmem>>, vector<8x1xf32>
    %c0_47 = arith.constant 0 : index
    %c0_48 = arith.constant 0 : index
    %c0_49 = arith.constant 0 : index
    %145 = vector.load %arg1[%c0_47, %c0_48, %c0_49] : memref<1024x8x1xf32, #tpu.memory_space<vmem>>, vector<1x8x1xf32>
    %146 = vector.shape_cast %145 : vector<1x8x1xf32> to vector<8x1xf32>
    %147 = vector.broadcast %146 : vector<8x1xf32> to vector<8x40xf32>
    %148 = arith.mulf %147, %11 : vector<8x40xf32>
    %149 = arith.addf %148, %32 : vector<8x40xf32>
    %150 = vector.broadcast %146 : vector<8x1xf32> to vector<8x40xf32>
    %151 = arith.mulf %150, %15 : vector<8x40xf32>
    %152 = arith.addf %151, %41 : vector<8x40xf32>
    %153 = vector.broadcast %146 : vector<8x1xf32> to vector<8x40xf32>
    %154 = arith.mulf %153, %19 : vector<8x40xf32>
    %155 = arith.addf %154, %50 : vector<8x40xf32>
    %156 = vector.broadcast %146 : vector<8x1xf32> to vector<8x40xf32>
    %157 = arith.mulf %156, %23 : vector<8x40xf32>
    %158 = arith.addf %157, %59 : vector<8x40xf32>
    %c0_50 = arith.constant 0 : index
    %c0_51 = arith.constant 0 : index
    %159 = vector.load %arg5[%c0_50, %c0_51] : memref<40x512xf32, #tpu.memory_space<vmem>>, vector<40x512xf32>
    %cst_52 = arith.constant dense<0.000000e+00> : vector<8x512xf32>
    %160 = tpu.matmul %140, %159, %cst_52 {dimension_numbers = #tpu.dot_dimension_numbers<[1], [0], [0], [1], [0, 0, 1, 1], [], []>} : vector<8x40xf32>, vector<40x512xf32>, vector<8x512xf32> -> vector<8x512xf32>
    %161 = vector.extract_strided_slice %160 {offsets = [0, 0], sizes = [8, 40], strides = [1, 1]} : vector<8x512xf32> to vector<8x40xf32>
    %162 = arith.addf %161, %149 : vector<8x40xf32>
    %163 = vector.extract_strided_slice %160 {offsets = [0, 128], sizes = [8, 40], strides = [1, 1]} : vector<8x512xf32> to vector<8x40xf32>
    %164 = arith.addf %163, %152 : vector<8x40xf32>
    %165 = vector.extract_strided_slice %160 {offsets = [0, 256], sizes = [8, 40], strides = [1, 1]} : vector<8x512xf32> to vector<8x40xf32>
    %166 = arith.addf %165, %155 : vector<8x40xf32>
    %167 = vector.extract_strided_slice %160 {offsets = [0, 384], sizes = [8, 40], strides = [1, 1]} : vector<8x512xf32> to vector<8x40xf32>
    %168 = arith.addf %167, %158 : vector<8x40xf32>
    %cst_53 = arith.constant 5.000000e-01 : f32
    %169 = vector.broadcast %cst_53 : f32 to vector<8x40xf32>
    %170 = arith.mulf %169, %162 : vector<8x40xf32>
    %171 = math.tanh %170 : vector<8x40xf32>
    %cst_54 = arith.constant 5.000000e-01 : f32
    %172 = vector.broadcast %cst_54 : f32 to vector<8x40xf32>
    %173 = arith.mulf %172, %171 : vector<8x40xf32>
    %cst_55 = arith.constant 5.000000e-01 : f32
    %174 = vector.broadcast %cst_55 : f32 to vector<8x40xf32>
    %175 = arith.addf %173, %174 : vector<8x40xf32>
    %cst_56 = arith.constant 5.000000e-01 : f32
    %176 = vector.broadcast %cst_56 : f32 to vector<8x40xf32>
    %177 = arith.mulf %176, %164 : vector<8x40xf32>
    %178 = math.tanh %177 : vector<8x40xf32>
    %cst_57 = arith.constant 5.000000e-01 : f32
    %179 = vector.broadcast %cst_57 : f32 to vector<8x40xf32>
    %180 = arith.mulf %179, %178 : vector<8x40xf32>
    %cst_58 = arith.constant 5.000000e-01 : f32
    %181 = vector.broadcast %cst_58 : f32 to vector<8x40xf32>
    %182 = arith.addf %180, %181 : vector<8x40xf32>
    %183 = math.tanh %166 : vector<8x40xf32>
    %cst_59 = arith.constant 5.000000e-01 : f32
    %184 = vector.broadcast %cst_59 : f32 to vector<8x40xf32>
    %185 = arith.mulf %184, %168 : vector<8x40xf32>
    %186 = math.tanh %185 : vector<8x40xf32>
    %cst_60 = arith.constant 5.000000e-01 : f32
    %187 = vector.broadcast %cst_60 : f32 to vector<8x40xf32>
    %188 = arith.mulf %187, %186 : vector<8x40xf32>
    %cst_61 = arith.constant 5.000000e-01 : f32
    %189 = vector.broadcast %cst_61 : f32 to vector<8x40xf32>
    %190 = arith.addf %188, %189 : vector<8x40xf32>
    %191 = arith.mulf %182, %141 : vector<8x40xf32>
    %192 = arith.mulf %175, %183 : vector<8x40xf32>
    %193 = arith.addf %191, %192 : vector<8x40xf32>
    %194 = math.tanh %193 : vector<8x40xf32>
    %195 = arith.mulf %190, %194 : vector<8x40xf32>
    %196 = arith.mulf %195, %62 : vector<8x40xf32>
    %cst_62 = arith.constant dense<0.000000e+00> : vector<8xf32>
    %197 = vector.multi_reduction <add>, %196, %cst_62 [1] : vector<8x40xf32> to vector<8xf32>
    %198 = vector.shape_cast %197 : vector<8xf32> to vector<8x1xf32>
    %199 = vector.broadcast %63 : vector<1x1xf32> to vector<8x1xf32>
    %200 = arith.addf %198, %199 : vector<8x1xf32>
    %201 = arith.addf %200, %146 : vector<8x1xf32>
    %202 = arith.mulf %92, %201 : vector<8x1xf32>
    %203 = arith.mulf %93, %143 : vector<8x1xf32>
    %204 = arith.addf %202, %203 : vector<8x1xf32>
    %205 = arith.mulf %97, %144 : vector<8x1xf32>
    %206 = arith.subf %204, %205 : vector<8x1xf32>
    %207 = arith.mulf %98, %206 : vector<8x1xf32>
    %c1 = arith.constant 1 : index
    %c0_63 = arith.constant 0 : index
    %c0_64 = arith.constant 0 : index
    %208 = vector.load %arg1[%c1, %c0_63, %c0_64] : memref<1024x8x1xf32, #tpu.memory_space<vmem>>, vector<1x8x1xf32>
    %209 = vector.shape_cast %208 : vector<1x8x1xf32> to vector<8x1xf32>
    %210 = vector.shape_cast %207 : vector<8x1xf32> to vector<8x1xf32>
    %211 = vector.broadcast %210 : vector<8x1xf32> to vector<8x8xf32>
    %c0_65 = arith.constant 0 : index
    %c0_66 = arith.constant 0 : index
    %212 = vector.load %arg14[%c0_65, %c0_66] : memref<8x384xf32, #tpu.memory_space<vmem>>, vector<8x384xf32>
    %cst_67 = arith.constant dense<0.000000e+00> : vector<8x384xf32>
    %213 = tpu.matmul %142, %212, %cst_67 {dimension_numbers = #tpu.dot_dimension_numbers<[1], [0], [0], [1], [0, 0, 1, 1], [], []>} : vector<8x8xf32>, vector<8x384xf32>, vector<8x384xf32> -> vector<8x384xf32>
    %214 = vector.extract_strided_slice %213 {offsets = [0, 0], sizes = [8, 8], strides = [1, 1]} : vector<8x384xf32> to vector<8x8xf32>
    %215 = vector.extract_strided_slice %213 {offsets = [0, 128], sizes = [8, 8], strides = [1, 1]} : vector<8x384xf32> to vector<8x8xf32>
    %216 = vector.extract_strided_slice %213 {offsets = [0, 256], sizes = [8, 8], strides = [1, 1]} : vector<8x384xf32> to vector<8x8xf32>
    %217 = arith.mulf %211, %105 : vector<8x8xf32>
    %218 = arith.addf %217, %214 : vector<8x8xf32>
    %219 = arith.addf %218, %120 : vector<8x8xf32>
    %cst_68 = arith.constant 5.000000e-01 : f32
    %220 = vector.broadcast %cst_68 : f32 to vector<8x8xf32>
    %221 = arith.mulf %220, %219 : vector<8x8xf32>
    %222 = math.tanh %221 : vector<8x8xf32>
    %cst_69 = arith.constant 5.000000e-01 : f32
    %223 = vector.broadcast %cst_69 : f32 to vector<8x8xf32>
    %224 = arith.mulf %223, %222 : vector<8x8xf32>
    %cst_70 = arith.constant 5.000000e-01 : f32
    %225 = vector.broadcast %cst_70 : f32 to vector<8x8xf32>
    %226 = arith.addf %224, %225 : vector<8x8xf32>
    %227 = arith.mulf %211, %109 : vector<8x8xf32>
    %228 = arith.addf %227, %215 : vector<8x8xf32>
    %229 = arith.addf %228, %127 : vector<8x8xf32>
    %cst_71 = arith.constant 5.000000e-01 : f32
    %230 = vector.broadcast %cst_71 : f32 to vector<8x8xf32>
    %231 = arith.mulf %230, %229 : vector<8x8xf32>
    %232 = math.tanh %231 : vector<8x8xf32>
    %cst_72 = arith.constant 5.000000e-01 : f32
    %233 = vector.broadcast %cst_72 : f32 to vector<8x8xf32>
    %234 = arith.mulf %233, %232 : vector<8x8xf32>
    %cst_73 = arith.constant 5.000000e-01 : f32
    %235 = vector.broadcast %cst_73 : f32 to vector<8x8xf32>
    %236 = arith.addf %234, %235 : vector<8x8xf32>
    %237 = arith.mulf %211, %113 : vector<8x8xf32>
    %238 = arith.addf %237, %131 : vector<8x8xf32>
    %239 = arith.addf %216, %135 : vector<8x8xf32>
    %240 = arith.mulf %226, %239 : vector<8x8xf32>
    %241 = arith.addf %238, %240 : vector<8x8xf32>
    %242 = math.tanh %241 : vector<8x8xf32>
    %cst_74 = arith.constant 1.000000e+00 : f32
    %243 = vector.broadcast %cst_74 : f32 to vector<8x8xf32>
    %244 = arith.subf %243, %236 : vector<8x8xf32>
    %245 = arith.mulf %244, %242 : vector<8x8xf32>
    %246 = arith.mulf %236, %142 : vector<8x8xf32>
    %247 = arith.addf %245, %246 : vector<8x8xf32>
    %248 = arith.mulf %247, %138 : vector<8x8xf32>
    %cst_75 = arith.constant dense<0.000000e+00> : vector<8xf32>
    %249 = vector.multi_reduction <add>, %248, %cst_75 [1] : vector<8x8xf32> to vector<8xf32>
    %250 = vector.shape_cast %249 : vector<8xf32> to vector<8x1xf32>
    %251 = vector.broadcast %139 : vector<1x1xf32> to vector<8x1xf32>
    %252 = arith.addf %250, %251 : vector<8x1xf32>
    %253 = arith.addf %252, %207 : vector<8x1xf32>
    %254 = vector.broadcast %209 : vector<8x1xf32> to vector<8x40xf32>
    %255 = arith.mulf %254, %11 : vector<8x40xf32>
    %256 = arith.addf %255, %32 : vector<8x40xf32>
    %257 = vector.broadcast %209 : vector<8x1xf32> to vector<8x40xf32>
    %258 = arith.mulf %257, %15 : vector<8x40xf32>
    %259 = arith.addf %258, %41 : vector<8x40xf32>
    %260 = vector.broadcast %209 : vector<8x1xf32> to vector<8x40xf32>
    %261 = arith.mulf %260, %19 : vector<8x40xf32>
    %262 = arith.addf %261, %50 : vector<8x40xf32>
    %263 = vector.broadcast %209 : vector<8x1xf32> to vector<8x40xf32>
    %264 = arith.mulf %263, %23 : vector<8x40xf32>
    %265 = arith.addf %264, %59 : vector<8x40xf32>
    %c0_76 = arith.constant 0 : index
    %c0_77 = arith.constant 0 : index
    %266 = vector.load %arg5[%c0_76, %c0_77] : memref<40x512xf32, #tpu.memory_space<vmem>>, vector<40x512xf32>
    %cst_78 = arith.constant dense<0.000000e+00> : vector<8x512xf32>
    %267 = tpu.matmul %195, %266, %cst_78 {dimension_numbers = #tpu.dot_dimension_numbers<[1], [0], [0], [1], [0, 0, 1, 1], [], []>} : vector<8x40xf32>, vector<40x512xf32>, vector<8x512xf32> -> vector<8x512xf32>
    %268 = vector.extract_strided_slice %267 {offsets = [0, 0], sizes = [8, 40], strides = [1, 1]} : vector<8x512xf32> to vector<8x40xf32>
    %269 = arith.addf %268, %256 : vector<8x40xf32>
    %270 = vector.extract_strided_slice %267 {offsets = [0, 128], sizes = [8, 40], strides = [1, 1]} : vector<8x512xf32> to vector<8x40xf32>
    %271 = arith.addf %270, %259 : vector<8x40xf32>
    %272 = vector.extract_strided_slice %267 {offsets = [0, 256], sizes = [8, 40], strides = [1, 1]} : vector<8x512xf32> to vector<8x40xf32>
    %273 = arith.addf %272, %262 : vector<8x40xf32>
    %274 = vector.extract_strided_slice %267 {offsets = [0, 384], sizes = [8, 40], strides = [1, 1]} : vector<8x512xf32> to vector<8x40xf32>
    %275 = arith.addf %274, %265 : vector<8x40xf32>
    %cst_79 = arith.constant 5.000000e-01 : f32
    %276 = vector.broadcast %cst_79 : f32 to vector<8x40xf32>
    %277 = arith.mulf %276, %269 : vector<8x40xf32>
    %278 = math.tanh %277 : vector<8x40xf32>
    %cst_80 = arith.constant 5.000000e-01 : f32
    %279 = vector.broadcast %cst_80 : f32 to vector<8x40xf32>
    %280 = arith.mulf %279, %278 : vector<8x40xf32>
    %cst_81 = arith.constant 5.000000e-01 : f32
    %281 = vector.broadcast %cst_81 : f32 to vector<8x40xf32>
    %282 = arith.addf %280, %281 : vector<8x40xf32>
    %cst_82 = arith.constant 5.000000e-01 : f32
    %283 = vector.broadcast %cst_82 : f32 to vector<8x40xf32>
    %284 = arith.mulf %283, %271 : vector<8x40xf32>
    %285 = math.tanh %284 : vector<8x40xf32>
    %cst_83 = arith.constant 5.000000e-01 : f32
    %286 = vector.broadcast %cst_83 : f32 to vector<8x40xf32>
    %287 = arith.mulf %286, %285 : vector<8x40xf32>
    %cst_84 = arith.constant 5.000000e-01 : f32
    %288 = vector.broadcast %cst_84 : f32 to vector<8x40xf32>
    %289 = arith.addf %287, %288 : vector<8x40xf32>
    %290 = math.tanh %273 : vector<8x40xf32>
    %cst_85 = arith.constant 5.000000e-01 : f32
    %291 = vector.broadcast %cst_85 : f32 to vector<8x40xf32>
    %292 = arith.mulf %291, %275 : vector<8x40xf32>
    %293 = math.tanh %292 : vector<8x40xf32>
    %cst_86 = arith.constant 5.000000e-01 : f32
    %294 = vector.broadcast %cst_86 : f32 to vector<8x40xf32>
    %295 = arith.mulf %294, %293 : vector<8x40xf32>
    %cst_87 = arith.constant 5.000000e-01 : f32
    %296 = vector.broadcast %cst_87 : f32 to vector<8x40xf32>
    %297 = arith.addf %295, %296 : vector<8x40xf32>
    %298 = arith.mulf %289, %193 : vector<8x40xf32>
    %299 = arith.mulf %282, %290 : vector<8x40xf32>
    %300 = arith.addf %298, %299 : vector<8x40xf32>
    %301 = math.tanh %300 : vector<8x40xf32>
    %302 = arith.mulf %297, %301 : vector<8x40xf32>
    %303 = arith.mulf %302, %62 : vector<8x40xf32>
    %cst_88 = arith.constant dense<0.000000e+00> : vector<8xf32>
    %304 = vector.multi_reduction <add>, %303, %cst_88 [1] : vector<8x40xf32> to vector<8xf32>
    %305 = vector.shape_cast %304 : vector<8xf32> to vector<8x1xf32>
    %306 = vector.broadcast %63 : vector<1x1xf32> to vector<8x1xf32>
    %307 = arith.addf %305, %306 : vector<8x1xf32>
    %308 = arith.addf %307, %209 : vector<8x1xf32>
    %309 = arith.mulf %92, %308 : vector<8x1xf32>
    %310 = arith.mulf %93, %201 : vector<8x1xf32>
    %311 = arith.addf %309, %310 : vector<8x1xf32>
    %312 = arith.mulf %97, %207 : vector<8x1xf32>
    %313 = arith.subf %311, %312 : vector<8x1xf32>
    %314 = arith.mulf %98, %313 : vector<8x1xf32>
    %c0_89 = arith.constant 0 : index
    %c0_90 = arith.constant 0 : index
    %c0_91 = arith.constant 0 : index
    %315 = vector.load %arg19[%c0_89, %c0_90, %c0_91] : memref<1024x8x1xf32, #tpu.memory_space<vmem>>, vector<1x8x1xf32>
    %316 = vector.shape_cast %315 : vector<1x8x1xf32> to vector<8x1xf32>
    %317 = vector.shape_cast %253 : vector<8x1xf32> to vector<1x8x1xf32>
    tpu.vector_store %arg19[%c0_89, %c0_90, %c0_91], %317 {strides = array<i32>} : memref<1024x8x1xf32, #tpu.memory_space<vmem>>, vector<1x8x1xf32>,
    %c2 = arith.constant 2 : index
    %c0_92 = arith.constant 0 : index
    %c0_93 = arith.constant 0 : index
    %318 = vector.load %arg1[%c2, %c0_92, %c0_93] : memref<1024x8x1xf32, #tpu.memory_space<vmem>>, vector<1x8x1xf32>
    %319 = vector.shape_cast %318 : vector<1x8x1xf32> to vector<8x1xf32>
    %320 = vector.shape_cast %314 : vector<8x1xf32> to vector<8x1xf32>
    %321 = vector.broadcast %320 : vector<8x1xf32> to vector<8x8xf32>
    %c0_94 = arith.constant 0 : index
    %c0_95 = arith.constant 0 : index
    %322 = vector.load %arg14[%c0_94, %c0_95] : memref<8x384xf32, #tpu.memory_space<vmem>>, vector<8x384xf32>
    %cst_96 = arith.constant dense<0.000000e+00> : vector<8x384xf32>
    %323 = tpu.matmul %247, %322, %cst_96 {dimension_numbers = #tpu.dot_dimension_numbers<[1], [0], [0], [1], [0, 0, 1, 1], [], []>} : vector<8x8xf32>, vector<8x384xf32>, vector<8x384xf32> -> vector<8x384xf32>
    %324 = vector.extract_strided_slice %323 {offsets = [0, 0], sizes = [8, 8], strides = [1, 1]} : vector<8x384xf32> to vector<8x8xf32>
    %325 = vector.extract_strided_slice %323 {offsets = [0, 128], sizes = [8, 8], strides = [1, 1]} : vector<8x384xf32> to vector<8x8xf32>
    %326 = vector.extract_strided_slice %323 {offsets = [0, 256], sizes = [8, 8], strides = [1, 1]} : vector<8x384xf32> to vector<8x8xf32>
    %327 = arith.mulf %321, %105 : vector<8x8xf32>
    %328 = arith.addf %327, %324 : vector<8x8xf32>
    %329 = arith.addf %328, %120 : vector<8x8xf32>
    %cst_97 = arith.constant 5.000000e-01 : f32
    %330 = vector.broadcast %cst_97 : f32 to vector<8x8xf32>
    %331 = arith.mulf %330, %329 : vector<8x8xf32>
    %332 = math.tanh %331 : vector<8x8xf32>
    %cst_98 = arith.constant 5.000000e-01 : f32
    %333 = vector.broadcast %cst_98 : f32 to vector<8x8xf32>
    %334 = arith.mulf %333, %332 : vector<8x8xf32>
    %cst_99 = arith.constant 5.000000e-01 : f32
    %335 = vector.broadcast %cst_99 : f32 to vector<8x8xf32>
    %336 = arith.addf %334, %335 : vector<8x8xf32>
    %337 = arith.mulf %321, %109 : vector<8x8xf32>
    %338 = arith.addf %337, %325 : vector<8x8xf32>
    %339 = arith.addf %338, %127 : vector<8x8xf32>
    %cst_100 = arith.constant 5.000000e-01 : f32
    %340 = vector.broadcast %cst_100 : f32 to vector<8x8xf32>
    %341 = arith.mulf %340, %339 : vector<8x8xf32>
    %342 = math.tanh %341 : vector<8x8xf32>
    %cst_101 = arith.constant 5.000000e-01 : f32
    %343 = vector.broadcast %cst_101 : f32 to vector<8x8xf32>
    %344 = arith.mulf %343, %342 : vector<8x8xf32>
    %cst_102 = arith.constant 5.000000e-01 : f32
    %345 = vector.broadcast %cst_102 : f32 to vector<8x8xf32>
    %346 = arith.addf %344, %345 : vector<8x8xf32>
    %347 = arith.mulf %321, %113 : vector<8x8xf32>
    %348 = arith.addf %347, %131 : vector<8x8xf32>
    %349 = arith.addf %326, %135 : vector<8x8xf32>
    %350 = arith.mulf %336, %349 : vector<8x8xf32>
    %351 = arith.addf %348, %350 : vector<8x8xf32>
    %352 = math.tanh %351 : vector<8x8xf32>
    %cst_103 = arith.constant 1.000000e+00 : f32
    %353 = vector.broadcast %cst_103 : f32 to vector<8x8xf32>
    %354 = arith.subf %353, %346 : vector<8x8xf32>
    %355 = arith.mulf %354, %352 : vector<8x8xf32>
    %356 = arith.mulf %346, %247 : vector<8x8xf32>
    %357 = arith.addf %355, %356 : vector<8x8xf32>
    %358 = arith.mulf %357, %138 : vector<8x8xf32>
    %cst_104 = arith.constant dense<0.000000e+00> : vector<8xf32>
    %359 = vector.multi_reduction <add>, %358, %cst_104 [1] : vector<8x8xf32> to vector<8xf32>
    %360 = vector.shape_cast %359 : vector<8xf32> to vector<8x1xf32>
    %361 = vector.broadcast %139 : vector<1x1xf32> to vector<8x1xf32>
    %362 = arith.addf %360, %361 : vector<8x1xf32>
    %363 = arith.addf %362, %314 : vector<8x1xf32>
    %364 = vector.broadcast %319 : vector<8x1xf32> to vector<8x40xf32>
    %365 = arith.mulf %364, %11 : vector<8x40xf32>
    %366 = arith.addf %365, %32 : vector<8x40xf32>
    %367 = vector.broadcast %319 : vector<8x1xf32> to vector<8x40xf32>
    %368 = arith.mulf %367, %15 : vector<8x40xf32>
    %369 = arith.addf %368, %41 : vector<8x40xf32>
    %370 = vector.broadcast %319 : vector<8x1xf32> to vector<8x40xf32>
    %371 = arith.mulf %370, %19 : vector<8x40xf32>
    %372 = arith.addf %371, %50 : vector<8x40xf32>
    %373 = vector.broadcast %319 : vector<8x1xf32> to vector<8x40xf32>
    %374 = arith.mulf %373, %23 : vector<8x40xf32>
    %375 = arith.addf %374, %59 : vector<8x40xf32>
    %c0_105 = arith.constant 0 : index
    %c0_106 = arith.constant 0 : index
    %376 = vector.load %arg5[%c0_105, %c0_106] : memref<40x512xf32, #tpu.memory_space<vmem>>, vector<40x512xf32>
    %cst_107 = arith.constant dense<0.000000e+00> : vector<8x512xf32>
    %377 = tpu.matmul %302, %376, %cst_107 {dimension_numbers = #tpu.dot_dimension_numbers<[1], [0], [0], [1], [0, 0, 1, 1], [], []>} : vector<8x40xf32>, vector<40x512xf32>, vector<8x512xf32> -> vector<8x512xf32>
    %378 = vector.extract_strided_slice %377 {offsets = [0, 0], sizes = [8, 40], strides = [1, 1]} : vector<8x512xf32> to vector<8x40xf32>
    %379 = arith.addf %378, %366 : vector<8x40xf32>
    %380 = vector.extract_strided_slice %377 {offsets = [0, 128], sizes = [8, 40], strides = [1, 1]} : vector<8x512xf32> to vector<8x40xf32>
    %381 = arith.addf %380, %369 : vector<8x40xf32>
    %382 = vector.extract_strided_slice %377 {offsets = [0, 256], sizes = [8, 40], strides = [1, 1]} : vector<8x512xf32> to vector<8x40xf32>
    %383 = arith.addf %382, %372 : vector<8x40xf32>
    %384 = vector.extract_strided_slice %377 {offsets = [0, 384], sizes = [8, 40], strides = [1, 1]} : vector<8x512xf32> to vector<8x40xf32>
    %385 = arith.addf %384, %375 : vector<8x40xf32>
    %cst_108 = arith.constant 5.000000e-01 : f32
    %386 = vector.broadcast %cst_108 : f32 to vector<8x40xf32>
    %387 = arith.mulf %386, %379 : vector<8x40xf32>
    %388 = math.tanh %387 : vector<8x40xf32>
    %cst_109 = arith.constant 5.000000e-01 : f32
    %389 = vector.broadcast %cst_109 : f32 to vector<8x40xf32>
    %390 = arith.mulf %389, %388 : vector<8x40xf32>
    %cst_110 = arith.constant 5.000000e-01 : f32
    %391 = vector.broadcast %cst_110 : f32 to vector<8x40xf32>
    %392 = arith.addf %390, %391 : vector<8x40xf32>
    %cst_111 = arith.constant 5.000000e-01 : f32
    %393 = vector.broadcast %cst_111 : f32 to vector<8x40xf32>
    %394 = arith.mulf %393, %381 : vector<8x40xf32>
    %395 = math.tanh %394 : vector<8x40xf32>
    %cst_112 = arith.constant 5.000000e-01 : f32
    %396 = vector.broadcast %cst_112 : f32 to vector<8x40xf32>
    %397 = arith.mulf %396, %395 : vector<8x40xf32>
    %cst_113 = arith.constant 5.000000e-01 : f32
    %398 = vector.broadcast %cst_113 : f32 to vector<8x40xf32>
    %399 = arith.addf %397, %398 : vector<8x40xf32>
    %400 = math.tanh %383 : vector<8x40xf32>
    %cst_114 = arith.constant 5.000000e-01 : f32
    %401 = vector.broadcast %cst_114 : f32 to vector<8x40xf32>
    %402 = arith.mulf %401, %385 : vector<8x40xf32>
    %403 = math.tanh %402 : vector<8x40xf32>
    %cst_115 = arith.constant 5.000000e-01 : f32
    %404 = vector.broadcast %cst_115 : f32 to vector<8x40xf32>
    %405 = arith.mulf %404, %403 : vector<8x40xf32>
    %cst_116 = arith.constant 5.000000e-01 : f32
    %406 = vector.broadcast %cst_116 : f32 to vector<8x40xf32>
    %407 = arith.addf %405, %406 : vector<8x40xf32>
    %408 = arith.mulf %399, %300 : vector<8x40xf32>
    %409 = arith.mulf %392, %400 : vector<8x40xf32>
    %410 = arith.addf %408, %409 : vector<8x40xf32>
    %411 = math.tanh %410 : vector<8x40xf32>
    %412 = arith.mulf %407, %411 : vector<8x40xf32>
    %413 = arith.mulf %412, %62 : vector<8x40xf32>
    %cst_117 = arith.constant dense<0.000000e+00> : vector<8xf32>
    %414 = vector.multi_reduction <add>, %413, %cst_117 [1] : vector<8x40xf32> to vector<8xf32>
    %415 = vector.shape_cast %414 : vector<8xf32> to vector<8x1xf32>
    %416 = vector.broadcast %63 : vector<1x1xf32> to vector<8x1xf32>
    %417 = arith.addf %415, %416 : vector<8x1xf32>
    %418 = arith.addf %417, %319 : vector<8x1xf32>
    %419 = arith.mulf %92, %418 : vector<8x1xf32>
    %420 = arith.mulf %93, %308 : vector<8x1xf32>
    %421 = arith.addf %419, %420 : vector<8x1xf32>
    %422 = arith.mulf %97, %314 : vector<8x1xf32>
    %423 = arith.subf %421, %422 : vector<8x1xf32>
    %424 = arith.mulf %98, %423 : vector<8x1xf32>
    %c1_118 = arith.constant 1 : index
    %c0_119 = arith.constant 0 : index
    %c0_120 = arith.constant 0 : index
    %425 = vector.load %arg19[%c1_118, %c0_119, %c0_120] : memref<1024x8x1xf32, #tpu.memory_space<vmem>>, vector<1x8x1xf32>
    %426 = vector.shape_cast %425 : vector<1x8x1xf32> to vector<8x1xf32>
    %427 = vector.shape_cast %363 : vector<8x1xf32> to vector<1x8x1xf32>
    tpu.vector_store %arg19[%c1_118, %c0_119, %c0_120], %427 {strides = array<i32>} : memref<1024x8x1xf32, #tpu.memory_space<vmem>>, vector<1x8x1xf32>,
    %c3 = arith.constant 3 : index
    %c0_121 = arith.constant 0 : index
    %c0_122 = arith.constant 0 : index
    %428 = vector.load %arg1[%c3, %c0_121, %c0_122] : memref<1024x8x1xf32, #tpu.memory_space<vmem>>, vector<1x8x1xf32>
    %429 = vector.shape_cast %428 : vector<1x8x1xf32> to vector<8x1xf32>
    %430 = vector.shape_cast %424 : vector<8x1xf32> to vector<8x1xf32>
    %431 = vector.broadcast %430 : vector<8x1xf32> to vector<8x8xf32>
    %c0_123 = arith.constant 0 : index
    %c0_124 = arith.constant 0 : index
    %432 = vector.load %arg14[%c0_123, %c0_124] : memref<8x384xf32, #tpu.memory_space<vmem>>, vector<8x384xf32>
    %cst_125 = arith.constant dense<0.000000e+00> : vector<8x384xf32>
    %433 = tpu.matmul %357, %432, %cst_125 {dimension_numbers = #tpu.dot_dimension_numbers<[1], [0], [0], [1], [0, 0, 1, 1], [], []>} : vector<8x8xf32>, vector<8x384xf32>, vector<8x384xf32> -> vector<8x384xf32>
    %434 = vector.extract_strided_slice %433 {offsets = [0, 0], sizes = [8, 8], strides = [1, 1]} : vector<8x384xf32> to vector<8x8xf32>
    %435 = vector.extract_strided_slice %433 {offsets = [0, 128], sizes = [8, 8], strides = [1, 1]} : vector<8x384xf32> to vector<8x8xf32>
    %436 = vector.extract_strided_slice %433 {offsets = [0, 256], sizes = [8, 8], strides = [1, 1]} : vector<8x384xf32> to vector<8x8xf32>
    %437 = arith.mulf %431, %105 : vector<8x8xf32>
    %438 = arith.addf %437, %434 : vector<8x8xf32>
    %439 = arith.addf %438, %120 : vector<8x8xf32>
    %cst_126 = arith.constant 5.000000e-01 : f32
    %440 = vector.broadcast %cst_126 : f32 to vector<8x8xf32>
    %441 = arith.mulf %440, %439 : vector<8x8xf32>
    %442 = math.tanh %441 : vector<8x8xf32>
    %cst_127 = arith.constant 5.000000e-01 : f32
    %443 = vector.broadcast %cst_127 : f32 to vector<8x8xf32>
    %444 = arith.mulf %443, %442 : vector<8x8xf32>
    %cst_128 = arith.constant 5.000000e-01 : f32
    %445 = vector.broadcast %cst_128 : f32 to vector<8x8xf32>
    %446 = arith.addf %444, %445 : vector<8x8xf32>
    %447 = arith.mulf %431, %109 : vector<8x8xf32>
    %448 = arith.addf %447, %435 : vector<8x8xf32>
    %449 = arith.addf %448, %127 : vector<8x8xf32>
    %cst_129 = arith.constant 5.000000e-01 : f32
    %450 = vector.broadcast %cst_129 : f32 to vector<8x8xf32>
    %451 = arith.mulf %450, %449 : vector<8x8xf32>
    %452 = math.tanh %451 : vector<8x8xf32>
    %cst_130 = arith.constant 5.000000e-01 : f32
    %453 = vector.broadcast %cst_130 : f32 to vector<8x8xf32>
    %454 = arith.mulf %453, %452 : vector<8x8xf32>
    %cst_131 = arith.constant 5.000000e-01 : f32
    %455 = vector.broadcast %cst_131 : f32 to vector<8x8xf32>
    %456 = arith.addf %454, %455 : vector<8x8xf32>
    %457 = arith.mulf %431, %113 : vector<8x8xf32>
    %458 = arith.addf %457, %131 : vector<8x8xf32>
    %459 = arith.addf %436, %135 : vector<8x8xf32>
    %460 = arith.mulf %446, %459 : vector<8x8xf32>
    %461 = arith.addf %458, %460 : vector<8x8xf32>
    %462 = math.tanh %461 : vector<8x8xf32>
    %cst_132 = arith.constant 1.000000e+00 : f32
    %463 = vector.broadcast %cst_132 : f32 to vector<8x8xf32>
    %464 = arith.subf %463, %456 : vector<8x8xf32>
    %465 = arith.mulf %464, %462 : vector<8x8xf32>
    %466 = arith.mulf %456, %357 : vector<8x8xf32>
    %467 = arith.addf %465, %466 : vector<8x8xf32>
    %468 = arith.mulf %467, %138 : vector<8x8xf32>
    %cst_133 = arith.constant dense<0.000000e+00> : vector<8xf32>
    %469 = vector.multi_reduction <add>, %468, %cst_133 [1] : vector<8x8xf32> to vector<8xf32>
    %470 = vector.shape_cast %469 : vector<8xf32> to vector<8x1xf32>
    %471 = vector.broadcast %139 : vector<1x1xf32> to vector<8x1xf32>
    %472 = arith.addf %470, %471 : vector<8x1xf32>
    %473 = arith.addf %472, %424 : vector<8x1xf32>
    %474 = vector.broadcast %429 : vector<8x1xf32> to vector<8x40xf32>
    %475 = arith.mulf %474, %11 : vector<8x40xf32>
    %476 = arith.addf %475, %32 : vector<8x40xf32>
    %477 = vector.broadcast %429 : vector<8x1xf32> to vector<8x40xf32>
    %478 = arith.mulf %477, %15 : vector<8x40xf32>
    %479 = arith.addf %478, %41 : vector<8x40xf32>
    %480 = vector.broadcast %429 : vector<8x1xf32> to vector<8x40xf32>
    %481 = arith.mulf %480, %19 : vector<8x40xf32>
    %482 = arith.addf %481, %50 : vector<8x40xf32>
    %483 = vector.broadcast %429 : vector<8x1xf32> to vector<8x40xf32>
    %484 = arith.mulf %483, %23 : vector<8x40xf32>
    %485 = arith.addf %484, %59 : vector<8x40xf32>
    %c0_134 = arith.constant 0 : index
    %c0_135 = arith.constant 0 : index
    %486 = vector.load %arg5[%c0_134, %c0_135] : memref<40x512xf32, #tpu.memory_space<vmem>>, vector<40x512xf32>
    %cst_136 = arith.constant dense<0.000000e+00> : vector<8x512xf32>
    %487 = tpu.matmul %412, %486, %cst_136 {dimension_numbers = #tpu.dot_dimension_numbers<[1], [0], [0], [1], [0, 0, 1, 1], [], []>} : vector<8x40xf32>, vector<40x512xf32>, vector<8x512xf32> -> vector<8x512xf32>
    %488 = vector.extract_strided_slice %487 {offsets = [0, 0], sizes = [8, 40], strides = [1, 1]} : vector<8x512xf32> to vector<8x40xf32>
    %489 = arith.addf %488, %476 : vector<8x40xf32>
    %490 = vector.extract_strided_slice %487 {offsets = [0, 128], sizes = [8, 40], strides = [1, 1]} : vector<8x512xf32> to vector<8x40xf32>
    %491 = arith.addf %490, %479 : vector<8x40xf32>
    %492 = vector.extract_strided_slice %487 {offsets = [0, 256], sizes = [8, 40], strides = [1, 1]} : vector<8x512xf32> to vector<8x40xf32>
    %493 = arith.addf %492, %482 : vector<8x40xf32>
    %494 = vector.extract_strided_slice %487 {offsets = [0, 384], sizes = [8, 40], strides = [1, 1]} : vector<8x512xf32> to vector<8x40xf32>
    %495 = arith.addf %494, %485 : vector<8x40xf32>
    %cst_137 = arith.constant 5.000000e-01 : f32
    %496 = vector.broadcast %cst_137 : f32 to vector<8x40xf32>
    %497 = arith.mulf %496, %489 : vector<8x40xf32>
    %498 = math.tanh %497 : vector<8x40xf32>
    %cst_138 = arith.constant 5.000000e-01 : f32
    %499 = vector.broadcast %cst_138 : f32 to vector<8x40xf32>
    %500 = arith.mulf %499, %498 : vector<8x40xf32>
    %cst_139 = arith.constant 5.000000e-01 : f32
    %501 = vector.broadcast %cst_139 : f32 to vector<8x40xf32>
    %502 = arith.addf %500, %501 : vector<8x40xf32>
    %cst_140 = arith.constant 5.000000e-01 : f32
    %503 = vector.broadcast %cst_140 : f32 to vector<8x40xf32>
    %504 = arith.mulf %503, %491 : vector<8x40xf32>
    %505 = math.tanh %504 : vector<8x40xf32>
    %cst_141 = arith.constant 5.000000e-01 : f32
    %506 = vector.broadcast %cst_141 : f32 to vector<8x40xf32>
    %507 = arith.mulf %506, %505 : vector<8x40xf32>
    %cst_142 = arith.constant 5.000000e-01 : f32
    %508 = vector.broadcast %cst_142 : f32 to vector<8x40xf32>
    %509 = arith.addf %507, %508 : vector<8x40xf32>
    %510 = math.tanh %493 : vector<8x40xf32>
    %cst_143 = arith.constant 5.000000e-01 : f32
    %511 = vector.broadcast %cst_143 : f32 to vector<8x40xf32>
    %512 = arith.mulf %511, %495 : vector<8x40xf32>
    %513 = math.tanh %512 : vector<8x40xf32>
    %cst_144 = arith.constant 5.000000e-01 : f32
    %514 = vector.broadcast %cst_144 : f32 to vector<8x40xf32>
    %515 = arith.mulf %514, %513 : vector<8x40xf32>
    %cst_145 = arith.constant 5.000000e-01 : f32
    %516 = vector.broadcast %cst_145 : f32 to vector<8x40xf32>
    %517 = arith.addf %515, %516 : vector<8x40xf32>
    %518 = arith.mulf %509, %410 : vector<8x40xf32>
    %519 = arith.mulf %502, %510 : vector<8x40xf32>
    %520 = arith.addf %518, %519 : vector<8x40xf32>
    %521 = math.tanh %520 : vector<8x40xf32>
    %522 = arith.mulf %517, %521 : vector<8x40xf32>
    %523 = arith.mulf %522, %62 : vector<8x40xf32>
    %cst_146 = arith.constant dense<0.000000e+00> : vector<8xf32>
    %524 = vector.multi_reduction <add>, %523, %cst_146 [1] : vector<8x40xf32> to vector<8xf32>
    %525 = vector.shape_cast %524 : vector<8xf32> to vector<8x1xf32>
    %526 = vector.broadcast %63 : vector<1x1xf32> to vector<8x1xf32>
    %527 = arith.addf %525, %526 : vector<8x1xf32>
    %528 = arith.addf %527, %429 : vector<8x1xf32>
    %529 = arith.mulf %92, %528 : vector<8x1xf32>
    %530 = arith.mulf %93, %418 : vector<8x1xf32>
    %531 = arith.addf %529, %530 : vector<8x1xf32>
    %532 = arith.mulf %97, %424 : vector<8x1xf32>
    %533 = arith.subf %531, %532 : vector<8x1xf32>
    %534 = arith.mulf %98, %533 : vector<8x1xf32>
    %c2_147 = arith.constant 2 : index
    %c0_148 = arith.constant 0 : index
    %c0_149 = arith.constant 0 : index
    %535 = vector.load %arg19[%c2_147, %c0_148, %c0_149] : memref<1024x8x1xf32, #tpu.memory_space<vmem>>, vector<1x8x1xf32>
    %536 = vector.shape_cast %535 : vector<1x8x1xf32> to vector<8x1xf32>
    %537 = vector.shape_cast %473 : vector<8x1xf32> to vector<1x8x1xf32>
    tpu.vector_store %arg19[%c2_147, %c0_148, %c0_149], %537 {strides = array<i32>} : memref<1024x8x1xf32, #tpu.memory_space<vmem>>, vector<1x8x1xf32>,
    %c0_i32_150 = arith.constant 0 : i32
    %c255_i32 = arith.constant 255 : i32
    %538 = arith.addi %c0_i32_150, %c255_i32 : i32
    %c1_i32 = arith.constant 1 : i32
    %539:5 = scf.for %arg25 = %c0_i32_150 to %538 step %c1_i32 iter_args(%arg26 = %522, %arg27 = %520, %arg28 = %528, %arg29 = %534, %arg30 = %467) -> (vector<8x40xf32>, vector<8x40xf32>, vector<8x1xf32>, vector<8x1xf32>, vector<8x8xf32>)  : i32 {
      %c4_i32 = arith.constant 4 : i32
      %592 = arith.muli %arg25, %c4_i32 : i32
      %c4_i32_175 = arith.constant 4 : i32
      %593 = arith.addi %c4_i32_175, %592 : i32
      %594 = arith.index_cast %593 : i32 to index
      %c0_176 = arith.constant 0 : index
      %c0_177 = arith.constant 0 : index
      %595 = vector.load %arg1[%594, %c0_176, %c0_177] : memref<1024x8x1xf32, #tpu.memory_space<vmem>>, vector<4x8x1xf32>
      %596 = vector.extract_strided_slice %595 {offsets = [0, 0, 0], sizes = [1, 8, 1], strides = [1, 1, 1]} : vector<4x8x1xf32> to vector<1x8x1xf32>
      %597 = vector.shape_cast %596 : vector<1x8x1xf32> to vector<8x1xf32>
      %598 = vector.shape_cast %arg29 : vector<8x1xf32> to vector<8x1xf32>
      %599 = vector.broadcast %598 : vector<8x1xf32> to vector<8x8xf32>
      %c0_178 = arith.constant 0 : index
      %c0_179 = arith.constant 0 : index
      %600 = vector.load %arg14[%c0_178, %c0_179] : memref<8x384xf32, #tpu.memory_space<vmem>>, vector<8x384xf32>
      %cst_180 = arith.constant dense<0.000000e+00> : vector<8x384xf32>
      %601 = tpu.matmul %arg30, %600, %cst_180 {dimension_numbers = #tpu.dot_dimension_numbers<[1], [0], [0], [1], [0, 0, 1, 1], [], []>} : vector<8x8xf32>, vector<8x384xf32>, vector<8x384xf32> -> vector<8x384xf32>
      %602 = vector.extract_strided_slice %601 {offsets = [0, 0], sizes = [8, 8], strides = [1, 1]} : vector<8x384xf32> to vector<8x8xf32>
      %603 = vector.extract_strided_slice %601 {offsets = [0, 128], sizes = [8, 8], strides = [1, 1]} : vector<8x384xf32> to vector<8x8xf32>
      %604 = vector.extract_strided_slice %601 {offsets = [0, 256], sizes = [8, 8], strides = [1, 1]} : vector<8x384xf32> to vector<8x8xf32>
      %605 = arith.mulf %599, %105 : vector<8x8xf32>
      %606 = arith.addf %605, %602 : vector<8x8xf32>
      %607 = arith.addf %606, %120 : vector<8x8xf32>
      %cst_181 = arith.constant 5.000000e-01 : f32
      %608 = vector.broadcast %cst_181 : f32 to vector<8x8xf32>
      %609 = arith.mulf %608, %607 : vector<8x8xf32>
      %610 = math.tanh %609 : vector<8x8xf32>
      %cst_182 = arith.constant 5.000000e-01 : f32
      %611 = vector.broadcast %cst_182 : f32 to vector<8x8xf32>
      %612 = arith.mulf %611, %610 : vector<8x8xf32>
      %cst_183 = arith.constant 5.000000e-01 : f32
      %613 = vector.broadcast %cst_183 : f32 to vector<8x8xf32>
      %614 = arith.addf %612, %613 : vector<8x8xf32>
      %615 = arith.mulf %599, %109 : vector<8x8xf32>
      %616 = arith.addf %615, %603 : vector<8x8xf32>
      %617 = arith.addf %616, %127 : vector<8x8xf32>
      %cst_184 = arith.constant 5.000000e-01 : f32
      %618 = vector.broadcast %cst_184 : f32 to vector<8x8xf32>
      %619 = arith.mulf %618, %617 : vector<8x8xf32>
      %620 = math.tanh %619 : vector<8x8xf32>
      %cst_185 = arith.constant 5.000000e-01 : f32
      %621 = vector.broadcast %cst_185 : f32 to vector<8x8xf32>
      %622 = arith.mulf %621, %620 : vector<8x8xf32>
      %cst_186 = arith.constant 5.000000e-01 : f32
      %623 = vector.broadcast %cst_186 : f32 to vector<8x8xf32>
      %624 = arith.addf %622, %623 : vector<8x8xf32>
      %625 = arith.mulf %599, %113 : vector<8x8xf32>
      %626 = arith.addf %625, %131 : vector<8x8xf32>
      %627 = arith.addf %604, %135 : vector<8x8xf32>
      %628 = arith.mulf %614, %627 : vector<8x8xf32>
      %629 = arith.addf %626, %628 : vector<8x8xf32>
      %630 = math.tanh %629 : vector<8x8xf32>
      %cst_187 = arith.constant 1.000000e+00 : f32
      %631 = vector.broadcast %cst_187 : f32 to vector<8x8xf32>
      %632 = arith.subf %631, %624 : vector<8x8xf32>
      %633 = arith.mulf %632, %630 : vector<8x8xf32>
      %634 = arith.mulf %624, %arg30 : vector<8x8xf32>
      %635 = arith.addf %633, %634 : vector<8x8xf32>
      %636 = arith.mulf %635, %138 : vector<8x8xf32>
      %cst_188 = arith.constant dense<0.000000e+00> : vector<8xf32>
      %637 = vector.multi_reduction <add>, %636, %cst_188 [1] : vector<8x8xf32> to vector<8xf32>
      %638 = vector.shape_cast %637 : vector<8xf32> to vector<8x1xf32>
      %639 = vector.broadcast %139 : vector<1x1xf32> to vector<8x1xf32>
      %640 = arith.addf %638, %639 : vector<8x1xf32>
      %641 = arith.addf %640, %arg29 : vector<8x1xf32>
      %642 = vector.broadcast %597 : vector<8x1xf32> to vector<8x40xf32>
      %643 = arith.mulf %642, %11 : vector<8x40xf32>
      %644 = arith.addf %643, %32 : vector<8x40xf32>
      %645 = vector.broadcast %597 : vector<8x1xf32> to vector<8x40xf32>
      %646 = arith.mulf %645, %15 : vector<8x40xf32>
      %647 = arith.addf %646, %41 : vector<8x40xf32>
      %648 = vector.broadcast %597 : vector<8x1xf32> to vector<8x40xf32>
      %649 = arith.mulf %648, %19 : vector<8x40xf32>
      %650 = arith.addf %649, %50 : vector<8x40xf32>
      %651 = vector.broadcast %597 : vector<8x1xf32> to vector<8x40xf32>
      %652 = arith.mulf %651, %23 : vector<8x40xf32>
      %653 = arith.addf %652, %59 : vector<8x40xf32>
      %c0_189 = arith.constant 0 : index
      %c0_190 = arith.constant 0 : index
      %654 = vector.load %arg5[%c0_189, %c0_190] : memref<40x512xf32, #tpu.memory_space<vmem>>, vector<40x512xf32>
      %cst_191 = arith.constant dense<0.000000e+00> : vector<8x512xf32>
      %655 = tpu.matmul %arg26, %654, %cst_191 {dimension_numbers = #tpu.dot_dimension_numbers<[1], [0], [0], [1], [0, 0, 1, 1], [], []>} : vector<8x40xf32>, vector<40x512xf32>, vector<8x512xf32> -> vector<8x512xf32>
      %656 = vector.extract_strided_slice %655 {offsets = [0, 0], sizes = [8, 40], strides = [1, 1]} : vector<8x512xf32> to vector<8x40xf32>
      %657 = arith.addf %656, %644 : vector<8x40xf32>
      %658 = vector.extract_strided_slice %655 {offsets = [0, 128], sizes = [8, 40], strides = [1, 1]} : vector<8x512xf32> to vector<8x40xf32>
      %659 = arith.addf %658, %647 : vector<8x40xf32>
      %660 = vector.extract_strided_slice %655 {offsets = [0, 256], sizes = [8, 40], strides = [1, 1]} : vector<8x512xf32> to vector<8x40xf32>
      %661 = arith.addf %660, %650 : vector<8x40xf32>
      %662 = vector.extract_strided_slice %655 {offsets = [0, 384], sizes = [8, 40], strides = [1, 1]} : vector<8x512xf32> to vector<8x40xf32>
      %663 = arith.addf %662, %653 : vector<8x40xf32>
      %cst_192 = arith.constant 5.000000e-01 : f32
      %664 = vector.broadcast %cst_192 : f32 to vector<8x40xf32>
      %665 = arith.mulf %664, %657 : vector<8x40xf32>
      %666 = math.tanh %665 : vector<8x40xf32>
      %cst_193 = arith.constant 5.000000e-01 : f32
      %667 = vector.broadcast %cst_193 : f32 to vector<8x40xf32>
      %668 = arith.mulf %667, %666 : vector<8x40xf32>
      %cst_194 = arith.constant 5.000000e-01 : f32
      %669 = vector.broadcast %cst_194 : f32 to vector<8x40xf32>
      %670 = arith.addf %668, %669 : vector<8x40xf32>
      %cst_195 = arith.constant 5.000000e-01 : f32
      %671 = vector.broadcast %cst_195 : f32 to vector<8x40xf32>
      %672 = arith.mulf %671, %659 : vector<8x40xf32>
      %673 = math.tanh %672 : vector<8x40xf32>
      %cst_196 = arith.constant 5.000000e-01 : f32
      %674 = vector.broadcast %cst_196 : f32 to vector<8x40xf32>
      %675 = arith.mulf %674, %673 : vector<8x40xf32>
      %cst_197 = arith.constant 5.000000e-01 : f32
      %676 = vector.broadcast %cst_197 : f32 to vector<8x40xf32>
      %677 = arith.addf %675, %676 : vector<8x40xf32>
      %678 = math.tanh %661 : vector<8x40xf32>
      %cst_198 = arith.constant 5.000000e-01 : f32
      %679 = vector.broadcast %cst_198 : f32 to vector<8x40xf32>
      %680 = arith.mulf %679, %663 : vector<8x40xf32>
      %681 = math.tanh %680 : vector<8x40xf32>
      %cst_199 = arith.constant 5.000000e-01 : f32
      %682 = vector.broadcast %cst_199 : f32 to vector<8x40xf32>
      %683 = arith.mulf %682, %681 : vector<8x40xf32>
      %cst_200 = arith.constant 5.000000e-01 : f32
      %684 = vector.broadcast %cst_200 : f32 to vector<8x40xf32>
      %685 = arith.addf %683, %684 : vector<8x40xf32>
      %686 = arith.mulf %677, %arg27 : vector<8x40xf32>
      %687 = arith.mulf %670, %678 : vector<8x40xf32>
      %688 = arith.addf %686, %687 : vector<8x40xf32>
      %689 = math.tanh %688 : vector<8x40xf32>
      %690 = arith.mulf %685, %689 : vector<8x40xf32>
      %691 = arith.mulf %690, %62 : vector<8x40xf32>
      %cst_201 = arith.constant dense<0.000000e+00> : vector<8xf32>
      %692 = vector.multi_reduction <add>, %691, %cst_201 [1] : vector<8x40xf32> to vector<8xf32>
      %693 = vector.shape_cast %692 : vector<8xf32> to vector<8x1xf32>
      %694 = vector.broadcast %63 : vector<1x1xf32> to vector<8x1xf32>
      %695 = arith.addf %693, %694 : vector<8x1xf32>
      %696 = arith.addf %695, %597 : vector<8x1xf32>
      %697 = arith.mulf %92, %696 : vector<8x1xf32>
      %698 = arith.mulf %93, %arg28 : vector<8x1xf32>
      %699 = arith.addf %697, %698 : vector<8x1xf32>
      %700 = arith.mulf %97, %arg29 : vector<8x1xf32>
      %701 = arith.subf %699, %700 : vector<8x1xf32>
      %702 = arith.mulf %98, %701 : vector<8x1xf32>
      %703 = vector.extract_strided_slice %595 {offsets = [1, 0, 0], sizes = [1, 8, 1], strides = [1, 1, 1]} : vector<4x8x1xf32> to vector<1x8x1xf32>
      %704 = vector.shape_cast %703 : vector<1x8x1xf32> to vector<8x1xf32>
      %705 = vector.shape_cast %702 : vector<8x1xf32> to vector<8x1xf32>
      %706 = vector.broadcast %705 : vector<8x1xf32> to vector<8x8xf32>
      %c0_202 = arith.constant 0 : index
      %c0_203 = arith.constant 0 : index
      %707 = vector.load %arg14[%c0_202, %c0_203] : memref<8x384xf32, #tpu.memory_space<vmem>>, vector<8x384xf32>
      %cst_204 = arith.constant dense<0.000000e+00> : vector<8x384xf32>
      %708 = tpu.matmul %635, %707, %cst_204 {dimension_numbers = #tpu.dot_dimension_numbers<[1], [0], [0], [1], [0, 0, 1, 1], [], []>} : vector<8x8xf32>, vector<8x384xf32>, vector<8x384xf32> -> vector<8x384xf32>
      %709 = vector.extract_strided_slice %708 {offsets = [0, 0], sizes = [8, 8], strides = [1, 1]} : vector<8x384xf32> to vector<8x8xf32>
      %710 = vector.extract_strided_slice %708 {offsets = [0, 128], sizes = [8, 8], strides = [1, 1]} : vector<8x384xf32> to vector<8x8xf32>
      %711 = vector.extract_strided_slice %708 {offsets = [0, 256], sizes = [8, 8], strides = [1, 1]} : vector<8x384xf32> to vector<8x8xf32>
      %712 = arith.mulf %706, %105 : vector<8x8xf32>
      %713 = arith.addf %712, %709 : vector<8x8xf32>
      %714 = arith.addf %713, %120 : vector<8x8xf32>
      %cst_205 = arith.constant 5.000000e-01 : f32
      %715 = vector.broadcast %cst_205 : f32 to vector<8x8xf32>
      %716 = arith.mulf %715, %714 : vector<8x8xf32>
      %717 = math.tanh %716 : vector<8x8xf32>
      %cst_206 = arith.constant 5.000000e-01 : f32
      %718 = vector.broadcast %cst_206 : f32 to vector<8x8xf32>
      %719 = arith.mulf %718, %717 : vector<8x8xf32>
      %cst_207 = arith.constant 5.000000e-01 : f32
      %720 = vector.broadcast %cst_207 : f32 to vector<8x8xf32>
      %721 = arith.addf %719, %720 : vector<8x8xf32>
      %722 = arith.mulf %706, %109 : vector<8x8xf32>
      %723 = arith.addf %722, %710 : vector<8x8xf32>
      %724 = arith.addf %723, %127 : vector<8x8xf32>
      %cst_208 = arith.constant 5.000000e-01 : f32
      %725 = vector.broadcast %cst_208 : f32 to vector<8x8xf32>
      %726 = arith.mulf %725, %724 : vector<8x8xf32>
      %727 = math.tanh %726 : vector<8x8xf32>
      %cst_209 = arith.constant 5.000000e-01 : f32
      %728 = vector.broadcast %cst_209 : f32 to vector<8x8xf32>
      %729 = arith.mulf %728, %727 : vector<8x8xf32>
      %cst_210 = arith.constant 5.000000e-01 : f32
      %730 = vector.broadcast %cst_210 : f32 to vector<8x8xf32>
      %731 = arith.addf %729, %730 : vector<8x8xf32>
      %732 = arith.mulf %706, %113 : vector<8x8xf32>
      %733 = arith.addf %732, %131 : vector<8x8xf32>
      %734 = arith.addf %711, %135 : vector<8x8xf32>
      %735 = arith.mulf %721, %734 : vector<8x8xf32>
      %736 = arith.addf %733, %735 : vector<8x8xf32>
      %737 = math.tanh %736 : vector<8x8xf32>
      %cst_211 = arith.constant 1.000000e+00 : f32
      %738 = vector.broadcast %cst_211 : f32 to vector<8x8xf32>
      %739 = arith.subf %738, %731 : vector<8x8xf32>
      %740 = arith.mulf %739, %737 : vector<8x8xf32>
      %741 = arith.mulf %731, %635 : vector<8x8xf32>
      %742 = arith.addf %740, %741 : vector<8x8xf32>
      %743 = arith.mulf %742, %138 : vector<8x8xf32>
      %cst_212 = arith.constant dense<0.000000e+00> : vector<8xf32>
      %744 = vector.multi_reduction <add>, %743, %cst_212 [1] : vector<8x8xf32> to vector<8xf32>
      %745 = vector.shape_cast %744 : vector<8xf32> to vector<8x1xf32>
      %746 = vector.broadcast %139 : vector<1x1xf32> to vector<8x1xf32>
      %747 = arith.addf %745, %746 : vector<8x1xf32>
      %748 = arith.addf %747, %702 : vector<8x1xf32>
      %749 = vector.broadcast %704 : vector<8x1xf32> to vector<8x40xf32>
      %750 = arith.mulf %749, %11 : vector<8x40xf32>
      %751 = arith.addf %750, %32 : vector<8x40xf32>
      %752 = vector.broadcast %704 : vector<8x1xf32> to vector<8x40xf32>
      %753 = arith.mulf %752, %15 : vector<8x40xf32>
      %754 = arith.addf %753, %41 : vector<8x40xf32>
      %755 = vector.broadcast %704 : vector<8x1xf32> to vector<8x40xf32>
      %756 = arith.mulf %755, %19 : vector<8x40xf32>
      %757 = arith.addf %756, %50 : vector<8x40xf32>
      %758 = vector.broadcast %704 : vector<8x1xf32> to vector<8x40xf32>
      %759 = arith.mulf %758, %23 : vector<8x40xf32>
      %760 = arith.addf %759, %59 : vector<8x40xf32>
      %c0_213 = arith.constant 0 : index
      %c0_214 = arith.constant 0 : index
      %761 = vector.load %arg5[%c0_213, %c0_214] : memref<40x512xf32, #tpu.memory_space<vmem>>, vector<40x512xf32>
      %cst_215 = arith.constant dense<0.000000e+00> : vector<8x512xf32>
      %762 = tpu.matmul %690, %761, %cst_215 {dimension_numbers = #tpu.dot_dimension_numbers<[1], [0], [0], [1], [0, 0, 1, 1], [], []>} : vector<8x40xf32>, vector<40x512xf32>, vector<8x512xf32> -> vector<8x512xf32>
      %763 = vector.extract_strided_slice %762 {offsets = [0, 0], sizes = [8, 40], strides = [1, 1]} : vector<8x512xf32> to vector<8x40xf32>
      %764 = arith.addf %763, %751 : vector<8x40xf32>
      %765 = vector.extract_strided_slice %762 {offsets = [0, 128], sizes = [8, 40], strides = [1, 1]} : vector<8x512xf32> to vector<8x40xf32>
      %766 = arith.addf %765, %754 : vector<8x40xf32>
      %767 = vector.extract_strided_slice %762 {offsets = [0, 256], sizes = [8, 40], strides = [1, 1]} : vector<8x512xf32> to vector<8x40xf32>
      %768 = arith.addf %767, %757 : vector<8x40xf32>
      %769 = vector.extract_strided_slice %762 {offsets = [0, 384], sizes = [8, 40], strides = [1, 1]} : vector<8x512xf32> to vector<8x40xf32>
      %770 = arith.addf %769, %760 : vector<8x40xf32>
      %cst_216 = arith.constant 5.000000e-01 : f32
      %771 = vector.broadcast %cst_216 : f32 to vector<8x40xf32>
      %772 = arith.mulf %771, %764 : vector<8x40xf32>
      %773 = math.tanh %772 : vector<8x40xf32>
      %cst_217 = arith.constant 5.000000e-01 : f32
      %774 = vector.broadcast %cst_217 : f32 to vector<8x40xf32>
      %775 = arith.mulf %774, %773 : vector<8x40xf32>
      %cst_218 = arith.constant 5.000000e-01 : f32
      %776 = vector.broadcast %cst_218 : f32 to vector<8x40xf32>
      %777 = arith.addf %775, %776 : vector<8x40xf32>
      %cst_219 = arith.constant 5.000000e-01 : f32
      %778 = vector.broadcast %cst_219 : f32 to vector<8x40xf32>
      %779 = arith.mulf %778, %766 : vector<8x40xf32>
      %780 = math.tanh %779 : vector<8x40xf32>
      %cst_220 = arith.constant 5.000000e-01 : f32
      %781 = vector.broadcast %cst_220 : f32 to vector<8x40xf32>
      %782 = arith.mulf %781, %780 : vector<8x40xf32>
      %cst_221 = arith.constant 5.000000e-01 : f32
      %783 = vector.broadcast %cst_221 : f32 to vector<8x40xf32>
      %784 = arith.addf %782, %783 : vector<8x40xf32>
      %785 = math.tanh %768 : vector<8x40xf32>
      %cst_222 = arith.constant 5.000000e-01 : f32
      %786 = vector.broadcast %cst_222 : f32 to vector<8x40xf32>
      %787 = arith.mulf %786, %770 : vector<8x40xf32>
      %788 = math.tanh %787 : vector<8x40xf32>
      %cst_223 = arith.constant 5.000000e-01 : f32
      %789 = vector.broadcast %cst_223 : f32 to vector<8x40xf32>
      %790 = arith.mulf %789, %788 : vector<8x40xf32>
      %cst_224 = arith.constant 5.000000e-01 : f32
      %791 = vector.broadcast %cst_224 : f32 to vector<8x40xf32>
      %792 = arith.addf %790, %791 : vector<8x40xf32>
      %793 = arith.mulf %784, %688 : vector<8x40xf32>
      %794 = arith.mulf %777, %785 : vector<8x40xf32>
      %795 = arith.addf %793, %794 : vector<8x40xf32>
      %796 = math.tanh %795 : vector<8x40xf32>
      %797 = arith.mulf %792, %796 : vector<8x40xf32>
      %798 = arith.mulf %797, %62 : vector<8x40xf32>
      %cst_225 = arith.constant dense<0.000000e+00> : vector<8xf32>
      %799 = vector.multi_reduction <add>, %798, %cst_225 [1] : vector<8x40xf32> to vector<8xf32>
      %800 = vector.shape_cast %799 : vector<8xf32> to vector<8x1xf32>
      %801 = vector.broadcast %63 : vector<1x1xf32> to vector<8x1xf32>
      %802 = arith.addf %800, %801 : vector<8x1xf32>
      %803 = arith.addf %802, %704 : vector<8x1xf32>
      %804 = arith.mulf %92, %803 : vector<8x1xf32>
      %805 = arith.mulf %93, %696 : vector<8x1xf32>
      %806 = arith.addf %804, %805 : vector<8x1xf32>
      %807 = arith.mulf %97, %702 : vector<8x1xf32>
      %808 = arith.subf %806, %807 : vector<8x1xf32>
      %809 = arith.mulf %98, %808 : vector<8x1xf32>
      %810 = vector.extract_strided_slice %595 {offsets = [2, 0, 0], sizes = [1, 8, 1], strides = [1, 1, 1]} : vector<4x8x1xf32> to vector<1x8x1xf32>
      %811 = vector.shape_cast %810 : vector<1x8x1xf32> to vector<8x1xf32>
      %812 = vector.shape_cast %809 : vector<8x1xf32> to vector<8x1xf32>
      %813 = vector.broadcast %812 : vector<8x1xf32> to vector<8x8xf32>
      %c0_226 = arith.constant 0 : index
      %c0_227 = arith.constant 0 : index
      %814 = vector.load %arg14[%c0_226, %c0_227] : memref<8x384xf32, #tpu.memory_space<vmem>>, vector<8x384xf32>
      %cst_228 = arith.constant dense<0.000000e+00> : vector<8x384xf32>
      %815 = tpu.matmul %742, %814, %cst_228 {dimension_numbers = #tpu.dot_dimension_numbers<[1], [0], [0], [1], [0, 0, 1, 1], [], []>} : vector<8x8xf32>, vector<8x384xf32>, vector<8x384xf32> -> vector<8x384xf32>
      %816 = vector.extract_strided_slice %815 {offsets = [0, 0], sizes = [8, 8], strides = [1, 1]} : vector<8x384xf32> to vector<8x8xf32>
      %817 = vector.extract_strided_slice %815 {offsets = [0, 128], sizes = [8, 8], strides = [1, 1]} : vector<8x384xf32> to vector<8x8xf32>
      %818 = vector.extract_strided_slice %815 {offsets = [0, 256], sizes = [8, 8], strides = [1, 1]} : vector<8x384xf32> to vector<8x8xf32>
      %819 = arith.mulf %813, %105 : vector<8x8xf32>
      %820 = arith.addf %819, %816 : vector<8x8xf32>
      %821 = arith.addf %820, %120 : vector<8x8xf32>
      %cst_229 = arith.constant 5.000000e-01 : f32
      %822 = vector.broadcast %cst_229 : f32 to vector<8x8xf32>
      %823 = arith.mulf %822, %821 : vector<8x8xf32>
      %824 = math.tanh %823 : vector<8x8xf32>
      %cst_230 = arith.constant 5.000000e-01 : f32
      %825 = vector.broadcast %cst_230 : f32 to vector<8x8xf32>
      %826 = arith.mulf %825, %824 : vector<8x8xf32>
      %cst_231 = arith.constant 5.000000e-01 : f32
      %827 = vector.broadcast %cst_231 : f32 to vector<8x8xf32>
      %828 = arith.addf %826, %827 : vector<8x8xf32>
      %829 = arith.mulf %813, %109 : vector<8x8xf32>
      %830 = arith.addf %829, %817 : vector<8x8xf32>
      %831 = arith.addf %830, %127 : vector<8x8xf32>
      %cst_232 = arith.constant 5.000000e-01 : f32
      %832 = vector.broadcast %cst_232 : f32 to vector<8x8xf32>
      %833 = arith.mulf %832, %831 : vector<8x8xf32>
      %834 = math.tanh %833 : vector<8x8xf32>
      %cst_233 = arith.constant 5.000000e-01 : f32
      %835 = vector.broadcast %cst_233 : f32 to vector<8x8xf32>
      %836 = arith.mulf %835, %834 : vector<8x8xf32>
      %cst_234 = arith.constant 5.000000e-01 : f32
      %837 = vector.broadcast %cst_234 : f32 to vector<8x8xf32>
      %838 = arith.addf %836, %837 : vector<8x8xf32>
      %839 = arith.mulf %813, %113 : vector<8x8xf32>
      %840 = arith.addf %839, %131 : vector<8x8xf32>
      %841 = arith.addf %818, %135 : vector<8x8xf32>
      %842 = arith.mulf %828, %841 : vector<8x8xf32>
      %843 = arith.addf %840, %842 : vector<8x8xf32>
      %844 = math.tanh %843 : vector<8x8xf32>
      %cst_235 = arith.constant 1.000000e+00 : f32
      %845 = vector.broadcast %cst_235 : f32 to vector<8x8xf32>
      %846 = arith.subf %845, %838 : vector<8x8xf32>
      %847 = arith.mulf %846, %844 : vector<8x8xf32>
      %848 = arith.mulf %838, %742 : vector<8x8xf32>
      %849 = arith.addf %847, %848 : vector<8x8xf32>
      %850 = arith.mulf %849, %138 : vector<8x8xf32>
      %cst_236 = arith.constant dense<0.000000e+00> : vector<8xf32>
      %851 = vector.multi_reduction <add>, %850, %cst_236 [1] : vector<8x8xf32> to vector<8xf32>
      %852 = vector.shape_cast %851 : vector<8xf32> to vector<8x1xf32>
      %853 = vector.broadcast %139 : vector<1x1xf32> to vector<8x1xf32>
      %854 = arith.addf %852, %853 : vector<8x1xf32>
      %855 = arith.addf %854, %809 : vector<8x1xf32>
      %856 = vector.broadcast %811 : vector<8x1xf32> to vector<8x40xf32>
      %857 = arith.mulf %856, %11 : vector<8x40xf32>
      %858 = arith.addf %857, %32 : vector<8x40xf32>
      %859 = vector.broadcast %811 : vector<8x1xf32> to vector<8x40xf32>
      %860 = arith.mulf %859, %15 : vector<8x40xf32>
      %861 = arith.addf %860, %41 : vector<8x40xf32>
      %862 = vector.broadcast %811 : vector<8x1xf32> to vector<8x40xf32>
      %863 = arith.mulf %862, %19 : vector<8x40xf32>
      %864 = arith.addf %863, %50 : vector<8x40xf32>
      %865 = vector.broadcast %811 : vector<8x1xf32> to vector<8x40xf32>
      %866 = arith.mulf %865, %23 : vector<8x40xf32>
      %867 = arith.addf %866, %59 : vector<8x40xf32>
      %c0_237 = arith.constant 0 : index
      %c0_238 = arith.constant 0 : index
      %868 = vector.load %arg5[%c0_237, %c0_238] : memref<40x512xf32, #tpu.memory_space<vmem>>, vector<40x512xf32>
      %cst_239 = arith.constant dense<0.000000e+00> : vector<8x512xf32>
      %869 = tpu.matmul %797, %868, %cst_239 {dimension_numbers = #tpu.dot_dimension_numbers<[1], [0], [0], [1], [0, 0, 1, 1], [], []>} : vector<8x40xf32>, vector<40x512xf32>, vector<8x512xf32> -> vector<8x512xf32>
      %870 = vector.extract_strided_slice %869 {offsets = [0, 0], sizes = [8, 40], strides = [1, 1]} : vector<8x512xf32> to vector<8x40xf32>
      %871 = arith.addf %870, %858 : vector<8x40xf32>
      %872 = vector.extract_strided_slice %869 {offsets = [0, 128], sizes = [8, 40], strides = [1, 1]} : vector<8x512xf32> to vector<8x40xf32>
      %873 = arith.addf %872, %861 : vector<8x40xf32>
      %874 = vector.extract_strided_slice %869 {offsets = [0, 256], sizes = [8, 40], strides = [1, 1]} : vector<8x512xf32> to vector<8x40xf32>
      %875 = arith.addf %874, %864 : vector<8x40xf32>
      %876 = vector.extract_strided_slice %869 {offsets = [0, 384], sizes = [8, 40], strides = [1, 1]} : vector<8x512xf32> to vector<8x40xf32>
      %877 = arith.addf %876, %867 : vector<8x40xf32>
      %cst_240 = arith.constant 5.000000e-01 : f32
      %878 = vector.broadcast %cst_240 : f32 to vector<8x40xf32>
      %879 = arith.mulf %878, %871 : vector<8x40xf32>
      %880 = math.tanh %879 : vector<8x40xf32>
      %cst_241 = arith.constant 5.000000e-01 : f32
      %881 = vector.broadcast %cst_241 : f32 to vector<8x40xf32>
      %882 = arith.mulf %881, %880 : vector<8x40xf32>
      %cst_242 = arith.constant 5.000000e-01 : f32
      %883 = vector.broadcast %cst_242 : f32 to vector<8x40xf32>
      %884 = arith.addf %882, %883 : vector<8x40xf32>
      %cst_243 = arith.constant 5.000000e-01 : f32
      %885 = vector.broadcast %cst_243 : f32 to vector<8x40xf32>
      %886 = arith.mulf %885, %873 : vector<8x40xf32>
      %887 = math.tanh %886 : vector<8x40xf32>
      %cst_244 = arith.constant 5.000000e-01 : f32
      %888 = vector.broadcast %cst_244 : f32 to vector<8x40xf32>
      %889 = arith.mulf %888, %887 : vector<8x40xf32>
      %cst_245 = arith.constant 5.000000e-01 : f32
      %890 = vector.broadcast %cst_245 : f32 to vector<8x40xf32>
      %891 = arith.addf %889, %890 : vector<8x40xf32>
      %892 = math.tanh %875 : vector<8x40xf32>
      %cst_246 = arith.constant 5.000000e-01 : f32
      %893 = vector.broadcast %cst_246 : f32 to vector<8x40xf32>
      %894 = arith.mulf %893, %877 : vector<8x40xf32>
      %895 = math.tanh %894 : vector<8x40xf32>
      %cst_247 = arith.constant 5.000000e-01 : f32
      %896 = vector.broadcast %cst_247 : f32 to vector<8x40xf32>
      %897 = arith.mulf %896, %895 : vector<8x40xf32>
      %cst_248 = arith.constant 5.000000e-01 : f32
      %898 = vector.broadcast %cst_248 : f32 to vector<8x40xf32>
      %899 = arith.addf %897, %898 : vector<8x40xf32>
      %900 = arith.mulf %891, %795 : vector<8x40xf32>
      %901 = arith.mulf %884, %892 : vector<8x40xf32>
      %902 = arith.addf %900, %901 : vector<8x40xf32>
      %903 = math.tanh %902 : vector<8x40xf32>
      %904 = arith.mulf %899, %903 : vector<8x40xf32>
      %905 = arith.mulf %904, %62 : vector<8x40xf32>
      %cst_249 = arith.constant dense<0.000000e+00> : vector<8xf32>
      %906 = vector.multi_reduction <add>, %905, %cst_249 [1] : vector<8x40xf32> to vector<8xf32>
      %907 = vector.shape_cast %906 : vector<8xf32> to vector<8x1xf32>
      %908 = vector.broadcast %63 : vector<1x1xf32> to vector<8x1xf32>
      %909 = arith.addf %907, %908 : vector<8x1xf32>
      %910 = arith.addf %909, %811 : vector<8x1xf32>
      %911 = arith.mulf %92, %910 : vector<8x1xf32>
      %912 = arith.mulf %93, %803 : vector<8x1xf32>
      %913 = arith.addf %911, %912 : vector<8x1xf32>
      %914 = arith.mulf %97, %809 : vector<8x1xf32>
      %915 = arith.subf %913, %914 : vector<8x1xf32>
      %916 = arith.mulf %98, %915 : vector<8x1xf32>
      %917 = vector.extract_strided_slice %595 {offsets = [3, 0, 0], sizes = [1, 8, 1], strides = [1, 1, 1]} : vector<4x8x1xf32> to vector<1x8x1xf32>
      %918 = vector.shape_cast %917 : vector<1x8x1xf32> to vector<8x1xf32>
      %919 = vector.shape_cast %916 : vector<8x1xf32> to vector<8x1xf32>
      %920 = vector.broadcast %919 : vector<8x1xf32> to vector<8x8xf32>
      %c0_250 = arith.constant 0 : index
      %c0_251 = arith.constant 0 : index
      %921 = vector.load %arg14[%c0_250, %c0_251] : memref<8x384xf32, #tpu.memory_space<vmem>>, vector<8x384xf32>
      %cst_252 = arith.constant dense<0.000000e+00> : vector<8x384xf32>
      %922 = tpu.matmul %849, %921, %cst_252 {dimension_numbers = #tpu.dot_dimension_numbers<[1], [0], [0], [1], [0, 0, 1, 1], [], []>} : vector<8x8xf32>, vector<8x384xf32>, vector<8x384xf32> -> vector<8x384xf32>
      %923 = vector.extract_strided_slice %922 {offsets = [0, 0], sizes = [8, 8], strides = [1, 1]} : vector<8x384xf32> to vector<8x8xf32>
      %924 = vector.extract_strided_slice %922 {offsets = [0, 128], sizes = [8, 8], strides = [1, 1]} : vector<8x384xf32> to vector<8x8xf32>
      %925 = vector.extract_strided_slice %922 {offsets = [0, 256], sizes = [8, 8], strides = [1, 1]} : vector<8x384xf32> to vector<8x8xf32>
      %926 = arith.mulf %920, %105 : vector<8x8xf32>
      %927 = arith.addf %926, %923 : vector<8x8xf32>
      %928 = arith.addf %927, %120 : vector<8x8xf32>
      %cst_253 = arith.constant 5.000000e-01 : f32
      %929 = vector.broadcast %cst_253 : f32 to vector<8x8xf32>
      %930 = arith.mulf %929, %928 : vector<8x8xf32>
      %931 = math.tanh %930 : vector<8x8xf32>
      %cst_254 = arith.constant 5.000000e-01 : f32
      %932 = vector.broadcast %cst_254 : f32 to vector<8x8xf32>
      %933 = arith.mulf %932, %931 : vector<8x8xf32>
      %cst_255 = arith.constant 5.000000e-01 : f32
      %934 = vector.broadcast %cst_255 : f32 to vector<8x8xf32>
      %935 = arith.addf %933, %934 : vector<8x8xf32>
      %936 = arith.mulf %920, %109 : vector<8x8xf32>
      %937 = arith.addf %936, %924 : vector<8x8xf32>
      %938 = arith.addf %937, %127 : vector<8x8xf32>
      %cst_256 = arith.constant 5.000000e-01 : f32
      %939 = vector.broadcast %cst_256 : f32 to vector<8x8xf32>
      %940 = arith.mulf %939, %938 : vector<8x8xf32>
      %941 = math.tanh %940 : vector<8x8xf32>
      %cst_257 = arith.constant 5.000000e-01 : f32
      %942 = vector.broadcast %cst_257 : f32 to vector<8x8xf32>
      %943 = arith.mulf %942, %941 : vector<8x8xf32>
      %cst_258 = arith.constant 5.000000e-01 : f32
      %944 = vector.broadcast %cst_258 : f32 to vector<8x8xf32>
      %945 = arith.addf %943, %944 : vector<8x8xf32>
      %946 = arith.mulf %920, %113 : vector<8x8xf32>
      %947 = arith.addf %946, %131 : vector<8x8xf32>
      %948 = arith.addf %925, %135 : vector<8x8xf32>
      %949 = arith.mulf %935, %948 : vector<8x8xf32>
      %950 = arith.addf %947, %949 : vector<8x8xf32>
      %951 = math.tanh %950 : vector<8x8xf32>
      %cst_259 = arith.constant 1.000000e+00 : f32
      %952 = vector.broadcast %cst_259 : f32 to vector<8x8xf32>
      %953 = arith.subf %952, %945 : vector<8x8xf32>
      %954 = arith.mulf %953, %951 : vector<8x8xf32>
      %955 = arith.mulf %945, %849 : vector<8x8xf32>
      %956 = arith.addf %954, %955 : vector<8x8xf32>
      %957 = arith.mulf %956, %138 : vector<8x8xf32>
      %cst_260 = arith.constant dense<0.000000e+00> : vector<8xf32>
      %958 = vector.multi_reduction <add>, %957, %cst_260 [1] : vector<8x8xf32> to vector<8xf32>
      %959 = vector.shape_cast %958 : vector<8xf32> to vector<8x1xf32>
      %960 = vector.broadcast %139 : vector<1x1xf32> to vector<8x1xf32>
      %961 = arith.addf %959, %960 : vector<8x1xf32>
      %962 = arith.addf %961, %916 : vector<8x1xf32>
      %963 = vector.broadcast %918 : vector<8x1xf32> to vector<8x40xf32>
      %964 = arith.mulf %963, %11 : vector<8x40xf32>
      %965 = arith.addf %964, %32 : vector<8x40xf32>
      %966 = vector.broadcast %918 : vector<8x1xf32> to vector<8x40xf32>
      %967 = arith.mulf %966, %15 : vector<8x40xf32>
      %968 = arith.addf %967, %41 : vector<8x40xf32>
      %969 = vector.broadcast %918 : vector<8x1xf32> to vector<8x40xf32>
      %970 = arith.mulf %969, %19 : vector<8x40xf32>
      %971 = arith.addf %970, %50 : vector<8x40xf32>
      %972 = vector.broadcast %918 : vector<8x1xf32> to vector<8x40xf32>
      %973 = arith.mulf %972, %23 : vector<8x40xf32>
      %974 = arith.addf %973, %59 : vector<8x40xf32>
      %c0_261 = arith.constant 0 : index
      %c0_262 = arith.constant 0 : index
      %975 = vector.load %arg5[%c0_261, %c0_262] : memref<40x512xf32, #tpu.memory_space<vmem>>, vector<40x512xf32>
      %cst_263 = arith.constant dense<0.000000e+00> : vector<8x512xf32>
      %976 = tpu.matmul %904, %975, %cst_263 {dimension_numbers = #tpu.dot_dimension_numbers<[1], [0], [0], [1], [0, 0, 1, 1], [], []>} : vector<8x40xf32>, vector<40x512xf32>, vector<8x512xf32> -> vector<8x512xf32>
      %977 = vector.extract_strided_slice %976 {offsets = [0, 0], sizes = [8, 40], strides = [1, 1]} : vector<8x512xf32> to vector<8x40xf32>
      %978 = arith.addf %977, %965 : vector<8x40xf32>
      %979 = vector.extract_strided_slice %976 {offsets = [0, 128], sizes = [8, 40], strides = [1, 1]} : vector<8x512xf32> to vector<8x40xf32>
      %980 = arith.addf %979, %968 : vector<8x40xf32>
      %981 = vector.extract_strided_slice %976 {offsets = [0, 256], sizes = [8, 40], strides = [1, 1]} : vector<8x512xf32> to vector<8x40xf32>
      %982 = arith.addf %981, %971 : vector<8x40xf32>
      %983 = vector.extract_strided_slice %976 {offsets = [0, 384], sizes = [8, 40], strides = [1, 1]} : vector<8x512xf32> to vector<8x40xf32>
      %984 = arith.addf %983, %974 : vector<8x40xf32>
      %cst_264 = arith.constant 5.000000e-01 : f32
      %985 = vector.broadcast %cst_264 : f32 to vector<8x40xf32>
      %986 = arith.mulf %985, %978 : vector<8x40xf32>
      %987 = math.tanh %986 : vector<8x40xf32>
      %cst_265 = arith.constant 5.000000e-01 : f32
      %988 = vector.broadcast %cst_265 : f32 to vector<8x40xf32>
      %989 = arith.mulf %988, %987 : vector<8x40xf32>
      %cst_266 = arith.constant 5.000000e-01 : f32
      %990 = vector.broadcast %cst_266 : f32 to vector<8x40xf32>
      %991 = arith.addf %989, %990 : vector<8x40xf32>
      %cst_267 = arith.constant 5.000000e-01 : f32
      %992 = vector.broadcast %cst_267 : f32 to vector<8x40xf32>
      %993 = arith.mulf %992, %980 : vector<8x40xf32>
      %994 = math.tanh %993 : vector<8x40xf32>
      %cst_268 = arith.constant 5.000000e-01 : f32
      %995 = vector.broadcast %cst_268 : f32 to vector<8x40xf32>
      %996 = arith.mulf %995, %994 : vector<8x40xf32>
      %cst_269 = arith.constant 5.000000e-01 : f32
      %997 = vector.broadcast %cst_269 : f32 to vector<8x40xf32>
      %998 = arith.addf %996, %997 : vector<8x40xf32>
      %999 = math.tanh %982 : vector<8x40xf32>
      %cst_270 = arith.constant 5.000000e-01 : f32
      %1000 = vector.broadcast %cst_270 : f32 to vector<8x40xf32>
      %1001 = arith.mulf %1000, %984 : vector<8x40xf32>
      %1002 = math.tanh %1001 : vector<8x40xf32>
      %cst_271 = arith.constant 5.000000e-01 : f32
      %1003 = vector.broadcast %cst_271 : f32 to vector<8x40xf32>
      %1004 = arith.mulf %1003, %1002 : vector<8x40xf32>
      %cst_272 = arith.constant 5.000000e-01 : f32
      %1005 = vector.broadcast %cst_272 : f32 to vector<8x40xf32>
      %1006 = arith.addf %1004, %1005 : vector<8x40xf32>
      %1007 = arith.mulf %998, %902 : vector<8x40xf32>
      %1008 = arith.mulf %991, %999 : vector<8x40xf32>
      %1009 = arith.addf %1007, %1008 : vector<8x40xf32>
      %1010 = math.tanh %1009 : vector<8x40xf32>
      %1011 = arith.mulf %1006, %1010 : vector<8x40xf32>
      %1012 = arith.mulf %1011, %62 : vector<8x40xf32>
      %cst_273 = arith.constant dense<0.000000e+00> : vector<8xf32>
      %1013 = vector.multi_reduction <add>, %1012, %cst_273 [1] : vector<8x40xf32> to vector<8xf32>
      %1014 = vector.shape_cast %1013 : vector<8xf32> to vector<8x1xf32>
      %1015 = vector.broadcast %63 : vector<1x1xf32> to vector<8x1xf32>
      %1016 = arith.addf %1014, %1015 : vector<8x1xf32>
      %1017 = arith.addf %1016, %918 : vector<8x1xf32>
      %1018 = arith.mulf %92, %1017 : vector<8x1xf32>
      %1019 = arith.mulf %93, %910 : vector<8x1xf32>
      %1020 = arith.addf %1018, %1019 : vector<8x1xf32>
      %1021 = arith.mulf %97, %916 : vector<8x1xf32>
      %1022 = arith.subf %1020, %1021 : vector<8x1xf32>
      %1023 = arith.mulf %98, %1022 : vector<8x1xf32>
      %1024 = vector.shape_cast %641 : vector<8x1xf32> to vector<1x8x1xf32>
      %1025 = vector.shape_cast %748 : vector<8x1xf32> to vector<1x8x1xf32>
      %1026 = vector.shape_cast %855 : vector<8x1xf32> to vector<1x8x1xf32>
      %1027 = vector.shape_cast %962 : vector<8x1xf32> to vector<1x8x1xf32>
      %1028 = tpu.concatenate %1024, %1025, %1026, %1027 in 0 : vector<1x8x1xf32>, vector<1x8x1xf32>, vector<1x8x1xf32>, vector<1x8x1xf32> -> vector<4x8x1xf32>
      %c1_i32_274 = arith.constant 1 : i32
      %1029 = arith.subi %593, %c1_i32_274 : i32
      %1030 = arith.index_cast %1029 : i32 to index
      %c0_275 = arith.constant 0 : index
      %c0_276 = arith.constant 0 : index
      %1031 = vector.load %arg19[%1030, %c0_275, %c0_276] : memref<1024x8x1xf32, #tpu.memory_space<vmem>>, vector<4x8x1xf32>
      tpu.vector_store %arg19[%1030, %c0_275, %c0_276], %1028 {strides = array<i32>} : memref<1024x8x1xf32, #tpu.memory_space<vmem>>, vector<4x8x1xf32>,
      scf.yield %1011, %1009, %1017, %1023, %956 : vector<8x40xf32>, vector<8x40xf32>, vector<8x1xf32>, vector<8x1xf32>, vector<8x8xf32>
    }
    %c255_i32_151 = arith.constant 255 : i32
    %540 = vector.shape_cast %539#3 : vector<8x1xf32> to vector<8x1xf32>
    %541 = vector.broadcast %540 : vector<8x1xf32> to vector<8x8xf32>
    %c0_152 = arith.constant 0 : index
    %c0_153 = arith.constant 0 : index
    %542 = vector.load %arg14[%c0_152, %c0_153] : memref<8x384xf32, #tpu.memory_space<vmem>>, vector<8x384xf32>
    %cst_154 = arith.constant dense<0.000000e+00> : vector<8x384xf32>
    %543 = tpu.matmul %539#4, %542, %cst_154 {dimension_numbers = #tpu.dot_dimension_numbers<[1], [0], [0], [1], [0, 0, 1, 1], [], []>} : vector<8x8xf32>, vector<8x384xf32>, vector<8x384xf32> -> vector<8x384xf32>
    %544 = vector.extract_strided_slice %543 {offsets = [0, 0], sizes = [8, 8], strides = [1, 1]} : vector<8x384xf32> to vector<8x8xf32>
    %545 = vector.extract_strided_slice %543 {offsets = [0, 128], sizes = [8, 8], strides = [1, 1]} : vector<8x384xf32> to vector<8x8xf32>
    %546 = vector.extract_strided_slice %543 {offsets = [0, 256], sizes = [8, 8], strides = [1, 1]} : vector<8x384xf32> to vector<8x8xf32>
    %547 = arith.mulf %541, %105 : vector<8x8xf32>
    %548 = arith.addf %547, %544 : vector<8x8xf32>
    %549 = arith.addf %548, %120 : vector<8x8xf32>
    %cst_155 = arith.constant 5.000000e-01 : f32
    %550 = vector.broadcast %cst_155 : f32 to vector<8x8xf32>
    %551 = arith.mulf %550, %549 : vector<8x8xf32>
    %552 = math.tanh %551 : vector<8x8xf32>
    %cst_156 = arith.constant 5.000000e-01 : f32
    %553 = vector.broadcast %cst_156 : f32 to vector<8x8xf32>
    %554 = arith.mulf %553, %552 : vector<8x8xf32>
    %cst_157 = arith.constant 5.000000e-01 : f32
    %555 = vector.broadcast %cst_157 : f32 to vector<8x8xf32>
    %556 = arith.addf %554, %555 : vector<8x8xf32>
    %557 = arith.mulf %541, %109 : vector<8x8xf32>
    %558 = arith.addf %557, %545 : vector<8x8xf32>
    %559 = arith.addf %558, %127 : vector<8x8xf32>
    %cst_158 = arith.constant 5.000000e-01 : f32
    %560 = vector.broadcast %cst_158 : f32 to vector<8x8xf32>
    %561 = arith.mulf %560, %559 : vector<8x8xf32>
    %562 = math.tanh %561 : vector<8x8xf32>
    %cst_159 = arith.constant 5.000000e-01 : f32
    %563 = vector.broadcast %cst_159 : f32 to vector<8x8xf32>
    %564 = arith.mulf %563, %562 : vector<8x8xf32>
    %cst_160 = arith.constant 5.000000e-01 : f32
    %565 = vector.broadcast %cst_160 : f32 to vector<8x8xf32>
    %566 = arith.addf %564, %565 : vector<8x8xf32>
    %567 = arith.mulf %541, %113 : vector<8x8xf32>
    %568 = arith.addf %567, %131 : vector<8x8xf32>
    %569 = arith.addf %546, %135 : vector<8x8xf32>
    %570 = arith.mulf %556, %569 : vector<8x8xf32>
    %571 = arith.addf %568, %570 : vector<8x8xf32>
    %572 = math.tanh %571 : vector<8x8xf32>
    %cst_161 = arith.constant 1.000000e+00 : f32
    %573 = vector.broadcast %cst_161 : f32 to vector<8x8xf32>
    %574 = arith.subf %573, %566 : vector<8x8xf32>
    %575 = arith.mulf %574, %572 : vector<8x8xf32>
    %576 = arith.mulf %566, %539#4 : vector<8x8xf32>
    %577 = arith.addf %575, %576 : vector<8x8xf32>
    %578 = arith.mulf %577, %138 : vector<8x8xf32>
    %cst_162 = arith.constant dense<0.000000e+00> : vector<8xf32>
    %579 = vector.multi_reduction <add>, %578, %cst_162 [1] : vector<8x8xf32> to vector<8xf32>
    %580 = vector.shape_cast %579 : vector<8xf32> to vector<8x1xf32>
    %581 = vector.broadcast %139 : vector<1x1xf32> to vector<8x1xf32>
    %582 = arith.addf %580, %581 : vector<8x1xf32>
    %583 = arith.addf %582, %539#3 : vector<8x1xf32>
    %c1023 = arith.constant 1023 : index
    %c0_163 = arith.constant 0 : index
    %c0_164 = arith.constant 0 : index
    %584 = vector.load %arg19[%c1023, %c0_163, %c0_164] : memref<1024x8x1xf32, #tpu.memory_space<vmem>>, vector<1x8x1xf32>
    %585 = vector.shape_cast %584 : vector<1x8x1xf32> to vector<8x1xf32>
    %586 = vector.shape_cast %583 : vector<8x1xf32> to vector<1x8x1xf32>
    tpu.vector_store %arg19[%c1023, %c0_163, %c0_164], %586 {strides = array<i32>} : memref<1024x8x1xf32, #tpu.memory_space<vmem>>, vector<1x8x1xf32>,
    %c0_165 = arith.constant 0 : index
    %c0_166 = arith.constant 0 : index
    %587 = vector.load %arg20[%c0_165, %c0_166] : memref<8x40xf32, #tpu.memory_space<vmem>>, vector<8x40xf32>
    tpu.vector_store %arg20[%c0_165, %c0_166], %539#0 {strides = array<i32>} : memref<8x40xf32, #tpu.memory_space<vmem>>, vector<8x40xf32>,
    %c0_167 = arith.constant 0 : index
    %c0_168 = arith.constant 0 : index
    %588 = vector.load %arg21[%c0_167, %c0_168] : memref<8x40xf32, #tpu.memory_space<vmem>>, vector<8x40xf32>
    tpu.vector_store %arg21[%c0_167, %c0_168], %539#1 {strides = array<i32>} : memref<8x40xf32, #tpu.memory_space<vmem>>, vector<8x40xf32>,
    %c0_169 = arith.constant 0 : index
    %c0_170 = arith.constant 0 : index
    %589 = vector.load %arg22[%c0_169, %c0_170] : memref<8x8xf32, #tpu.memory_space<vmem>>, vector<8x8xf32>
    tpu.vector_store %arg22[%c0_169, %c0_170], %577 {strides = array<i32>} : memref<8x8xf32, #tpu.memory_space<vmem>>, vector<8x8xf32>,
    %c0_171 = arith.constant 0 : index
    %c0_172 = arith.constant 0 : index
    %590 = vector.load %arg23[%c0_171, %c0_172] : memref<8x1xf32, #tpu.memory_space<vmem>>, vector<8x1xf32>
    tpu.vector_store %arg23[%c0_171, %c0_172], %539#2 {strides = array<i32>} : memref<8x1xf32, #tpu.memory_space<vmem>>, vector<8x1xf32>,
    %c0_173 = arith.constant 0 : index
    %c0_174 = arith.constant 0 : index
    %591 = vector.load %arg24[%c0_173, %c0_174] : memref<8x1xf32, #tpu.memory_space<vmem>>, vector<8x1xf32>
    tpu.vector_store %arg24[%c0_173, %c0_174], %539#3 {strides = array<i32>} : memref<8x1xf32, #tpu.memory_space<vmem>>, vector<8x1xf32>,
    return
  }
  func.func @transform_0(%arg0: i32) -> (i32, i32, i32) {
    %c0_i32 = arith.constant 0 : i32
    %c0_i32_0 = arith.constant 0 : i32
    %c0_i32_1 = arith.constant 0 : i32
    return %arg0, %c0_i32, %c0_i32_0 : i32, i32, i32
  }
  func.func @transform_1(%arg0: i32) -> (i32, i32) {
    %c0_i32 = arith.constant 0 : i32
    %c0_i32_0 = arith.constant 0 : i32
    %c0_i32_1 = arith.constant 0 : i32
    return %c0_i32, %c0_i32_0 : i32, i32
  }
  func.func @transform_2(%arg0: i32) -> (i32, i32, i32) {
    %c0_i32 = arith.constant 0 : i32
    %c0_i32_0 = arith.constant 0 : i32
    %c0_i32_1 = arith.constant 0 : i32
    %c0_i32_2 = arith.constant 0 : i32
    return %c0_i32, %c0_i32_0, %c0_i32_1 : i32, i32, i32
  }
  func.func @transform_3(%arg0: i32) -> (i32, i32, i32) {
    %c0_i32 = arith.constant 0 : i32
    %c0_i32_0 = arith.constant 0 : i32
    %c0_i32_1 = arith.constant 0 : i32
    %c0_i32_2 = arith.constant 0 : i32
    return %c0_i32, %c0_i32_0, %c0_i32_1 : i32, i32, i32
  }
  func.func @transform_4(%arg0: i32) -> (i32, i32) {
    %c0_i32 = arith.constant 0 : i32
    %c0_i32_0 = arith.constant 0 : i32
    %c0_i32_1 = arith.constant 0 : i32
    return %c0_i32, %c0_i32_0 : i32, i32
  }
  func.func @transform_5(%arg0: i32) -> (i32, i32, i32) {
    %c0_i32 = arith.constant 0 : i32
    %c0_i32_0 = arith.constant 0 : i32
    %c0_i32_1 = arith.constant 0 : i32
    %c0_i32_2 = arith.constant 0 : i32
    return %c0_i32, %c0_i32_0, %c0_i32_1 : i32, i32, i32
  }
  func.func @transform_6(%arg0: i32) -> (i32, i32) {
    %c0_i32 = arith.constant 0 : i32
    %c0_i32_0 = arith.constant 0 : i32
    %c0_i32_1 = arith.constant 0 : i32
    return %c0_i32, %c0_i32_0 : i32, i32
  }
  func.func @transform_7(%arg0: i32) -> (i32, i32) {
    %c0_i32 = arith.constant 0 : i32
    %c0_i32_0 = arith.constant 0 : i32
    %c0_i32_1 = arith.constant 0 : i32
    return %c0_i32, %c0_i32_0 : i32, i32
  }
  func.func @transform_8(%arg0: i32) -> (i32, i32) {
    %c0_i32 = arith.constant 0 : i32
    %c0_i32_0 = arith.constant 0 : i32
    %c0_i32_1 = arith.constant 0 : i32
    return %c0_i32, %c0_i32_0 : i32, i32
  }
  func.func @transform_9(%arg0: i32) -> (i32, i32) {
    %c0_i32 = arith.constant 0 : i32
    %c0_i32_0 = arith.constant 0 : i32
    %c0_i32_1 = arith.constant 0 : i32
    return %c0_i32, %c0_i32_0 : i32, i32
  }
  func.func @transform_10(%arg0: i32) -> (i32, i32) {
    %c0_i32 = arith.constant 0 : i32
    %c0_i32_0 = arith.constant 0 : i32
    %c0_i32_1 = arith.constant 0 : i32
    return %c0_i32, %c0_i32_0 : i32, i32
  }
  func.func @transform_11(%arg0: i32) -> (i32, i32) {
    %c0_i32 = arith.constant 0 : i32
    %c0_i32_0 = arith.constant 0 : i32
    %c0_i32_1 = arith.constant 0 : i32
    return %c0_i32, %c0_i32_0 : i32, i32
  }
  func.func @transform_12(%arg0: i32) -> (i32, i32, i32) {
    %c0_i32 = arith.constant 0 : i32
    %c0_i32_0 = arith.constant 0 : i32
    %c0_i32_1 = arith.constant 0 : i32
    %c0_i32_2 = arith.constant 0 : i32
    return %c0_i32, %c0_i32_0, %c0_i32_1 : i32, i32, i32
  }
  func.func @transform_13(%arg0: i32) -> (i32, i32) {
    %c0_i32 = arith.constant 0 : i32
    %c0_i32_0 = arith.constant 0 : i32
    %c0_i32_1 = arith.constant 0 : i32
    return %c0_i32, %c0_i32_0 : i32, i32
  }
  func.func @transform_14(%arg0: i32) -> (i32, i32, i32) {
    %c0_i32 = arith.constant 0 : i32
    %c0_i32_0 = arith.constant 0 : i32
    %c0_i32_1 = arith.constant 0 : i32
    %c0_i32_2 = arith.constant 0 : i32
    return %c0_i32, %c0_i32_0, %c0_i32_1 : i32, i32, i32
  }
  func.func @transform_15(%arg0: i32) -> (i32, i32, i32) {
    %c0_i32 = arith.constant 0 : i32
    %c0_i32_0 = arith.constant 0 : i32
    %c0_i32_1 = arith.constant 0 : i32
    %c0_i32_2 = arith.constant 0 : i32
    return %c0_i32, %c0_i32_0, %c0_i32_1 : i32, i32, i32
  }
  func.func @transform_16(%arg0: i32) -> (i32, i32) {
    %c0_i32 = arith.constant 0 : i32
    %c0_i32_0 = arith.constant 0 : i32
    %c0_i32_1 = arith.constant 0 : i32
    return %c0_i32, %c0_i32_0 : i32, i32
  }
  func.func @transform_17(%arg0: i32) -> (i32, i32) {
    %c0_i32 = arith.constant 0 : i32
    %c0_i32_0 = arith.constant 0 : i32
    %c0_i32_1 = arith.constant 0 : i32
    return %c0_i32, %c0_i32_0 : i32, i32
  }
  func.func @transform_18(%arg0: i32) -> (i32, i32, i32) {
    %c0_i32 = arith.constant 0 : i32
    %c0_i32_0 = arith.constant 0 : i32
    %c0_i32_1 = arith.constant 0 : i32
    return %arg0, %c0_i32, %c0_i32_0 : i32, i32, i32
  }
}

</mosaic_0001>

<bundles_post_ra>
// kernel: amp_model_gain.1
= control target key start
LH: loop header
LB: loop body
LE: loop exit
PB: predicated region body
PF: predicated region fallthrough
CT: control target
= control target key end

     0   :  { %v2789_v0 = vmov 0   ;;  %v2790_v2 = vmov 2   ;;  %v2791_v3 = vmov 1   ;;  %vm67_vm0 = vcmask 326656   ;;  %s2794_s19 = smov 2   ;;  %s4094_s1 = inlined_call_operand.vmem [shape: f32[8,4], index: 1, kind: input, shape index: {}]   ;;  %s4095_s9 = inlined_call_operand.vmem [shape: f32[1,16], index: 9, kind: input, shape index: {}]   ;;  %s4096_s3 = inlined_call_operand.vmem [shape: f32[4,1,40], index: 3, kind: input, shape index: {}]   ;;  %s4097_s5 = inlined_call_operand.vmem [shape: f32[4,1,40], index: 5, kind: input, shape index: {}]   ;;  %s4098_s4 = inlined_call_operand.vmem [shape: f32[40,512], index: 4, kind: input, shape index: {}]   ;;  %s4099_s2 = inlined_call_operand.vmem [shape: f32[4,1,40], index: 2, kind: input, shape index: {}]   ;;  %s4100_s10 = inlined_call_operand.vmem [shape: f32[16,4], index: 10, kind: input, shape index: {}]   ;;  %s4101_s0 = inlined_call_operand.vmem [shape: f32[1024,8,1], index: 0, kind: input, shape index: {}]   ;;  %s4102_s8 = inlined_call_operand.vmem [shape: f32[3,16], index: 8, kind: input, shape index: {}]   ;;  %s4103_s11 = inlined_call_operand.vmem [shape: f32[1,4], index: 11, kind: input, shape index: {}]   ;;  %s4104_s6 = inlined_call_operand.vmem [shape: f32[1,40], index: 6, kind: input, shape index: {}]   ;;  %s4105_s13 = inlined_call_operand.vmem [shape: f32[8,384], index: 13, kind: input, shape index: {}]   ;;  %s4106_s14 = inlined_call_operand.vmem [shape: f32[3,1,8], index: 14, kind: input, shape index: {}]   ;;  %s4107_s15 = inlined_call_operand.vmem [shape: f32[3,1,8], index: 15, kind: input, shape index: {}]   ;;  %s4108_s7 = inlined_call_operand.<no memory space> [shape: f32[1,1], index: 7, kind: input, shape index: {}]   ;;  %s4109_s12 = inlined_call_operand.vmem [shape: f32[3,1,8], index: 12, kind: input, shape index: {}]   ;;  %s4110_s16 = inlined_call_operand.vmem [shape: f32[1,8], index: 16, kind: input, shape index: {}]   ;;  %s4111_s17 = inlined_call_operand.<no memory space> [shape: f32[1,1], index: 17, kind: input, shape index: {}]   ;;  %s4112_s18 = inlined_call_operand.vmem [shape: f32[1024,8,1], index: 18, kind: output, shape index: {}]  }
   0x1   :  { %4136 = sst [smem:[#allocation19_spill]] %s4094_s1  ;;  %2568 = vset.pattern.permute.xlu0 %v2789_v0  ;;  %2570 = vset.pattern.permute.xlu1 %v2790_v2  ;;  %v2910_v4 = vld [vmem:[%s4098_s4 + $0x88] sm:$0xff]  ;;  %v2921_v6 = vld [vmem:[%s4098_s4 + $0x80] sm:$0xff]  ;;  %v2932_v8 = vld [vmem:[%s4098_s4 + $0x90] sm:$0xff]  ;;  %v2792_v10 = vmov 0.0   ;;  %v4114_v23 = vmov 3  }
   0x2   :  { %4137 = sst [smem:[#allocation20_spill]] %s4095_s9  ;;  %2572 = vset.pattern.permute.xlu2 %v2789_v0  ;;  %312 = vmatpush.msra.mxu2 %v2910_v4  ;;  %v2916_v5 = vld [vmem:[%s4098_s4 + $0x68] sm:$0xff]  ;;  %v2937_v9 = vld [vmem:[%s4098_s4 + $0x60] sm:$0xff]  ;;  %68 = vst.msk [vmem:[#allocation2] sm:$0xff] %vm67_vm0, %v2792_v10  ;;  %v2946_v11 = vld [vmem:[%s4098_s4 + $0x70] sm:$0xff]  ;;  %vm72_vm1 = vcmask 7168  }
   0x3   :  { %4138 = sst [smem:[#allocation21_spill]] %s4096_s3  ;;  %v2926_v7 = vld [vmem:[%s4098_s4 + $0x48] sm:$0xff]  ;;  %292 = vmatpush.msra.mxu1 %v2921_v6  ;;  %332 = vmatpush.msra.mxu3 %v2932_v8  ;;  %69 = vst.msk [vmem:[#allocation3] sm:$0xff] %vm67_vm0, %v2792_v10  ;;  %v2972_v15 = vld [vmem:[%s4098_s4 + $0x40] sm:$0xff]  ;;  %v2977_v16 = vld [vmem:[%s4098_s4 + $0x50] sm:$0xff]  ;;  %s2795_s9 = smov 1  }
   0x4   :  { %s4139_s29 = sld [smem:[#allocation19_spill]]  ;;  %313 = vmatpush.msra.mxu2 %v2916_v5  ;;  %v2953_v12 = vld [vmem:[%s4098_s4 + $0x28] sm:$0xff]  ;;  %v2984_v17 = vld [vmem:[%s4098_s4 + $0x20] sm:$0xff]  ;;  %v2989_v18 = vld [vmem:[%s4098_s4 + $0x30] sm:$0xff]  ;;  %74 = vst.msk [vmem:[#allocation6] sm:$0xff] %vm72_vm1, %v2792_v10  ;;  %vm175_vm2 = vcmask 130048  }
   0x5   :  { %293 = vmatpush.msra.mxu1 %v2937_v9  ;;  %333 = vmatpush.msra.mxu3 %v2946_v11  ;;  %v2961_v13 = vld [vmem:[%s4098_s4 + $0x8] sm:$0xff]  ;;  %v2996_v19 = vld [vmem:[%s4098_s4] sm:$0xff]  ;;  %v3001_v20 = vld [vmem:[%s4098_s4 + $0x10] sm:$0xff]  ;;  %73 = vst.msk [vmem:[#allocation5] sm:$0xff] %vm72_vm1, %v2792_v10  ;;  %s4140_s21 = sld [smem:[#allocation20_spill]]  ;;  %vm70_vm3 = vcmask 64512  }
   0x6   :  { %314 = vmatpush.msra.mxu2 %v2926_v7  ;;  %v170_v21 = vld [vmem:[%s4100_s10 + $0x8] sm:$0xff]  ;;  %v169_v22 = vld [vmem:[%s4100_s10] sm:$0xff]  ;;  %v3019_v24 = vld [vmem:[%s4098_s4 + $0x98] sm:$0xff]  ;;  %s4141_s10 = sld [smem:[#allocation21_spill]]  ;;  %71 = vst.msk [vmem:[#allocation4] sm:$0xff] %vm70_vm3, %v2792_v10 }
   0x7   :  { %294 = vmatpush.msra.mxu1 %v2972_v15  ;;  %334 = vmatpush.msra.mxu3 %v2977_v16  ;;  %v3026_v25 = vld [vmem:[%s4098_s4 + $0x78] sm:$0xff]  ;;  %v3051_v30 = vld [vmem:[%s4101_s0] sm:$0xff]  ;;  %v3123_v10 = vld [vmem:[%s4105_s13 + $0x8] sm:$0xff] }
   0x8   :  { %315 = vmatpush.msra.mxu2 %v2953_v12  ;;  %193 = vmatpush.msra.mxu0 %v170_v21  ;;  %v3031_v26 = vld [vmem:[%s4098_s4 + $0x58] sm:$0xff]  ;;  %v142_v31 = vld [vmem:[%s4102_s8] sm:$0x7]  ;;  %v3128_v21 = vld [vmem:[%s4105_s13 + $0x10] sm:$0xff] }
   0x9   :  { %v2965_v14 = vld [vmem:[#allocation2] sm:$0xff]  ;;  %295 = vmatpush.msra.mxu1 %v2984_v17  ;;  %335 = vmatpush.msra.mxu3 %v2989_v18  ;;  %v3037_v27 = vld [vmem:[%s4098_s4 + $0x38] sm:$0xff]  ;;  %v147_v32 = vperm.slane %v142_v31, 0  ;;  %v153_v33 = vperm.slane %v142_v31, 1  ;;  %v160_v34 = vperm.slane %v142_v31, 2 }
   0xa   :  { %v75_v1 = vld [vmem:[%s4139_s29] sm:$0xff]  ;;  %316 = vmatpush.msra.mxu2 %v2961_v13  ;;  %194 = vmatpush.msra.mxu0 %v169_v22  ;;  %v3044_v28 = vld [vmem:[%s4098_s4 + $0x18] sm:$0xff] }
   0xb   :  { %144 = vperm.xlu0 %2568, %v75_v1   ;;  %157 = vperm.xlu1 %2570, %v75_v1   ;;  %v242_v37 = vld [vmem:[#allocation6] sm:$0xff] }
   0xc   :  { %2427 = vmatmul.msk.f32.vlgmr.msra.gmra.mxu2 %vm67_vm0, %v2965_v14  ;;  %296 = vmatpush.msra.mxu1 %v2996_v19  ;;  %v241_v41 = vld [vmem:[#allocation5] sm:$0xff]  ;;  %v2578_v43 = vld [vmem:[%s4140_s21] ss:$0 sm:$0xff]  ;;  %v2581_v48 = vld [vmem:[%s4141_s10 + $0x1] ss:$0 sm:$0xff] }
   0xd   :  { %336 = vmatpush.msra.mxu3 %v3001_v20  ;;  %2426 = vmatmul.msk.f32.vlgmr.msra.gmra.mxu1 %vm67_vm0, %v2965_v14  ;;  %v2579_v47 = vld [vmem:[%s4141_s10] ss:$0 sm:$0xff]  ;;  %v2582_v53 = vld [vmem:[%s4097_s5 + $0x1] ss:$0 sm:$0xff]  ;;  %v2583_v62 = vld [vmem:[%s4141_s10 + $0x2] ss:$0 sm:$0xff] }
   0xe   :  { %2428 = vmatmul.msk.f32.vlgmr.msra.gmra.mxu3 %vm67_vm0, %v2965_v14  ;;  %352 = vmatpush.msrb.mxu0 %v3019_v24  ;;  %v2580_v50 = vld [vmem:[%s4097_s5] ss:$0 sm:$0xff]  ;;  %v3098_v56 = vld [vmem:[%s4099_s2 + $0x1] ss:$0 sm:$0xff]  ;;  %v2584_v22 = vld [vmem:[%s4097_s5 + $0x2] ss:$0 sm:$0xff] }
   0xf   :  { %246 = vperm.xlu2 %2572, %v3051_v30   ;;  %v3087_v52 = vld [vmem:[%s4099_s2] ss:$0 sm:$0xff]  ;;  %467 = vmatpush.msrb.mxu2 %v3123_v10 }
  0x10   :  { %353 = vmatpush.msrb.mxu0 %v3026_v25  ;;  %487 = vmatpush.msrb.mxu3 %v3128_v21 }
  0x11   :  { %595 = vmatpush.msra.mxu2 %v2932_v8 }
  0x12   :  { %354 = vmatpush.msrb.mxu0 %v3031_v26  ;;  %615 = vmatpush.msra.mxu3 %v3019_v24 }
  0x13   :  { %2569 = vset.pattern.permute.xlu0 %v2791_v3  ;;  %2571 = vset.pattern.permute.xlu1 %v4114_v23 }
  0x14   :  { %150 = vperm.xlu0 %2569, %v75_v1   ;;  %102 = vperm.xlu1 %2571, %v75_v1  }
  0x15   :  { %355 = vmatpush.msrb.mxu0 %v3037_v27  ;;  %596 = vmatpush.msra.mxu2 %v2946_v11 }
  0x16   :  { %616 = vmatpush.msra.mxu3 %v3026_v25 }
  0x17   :  { %356 = vmatpush.msrb.mxu0 %v3044_v28  ;;  %394 = vrot.lane.b32.xlu2 %v241_v41, %s2795_s9 }
  0x18   :  { %597 = vmatpush.msra.mxu2 %v2977_v16  ;;  %617 = vmatpush.msra.mxu3 %v3031_v26 }
  0x1a   :  { %598 = vmatpush.msra.mxu2 %v2989_v18  ;;  %618 = vmatpush.msra.mxu3 %v3037_v27 }
  0x1c   :  { %2574 = vset.pattern.permute.xlu0 %v4114_v23  ;;  %2573 = vset.pattern.permute.xlu1 %v2789_v0 }
  0x1d   :  { %404 = vrot.lane.b32.xlu1 %v242_v37, %s2794_s19  ;;  %599 = vmatpush.msra.mxu2 %v3001_v20 }
  0x1e   :  { %619 = vmatpush.msra.mxu3 %v3044_v28 }
  0x69   :  { %v3093_v55 = vpop.permute.xlu2 %246 }
  0x6a   :  { %v249_v58 = vmul.f32 %v3087_v52, %v3093_v55  ;;  %v251_v60 = vmul.f32 %v3098_v56, %v3093_v55 }
  0x7d   :  { %v145_v29 = vpop.permute.xlu0 %144  ;;  %v158_v35 = vpop.permute.xlu1 %157 }
  0x7e   :  { %v148_v38 = vmul.f32 %v147_v32, %v145_v29  ;;  %v161_v40 = vmul.f32 %v160_v34, %v158_v35  ;;  %v3137_v32 = vld [vmem:[%s4099_s2 + $0x2] ss:$0 sm:$0xff] }
  0x7f   :  { %v253_v37 = vmul.f32 %v3137_v32, %v3093_v55 }
  0x86   :  { %v151_v36 = vpop.permute.xlu0 %150  ;;  %v3078_v49 = vpop.permute.xlu1 %102 }
  0x87   :  { %v154_v39 = vmul.f32 %v153_v33, %v151_v36  ;;  %v108_v51 = vmul.f32 %v2579_v47, %v3078_v49  ;;  %v116_v54 = vmul.f32 %v2581_v48, %v3078_v49  ;;  %v124_v29 = vmul.f32 %v2583_v62, %v3078_v49  ;;  %v3143_v33 = vld [vmem:[#allocation4] sm:$0xff]  ;;  %v3188_v47 = vld [vmem:[%s4099_s2 + $0x3] ss:$0 sm:$0xff]  ;;  %s2796_s2 = smov 127  }
  0x88   :  { %2432 = vmatmul.msk.f32.vlgmr.msrb.gmra.mxu2 %vm70_vm3, %v3143_v33  ;;  %2433 = vmatmul.msk.f32.vlgmr.msrb.gmra.mxu3 %vm70_vm3, %v3143_v33 }
  0x89   :  { %v155_v42 = vadd.f32 %v154_v39, %v148_v38  ;;  %v3100_v57 = vadd.f32 %v2580_v50, %v108_v51  ;;  %v3104_v59 = vadd.f32 %v2582_v53, %v116_v54  ;;  %v3151_v35 = vadd.f32 %v2584_v22, %v124_v29  ;;  %832 = vmatpush.msrb.mxu3 %v2921_v6  ;;  %v395_v50 = vpop.permute.xlu2 %394 }
  0x8a   :  { %v298_v63 = vpop.f32.mrf.mxu1  ;;  %747 = vmatpush.msrb.mxu2 %v3128_v21 }
  0x8b   :  { %v162_v44 = vadd.f32 %v161_v40, %v155_v42  ;;  %v250_v61 = vadd.f32 %v249_v58, %v3100_v57  ;;  %v252_v1 = vadd.f32 %v251_v60, %v3104_v59  ;;  %v254_v38 = vadd.f32 %v253_v37, %v3151_v35  ;;  %v2585_v40 = vld [vmem:[%s4141_s10 + $0x3] ss:$0 sm:$0xff]  ;;  %833 = vmatpush.msrb.mxu3 %v2937_v9 }
  0x8c   :  { %v255_v60 = vmul.f32 %v3188_v47, %v3093_v55 }
  0x8d   :  { %v167_v45 = vadd.f32 %v2578_v43, %v162_v44  ;;  %v361_v3 = vadd.f32 %v298_v63, %v250_v61  ;;  %v2590_v43 = vld [vmem:[%s4103_s11] ss:$0 sm:$0xff]  ;;  %834 = vmatpush.msrb.mxu3 %v2972_v15 }
  0x8f   :  { %2601 = vtanh.f32 %v167_v45  ;;  %v318_v2 = vpop.f32.mrf.mxu2  ;;  %v365_v34 = vmul.f32 0.5, %v361_v3  ;;  %v2586_v45 = vld [vmem:[%s4097_s5 + $0x3] ss:$0 sm:$0xff]  ;;  %835 = vmatpush.msrb.mxu3 %v2984_v17  ;;  %s2797_s5 = smov 126  }
  0x90   :  { %v362_v31 = vadd.f32 %v318_v2, %v252_v1  ;;  %v239_v1 = vld [vmem:[#allocation3] sm:$0xff] }
  0x91   :  { %2603 = vtanh.f32 %v365_v34  ;;  %v338_v39 = vpop.f32.mrf.mxu3  ;;  %836 = vmatpush.msrb.mxu3 %v2996_v19 }
  0x92   :  { %v369_v36 = vmul.f32 0.5, %v362_v31  ;;  %v363_v41 = vadd.f32 %v338_v39, %v254_v38 }
  0x94   :  { %2605 = vtanh.f32 %v369_v36  ;;  %v405_v36 = vpop.permute.xlu1 %404 }
  0x95   :  { %v2602_v46 = vpop.eup %2601  ;;  %2607 = vtanh.f32 %v363_v41  ;;  %v3213_v41 = vld [vmem:[%s4101_s0 + $0x8] sm:$0xff] }
  0x96   :  { %2425 = vmatmul.msk.f32.vlgmr.msra.gmra.mxu0 %vm175_vm2, %v2602_v46  ;;  %v132_v46 = vmul.f32 %v2585_v40, %v3078_v49 }
  0x97   :  { %555 = vmatpush.msra.mxu0 %v2921_v6  ;;  %v2604_v42 = vpop.eup %2603 }
  0x98   :  { %v367_v51 = vmul.f32 0.5, %v2604_v42  ;;  %v3194_v58 = vadd.f32 %v2586_v45, %v132_v46 }
  0x99   :  { %556 = vmatpush.msra.mxu0 %v2937_v9 }
  0x9a   :  { %v2606_v44 = vpop.eup %2605  ;;  %v368_v61 = vadd.f32 0.5, %v367_v51  ;;  %v256_v2 = vadd.f32 %v255_v60, %v3194_v58  ;;  %v23_v51 = vstv %s4108_s7  ;;  %s2798_s7 = smov 3  }
  0x9b   :  { %557 = vmatpush.msra.mxu0 %v2972_v15  ;;  %v371_v53 = vmul.f32 0.5, %v2606_v44  ;;  %v2608_v63 = vpop.eup %2607  ;;  %24 = vst [vmem:[#allocation7] sm:$0x1] %v23_v51 }
  0x9c   :  { %v379_v31 = vmul.f32 %v2608_v63, %v368_v61 }
  0x9d   :  { %558 = vmatpush.msra.mxu0 %v2984_v17  ;;  %v372_v62 = vadd.f32 0.5, %v371_v53 }
  0x9e   :  { %2429 = vmatmul.msk.f32.vlgmr.msrb.gmra.mxu0 %vm67_vm0, %v2965_v14  ;;  %v3118_v14 = vld [vmem:[%s4105_s13] sm:$0xff] }
  0x9f   :  { %559 = vmatpush.msra.mxu0 %v2996_v19  ;;  %447 = vmatpush.msrb.mxu1 %v3118_v14  ;;  %v378_v29 = vmul.f32 %v372_v62, %v239_v1 }
  0xa0   :  { %2431 = vmatmul.msk.f32.vlgmr.msrb.gmra.mxu1 %vm70_vm3, %v3143_v33 }
  0xa1   :  { %575 = vmatpush.msra.mxu1 %v2910_v4  ;;  %707 = vmatpush.msrb.mxu0 %v3118_v14  ;;  %v3206_v39 = vadd.f32 %v379_v31, %v378_v29 }
  0xa3   :  { %576 = vmatpush.msra.mxu1 %v2916_v5 }
  0xa5   :  { %577 = vmatpush.msra.mxu1 %v2926_v7 }
  0xa7   :  { %578 = vmatpush.msra.mxu1 %v2953_v12 }
  0xa9   :  { %579 = vmatpush.msra.mxu1 %v2961_v13 }
  0xab   :  { %727 = vmatpush.msrb.mxu1 %v3123_v10 }
 0x113   :  { %v196_v48 = vpop.f32.mrf.mxu0 }
 0x114   :  { %v3191_v54 = vadd.f32 %v2590_v43, %v196_v48  ;;  %v3218_v43 = vld [vmem:[%s4104_s6] ss:$0 sm:$0xff] }
 0x116   :  { %v397_v49 = vmul.f32 %v395_v50, %v3191_v54  ;;  %2609 = vtanh.f32 %v3191_v54 }
 0x118   :  { %399 = vrot.lane.b32.xlu0 %v397_v49, %s2796_s2 }
 0x11b   :  { %v358_v3 = vpop.f32.mrf.mxu0 }
 0x11c   :  { %v2610_v22 = vpop.eup %2609  ;;  %v364_v34 = vadd.f32 %v358_v3, %v256_v2  ;;  %v3255_v3 = vpop.f32.mrf.mxu2 }
 0x11d   :  { %v3203_v55 = vmul.f32 0.9, %v2610_v22  ;;  %v3247_v49 = vpop.f32.mrf.mxu1  ;;  %v3257_v22 = vpop.f32.mrf.mxu3 }
 0x11e   :  { %v374_v37 = vmul.f32 0.5, %v364_v34 }
 0x11f   :  { %4142 = vst [vmem:[#allocation9_spill] sm:$0xff] %v3203_v55  ;;  %v407_v38 = vmul.f32 %v405_v36, %v3203_v55 }
 0x120   :  { %2611 = vtanh.f32 %v374_v37 }
 0x121   :  { %409 = vrot.lane.b32.xlu1 %v407_v38, %s2797_s5  ;;  %2613 = vtanh.f32 %v3206_v39 }
 0x126   :  { %v2612_v40 = vpop.eup %2611 }
 0x127   :  { %v376_v42 = vmul.f32 0.5, %v2612_v40  ;;  %v2614_v45 = vpop.eup %2613 }
 0x129   :  { %v377_v44 = vadd.f32 0.5, %v376_v42  ;;  %530 = vperm.xlu1 %2573, %v3213_v41  }
 0x12b   :  { %v382_v46 = vmul.f32 %v2614_v45, %v377_v44 }
 0x12d   :  { %2434 = vmatmul.msk.f32.vlgmr.msra.gmra.mxu0 %vm67_vm0, %v382_v46  ;;  %2435 = vmatmul.msk.f32.vlgmr.msra.gmra.mxu1 %vm67_vm0, %v382_v46  ;;  %v383_v48 = vmul.f32 %v3218_v43, %v382_v46 }
 0x12e   :  { %2436 = vmatmul.msk.f32.vlgmr.msra.gmra.mxu2 %vm67_vm0, %v382_v46  ;;  %2437 = vmatmul.msk.f32.vlgmr.msra.gmra.mxu3 %vm67_vm0, %v382_v46 }
 0x12f   :  { %v384_v50 = vsel %vm67_vm0, %v383_v48, 0.0  ;;  %852 = vmatpush.msra.mxu0 %v2910_v4  ;;  %872 = vmatpush.msra.mxu1 %v2932_v8 }
 0x130   :  { %385 = vadd.xlane.f32.xlu2 %v384_v50  ;;  %892 = vmatpush.msra.mxu2 %v3019_v24 }
 0x131   :  { %853 = vmatpush.msra.mxu0 %v2916_v5  ;;  %873 = vmatpush.msra.mxu1 %v2946_v11 }
 0x132   :  { %893 = vmatpush.msra.mxu2 %v3026_v25  ;;  %2575 = vset.pattern.permute.xlu1 %v4114_v23 }
 0x133   :  { %854 = vmatpush.msra.mxu0 %v2926_v7  ;;  %874 = vmatpush.msra.mxu1 %v2977_v16 }
 0x134   :  { %894 = vmatpush.msra.mxu2 %v3031_v26  ;;  %984 = vmatpush.msra.mxu3 %v3118_v14  ;;  %v3249_v14 = vld [vmem:[#allocation7] ss:$0 sm:$0xff] }
 0x135   :  { %855 = vmatpush.msra.mxu0 %v2953_v12  ;;  %875 = vmatpush.msra.mxu1 %v2989_v18 }
 0x136   :  { %895 = vmatpush.msra.mxu2 %v3037_v27 }
 0x137   :  { %856 = vmatpush.msra.mxu0 %v2961_v13  ;;  %876 = vmatpush.msra.mxu1 %v3001_v20 }
 0x138   :  { %896 = vmatpush.msra.mxu2 %v3044_v28 }
 0x18a   :  { %v400_v31 = vpop.permute.xlu0 %399 }
 0x193   :  { %v410_v53 = vpop.permute.xlu1 %409 }
 0x19b   :  { %v531_v60 = vpop.permute.xlu1 %530 }
 0x19c   :  { %v533_v63 = vmul.f32 %v3087_v52, %v531_v60  ;;  %v535_v1 = vmul.f32 %v3098_v56, %v531_v60  ;;  %v539_v46 = vmul.f32 %v3188_v47, %v531_v60 }
 0x19e   :  { %v534_v34 = vadd.f32 %v533_v63, %v3100_v57  ;;  %v536_v36 = vadd.f32 %v535_v1, %v3104_v59 }
 0x1a3   :  { %v386_v61 = vpop.xlane.xlu2 %385 }
 0x1a4   :  { %v390_v62 = vadd.f32 %v3249_v14, %v386_v61  ;;  %v540_v61 = vadd.f32 %v539_v46, %v3194_v58 }
 0x1a6   :  { %v391_v2 = vadd.f32 %v390_v62, %v3051_v30  ;;  %v537_v30 = vmul.f32 %v3137_v32, %v531_v60 }
 0x1a8   :  { %v392_v29 = vmul.f32 %v391_v2, %v3191_v54  ;;  %654 = vrot.lane.b32.xlu1 %v391_v2, %s2795_s9  ;;  %v538_v51 = vadd.f32 %v537_v30, %v3151_v35 }
 0x1aa   :  { %v561_v37 = vpop.f32.mrf.mxu0  ;;  %v581_v38 = vpop.f32.mrf.mxu1  ;;  %v402_v40 = vadd.f32 %v400_v31, %v392_v29 }
 0x1ab   :  { %v624_v42 = vadd.f32 %v561_v37, %v534_v34  ;;  %v625_v44 = vadd.f32 %v581_v38, %v536_v36 }
 0x1ac   :  { %v412_v45 = vsub.f32 %v402_v40, %v410_v53 }
 0x1ad   :  { %v628_v48 = vmul.f32 0.5, %v624_v42  ;;  %v632_v50 = vmul.f32 0.5, %v625_v44 }
 0x1ae   :  { %414 = vrot.lane.b32.xlu0 %v412_v45, %s2798_s7 }
 0x1af   :  { %2615 = vtanh.f32 %v628_v48 }
 0x1b0   :  { %2617 = vtanh.f32 %v632_v50 }
 0x1b1   :  { %v601_v62 = vpop.f32.mrf.mxu2  ;;  %v621_v63 = vpop.f32.mrf.mxu3 }
 0x1b2   :  { %v626_v1 = vadd.f32 %v601_v62, %v538_v51  ;;  %v627_v2 = vadd.f32 %v621_v63, %v540_v61  ;;  %v205_v62 = vld [vmem:[%s4106_s14 + $0x1] sm:$0x1] }
 0x1b3   :  { %v208_v63 = vld [vmem:[%s4107_s15 + $0x1] sm:$0x1] }
 0x1b4   :  { %2619 = vtanh.f32 %v626_v1  ;;  %v637_v53 = vmul.f32 0.5, %v627_v2  ;;  %v223_v2 = vadd.f32 %v208_v63, %v205_v62 }
 0x1b5   :  { %v2616_v29 = vpop.eup %2615 }
 0x1b6   :  { %v2618_v31 = vpop.eup %2617  ;;  %v630_v60 = vmul.f32 0.5, %v2616_v29  ;;  %2621 = vtanh.f32 %v637_v53  ;;  %v3307_v53 = vld [vmem:[%s4109_s12] ss:$0 sm:$0xff]  ;;  %v3312_v29 = vld [vmem:[%s4109_s12 + $0x1] ss:$0 sm:$0xff] }
 0x1b7   :  { %v634_v34 = vmul.f32 0.5, %v2618_v31  ;;  %4143 = vst [vmem:[#allocation10_spill] sm:$0xff] %v3307_v53 }
 0x1b8   :  { %v631_v36 = vadd.f32 0.5, %v630_v60  ;;  %4144 = vst [vmem:[#allocation11_spill] sm:$0xff] %v3312_v29 }
 0x1b9   :  { %v635_v37 = vadd.f32 0.5, %v634_v34 }
 0x1ba   :  { %v2620_v38 = vpop.eup %2619 }
 0x1bb   :  { %v641_v40 = vmul.f32 %v635_v37, %v3206_v39  ;;  %v642_v42 = vmul.f32 %v2620_v38, %v631_v36  ;;  %v3316_v36 = vperm.slane %v223_v2, 0 }
 0x1bc   :  { %v2622_v44 = vpop.eup %2621 }
 0x1bd   :  { %v3269_v45 = vadd.f32 %v642_v42, %v641_v40  ;;  %v639_v30 = vmul.f32 0.5, %v2622_v44  ;;  %4146 = vst [vmem:[#allocation13_spill] sm:$0xff] %v3316_v36 }
 0x1bf   :  { %2623 = vtanh.f32 %v3269_v45  ;;  %v640_v46 = vadd.f32 0.5, %v639_v30 }
 0x1c5   :  { %v2624_v48 = vpop.eup %2623 }
 0x1c6   :  { %v3272_v50 = vmul.f32 %v2624_v48, %v640_v46 }
 0x1c8   :  { %2442 = vmatmul.msk.f32.vlgmr.msrb.gmra.mxu3 %vm67_vm0, %v3272_v50 }
 0x1c9   :  { %1129 = vmatpush.msrb.mxu3 %v2910_v4 }
 0x1cb   :  { %1130 = vmatpush.msrb.mxu3 %v2916_v5  ;;  %v646_v5 = vmul.f32 %v3218_v43, %v3272_v50 }
 0x1cd   :  { %1131 = vmatpush.msrb.mxu3 %v2926_v7  ;;  %v647_v7 = vsel %vm67_vm0, %v646_v5, 0.0 }
 0x1cf   :  { %1132 = vmatpush.msrb.mxu3 %v2953_v12  ;;  %v204_v12 = vld [vmem:[%s4106_s14] sm:$0x1] }
 0x1d1   :  { %1133 = vmatpush.msrb.mxu3 %v2961_v13  ;;  %v207_v13 = vld [vmem:[%s4107_s15] sm:$0x1] }
 0x1d2   :  { %v219_v1 = vadd.f32 %v207_v13, %v204_v12 }
 0x1d4   :  { %v3314_v31 = vperm.slane %v219_v1, 0 }
 0x1d6   :  { %4145 = vst [vmem:[#allocation12_spill] sm:$0xff] %v3314_v31 }
 0x21a   :  { %v655_v61 = vpop.permute.xlu1 %654 }
 0x21b   :  { %v657_v4 = vmul.f32 %v655_v61, %v3191_v54  ;;  %v3329_v61 = vld [vmem:[%s4109_s12 + $0x2] ss:$0 sm:$0xff] }
 0x21c   :  { %4147 = vst [vmem:[#allocation14_spill] sm:$0xff] %v3329_v61 }
 0x220   :  { %v415_v39 = vpop.permute.xlu0 %414 }
 0x221   :  { %v3282_v51 = vmul.f32 %v415_v39, %v3191_v54 }
 0x223   :  { %663 = vrot.lane.b32.xlu1 %v3282_v51, %s2796_s2  ;;  %422 = vperm.xlu0 %2574, %v3282_v51  }
 0x22b   :  { %659 = vrot.lane.b32.xlu1 %v657_v4, %s2796_s2  ;;  %v3339_v4 = vld [vmem:[%s4106_s14 + $0x2] ss:$0 sm:$0xff] }
 0x24d   :  { %648 = vadd.xlane.f32.xlu0 %v647_v7 }
 0x295   :  { %v664_v60 = vpop.permute.xlu1 %663  ;;  %v423_v34 = vpop.permute.xlu0 %422 }
 0x296   :  { %v666_v37 = vmul.f32 %v664_v60, %v3203_v55  ;;  %v492_v38 = vmul.f32 %v3307_v53, %v423_v34  ;;  %v499_v40 = vmul.f32 %v3312_v29, %v423_v34  ;;  %v506_v7 = vmul.f32 %v3329_v61, %v423_v34 }
 0x298   :  { %v493_v42 = vadd.f32 %v492_v38, %v3247_v49  ;;  %v500_v44 = vadd.f32 %v499_v40, %v3255_v3  ;;  %668 = vrot.lane.b32.xlu2 %v666_v37, %s2797_s5  ;;  %v3334_v49 = vld [vmem:[%s4107_s15 + $0x2] ss:$0 sm:$0xff]  ;;  %v507_v63 = vadd.f32 %v3339_v4, %v506_v7 }
 0x299   :  { %4148 = vst [vmem:[#allocation15_spill] sm:$0xff] %v3334_v49  ;;  %v508_v13 = vadd.f32 %v3334_v49, %v3257_v22 }
 0x29a   :  { %v494_v30 = vadd.f32 %v493_v42, %v3314_v31  ;;  %v501_v46 = vadd.f32 %v500_v44, %v3316_v36 }
 0x29c   :  { %v495_v48 = vmul.f32 0.5, %v494_v30  ;;  %v502_v39 = vmul.f32 0.5, %v501_v46 }
 0x29e   :  { %2625 = vtanh.f32 %v495_v48 }
 0x29f   :  { %2627 = vtanh.f32 %v502_v39 }
 0x2a4   :  { %v2626_v3 = vpop.eup %2625 }
 0x2a5   :  { %v497_v5 = vmul.f32 0.5, %v2626_v3  ;;  %v2628_v12 = vpop.eup %2627 }
 0x2a6   :  { %v504_v2 = vmul.f32 0.5, %v2628_v12 }
 0x2a7   :  { %v498_v62 = vadd.f32 0.5, %v497_v5 }
 0x2a8   :  { %v505_v37 = vadd.f32 0.5, %v504_v2  ;;  %v838_v2 = vpop.f32.mrf.mxu3 }
 0x2a9   :  { %v509_v1 = vmul.f32 %v508_v13, %v498_v62 }
 0x2aa   :  { %v512_v38 = vsub.f32 1.0, %v505_v37  ;;  %v514_v42 = vmul.f32 %v505_v37, %v3143_v33 }
 0x2ab   :  { %v510_v60 = vadd.f32 %v509_v1, %v507_v63 }
 0x2ad   :  { %2629 = vtanh.f32 %v510_v60 }
 0x2b3   :  { %v2630_v40 = vpop.eup %2629 }
 0x2b4   :  { %v513_v44 = vmul.f32 %v2630_v40, %v512_v38 }
 0x2b6   :  { %v3346_v30 = vadd.f32 %v514_v42, %v513_v44 }
 0x2b8   :  { %2439 = vmatmul.msk.f32.vlgmr.msrb.gmra.mxu0 %vm70_vm3, %v3346_v30  ;;  %2440 = vmatmul.msk.f32.vlgmr.msrb.gmra.mxu1 %vm70_vm3, %v3346_v30 }
 0x2b9   :  { %2441 = vmatmul.msk.f32.vlgmr.msrb.gmra.mxu2 %vm70_vm3, %v3346_v30  ;;  %1004 = vmatpush.msrb.mxu0 %v3123_v10 }
 0x2ba   :  { %1024 = vmatpush.msrb.mxu1 %v3128_v21  ;;  %1109 = vmatpush.msrb.mxu2 %v2921_v6 }
 0x2bc   :  { %1110 = vmatpush.msrb.mxu2 %v2937_v9  ;;  %v660_v9 = vpop.permute.xlu1 %659 }
 0x2be   :  { %1111 = vmatpush.msrb.mxu2 %v2972_v15 }
 0x2c0   :  { %2443 = vmatmul.msk.f32.vlgmr.msra.gmra.mxu0 %vm67_vm0, %v3272_v50  ;;  %2444 = vmatmul.msk.f32.vlgmr.msra.gmra.mxu1 %vm67_vm0, %v3272_v50  ;;  %v649_v33 = vpop.xlane.xlu0 %648 }
 0x2c1   :  { %2445 = vmatmul.msk.f32.vlgmr.msra.gmra.mxu2 %vm67_vm0, %v3272_v50  ;;  %v650_v10 = vadd.f32 %v3249_v14, %v649_v33  ;;  %1149 = vmatpush.msra.mxu0 %v2932_v8 }
 0x2c2   :  { %1169 = vmatpush.msra.mxu1 %v3019_v24  ;;  %1112 = vmatpush.msrb.mxu2 %v2984_v17 }
 0x2c3   :  { %v651_v6 = vadd.f32 %v3213_v41, %v650_v10  ;;  %1150 = vmatpush.msra.mxu0 %v2946_v11 }
 0x2c4   :  { %1170 = vmatpush.msra.mxu1 %v3026_v25  ;;  %1113 = vmatpush.msrb.mxu2 %v2996_v19  ;;  %v3400_v25 = vld [vmem:[%s4101_s0 + $0x18] sm:$0xff] }
 0x2c5   :  { %931 = vrot.lane.b32.xlu2 %v651_v6, %s2795_s9  ;;  %1151 = vmatpush.msra.mxu0 %v2977_v16  ;;  %v652_v8 = vmul.f32 %v651_v6, %v3191_v54 }
 0x2c6   :  { %1171 = vmatpush.msra.mxu1 %v3031_v26 }
 0x2c7   :  { %1152 = vmatpush.msra.mxu0 %v2989_v18  ;;  %v662_v11 = vadd.f32 %v660_v9, %v652_v8  ;;  %v3389_v18 = vld [vmem:[%s4101_s0 + $0x10] sm:$0xff] }
 0x2c8   :  { %1172 = vmatpush.msra.mxu1 %v3037_v27 }
 0x2c9   :  { %1153 = vmatpush.msra.mxu0 %v3001_v20 }
 0x2ca   :  { %1173 = vmatpush.msra.mxu1 %v3044_v28 }
 0x2f2   :  { %v669_v15 = vpop.permute.xlu2 %668 }
 0x2f3   :  { %v671_v17 = vsub.f32 %v662_v11, %v669_v15 }
 0x2f5   :  { %673 = vrot.lane.b32.xlu1 %v671_v17, %s2798_s7 }
 0x31f   :  { %v932_v20 = vpop.permute.xlu2 %931 }
 0x320   :  { %v934_v24 = vmul.f32 %v932_v20, %v3191_v54 }
 0x335   :  { %v709_v21 = vpop.f32.mrf.mxu0  ;;  %v729_v41 = vpop.f32.mrf.mxu1 }
 0x33c   :  { %v749_v48 = vpop.f32.mrf.mxu2 }
 0x33d   :  { %v858_v60 = vpop.f32.mrf.mxu0  ;;  %v878_v33 = vpop.f32.mrf.mxu1  ;;  %v768_v11 = vadd.f32 %v3334_v49, %v749_v48 }
 0x344   :  { %v898_v15 = vpop.f32.mrf.mxu2 }
 0x367   :  { %v674_v19 = vpop.permute.xlu1 %673 }
 0x368   :  { %v3383_v16 = vmul.f32 %v674_v19, %v3191_v54 }
 0x36a   :  { %683 = vperm.xlu1 %2575, %v3383_v16  }
 0x372   :  { %2576 = vset.pattern.permute.xlu1 %v2789_v0 }
 0x373   :  { %787 = vperm.xlu1 %2576, %v3389_v18  }
 0x37b   :  { %940 = vrot.lane.b32.xlu1 %v3383_v16, %s2796_s2 }
 0x383   :  { %936 = vrot.lane.b32.xlu1 %v934_v24, %s2796_s2 }
 0x38b   :  { %1064 = vperm.xlu1 %2576, %v3400_v25  }
 0x3dc   :  { %v684_v26 = vpop.permute.xlu1 %683 }
 0x3dd   :  { %v752_v27 = vmul.f32 %v3307_v53, %v684_v26  ;;  %v759_v28 = vmul.f32 %v3312_v29, %v684_v26  ;;  %v766_v6 = vmul.f32 %v3329_v61, %v684_v26 }
 0x3df   :  { %v753_v22 = vadd.f32 %v752_v27, %v709_v21  ;;  %v760_v50 = vadd.f32 %v759_v28, %v729_v41  ;;  %v767_v21 = vadd.f32 %v3339_v4, %v766_v6 }
 0x3e1   :  { %v754_v34 = vadd.f32 %v753_v22, %v3314_v31  ;;  %v761_v46 = vadd.f32 %v760_v50, %v3316_v36 }
 0x3e3   :  { %v755_v39 = vmul.f32 0.5, %v754_v34  ;;  %v762_v3 = vmul.f32 0.5, %v761_v46 }
 0x3e5   :  { %2631 = vtanh.f32 %v755_v39  ;;  %v788_v5 = vpop.permute.xlu1 %787 }
 0x3e6   :  { %v790_v7 = vmul.f32 %v3087_v52, %v788_v5  ;;  %v792_v12 = vmul.f32 %v3098_v56, %v788_v5  ;;  %v794_v13 = vmul.f32 %v3137_v32, %v788_v5  ;;  %v796_v62 = vmul.f32 %v3188_v47, %v788_v5 }
 0x3e7   :  { %2633 = vtanh.f32 %v762_v3 }
 0x3e8   :  { %v791_v63 = vadd.f32 %v790_v7, %v3100_v57  ;;  %v793_v1 = vadd.f32 %v792_v12, %v3104_v59  ;;  %v795_v37 = vadd.f32 %v794_v13, %v3151_v35  ;;  %v797_v38 = vadd.f32 %v796_v62, %v3194_v58 }
 0x3ea   :  { %v901_v40 = vadd.f32 %v838_v2, %v791_v63  ;;  %v902_v42 = vadd.f32 %v858_v60, %v793_v1  ;;  %v903_v17 = vadd.f32 %v878_v33, %v795_v37  ;;  %v904_v27 = vadd.f32 %v898_v15, %v797_v38 }
 0x3eb   :  { %v2632_v44 = vpop.eup %2631 }
 0x3ec   :  { %v757_v10 = vmul.f32 0.5, %v2632_v44  ;;  %v905_v8 = vmul.f32 0.5, %v901_v40  ;;  %v909_v9 = vmul.f32 0.5, %v902_v42  ;;  %v914_v50 = vmul.f32 0.5, %v904_v27 }
 0x3ed   :  { %v941_v19 = vpop.permute.xlu1 %940  ;;  %v2634_v20 = vpop.eup %2633 }
 0x3ee   :  { %v758_v24 = vadd.f32 0.5, %v757_v10  ;;  %2635 = vtanh.f32 %v905_v8  ;;  %v943_v28 = vmul.f32 %v941_v19, %v3203_v55  ;;  %v764_v26 = vmul.f32 0.5, %v2634_v20 }
 0x3ef   :  { %2637 = vtanh.f32 %v909_v9 }
 0x3f0   :  { %v769_v41 = vmul.f32 %v768_v11, %v758_v24  ;;  %945 = vrot.lane.b32.xlu0 %v943_v28, %s2797_s5  ;;  %2639 = vtanh.f32 %v903_v17  ;;  %v765_v48 = vadd.f32 0.5, %v764_v26 }
 0x3f2   :  { %v770_v22 = vadd.f32 %v769_v41, %v767_v21  ;;  %v772_v13 = vsub.f32 1.0, %v765_v48  ;;  %v774_v2 = vmul.f32 %v765_v48, %v3346_v30 }
 0x3f4   :  { %v2636_v34 = vpop.eup %2635  ;;  %2641 = vtanh.f32 %v770_v22 }
 0x3f5   :  { %v2638_v46 = vpop.eup %2637  ;;  %v907_v39 = vmul.f32 0.5, %v2636_v34  ;;  %2643 = vtanh.f32 %v914_v50  ;;  %v937_v8 = vpop.permute.xlu1 %936 }
 0x3f6   :  { %v911_v3 = vmul.f32 0.5, %v2638_v46  ;;  %v2640_v7 = vpop.eup %2639 }
 0x3f7   :  { %v908_v5 = vadd.f32 0.5, %v907_v39 }
 0x3f8   :  { %v912_v12 = vadd.f32 0.5, %v911_v3 }
 0x3f9   :  { %v919_v62 = vmul.f32 %v2640_v7, %v908_v5 }
 0x3fa   :  { %v2642_v63 = vpop.eup %2641  ;;  %v918_v1 = vmul.f32 %v912_v12, %v3269_v45 }
 0x3fb   :  { %v773_v60 = vmul.f32 %v2642_v63, %v772_v13  ;;  %v2644_v37 = vpop.eup %2643 }
 0x3fc   :  { %v920_v38 = vadd.f32 %v919_v62, %v918_v1  ;;  %v916_v42 = vmul.f32 0.5, %v2644_v37 }
 0x3fd   :  { %v3422_v40 = vadd.f32 %v774_v2, %v773_v60  ;;  %v1065_v17 = vpop.permute.xlu1 %1064 }
 0x3fe   :  { %2645 = vtanh.f32 %v920_v38  ;;  %v917_v44 = vadd.f32 0.5, %v916_v42  ;;  %v1067_v41 = vmul.f32 %v3087_v52, %v1065_v17  ;;  %v1069_v26 = vmul.f32 %v3098_v56, %v1065_v17 }
 0x3ff   :  { %2448 = vmatmul.msk.f32.vlgmr.msra.gmra.mxu3 %vm70_vm3, %v3422_v40  ;;  %2449 = vmatmul.msk.f32.vlgmr.msrb.gmra.mxu0 %vm70_vm3, %v3422_v40  ;;  %v1073_v50 = vmul.f32 %v3188_v47, %v1065_v17 }
 0x400   :  { %2450 = vmatmul.msk.f32.vlgmr.msrb.gmra.mxu1 %vm70_vm3, %v3422_v40  ;;  %v1068_v34 = vadd.f32 %v1067_v41, %v3100_v57  ;;  %v1070_v46 = vadd.f32 %v1069_v26, %v3104_v59 }
 0x401   :  { %v1074_v62 = vadd.f32 %v1073_v50, %v3194_v58 }
 0x404   :  { %v2646_v45 = vpop.eup %2645 }
 0x405   :  { %v922_v33 = vmul.f32 %v2646_v45, %v917_v44 }
 0x407   :  { %2451 = vmatmul.msk.f32.vlgmr.msrb.gmra.mxu2 %vm67_vm0, %v922_v33  ;;  %2452 = vmatmul.msk.f32.vlgmr.msrb.gmra.mxu3 %vm67_vm0, %v922_v33  ;;  %v923_v10 = vmul.f32 %v3218_v43, %v922_v33 }
 0x408   :  { %2453 = vmatmul.msk.f32.vlgmr.msra.gmra.mxu0 %vm67_vm0, %v922_v33  ;;  %2454 = vmatmul.msk.f32.vlgmr.msra.gmra.mxu1 %vm67_vm0, %v922_v33 }
 0x409   :  { %v924_v6 = vsel %vm67_vm0, %v923_v10, 0.0 }
 0x40a   :  { %925 = vadd.xlane.f32.xlu2 %v924_v6 }
 0x462   :  { %v946_v21 = vpop.permute.xlu0 %945 }
 0x47c   :  { %v3438_v19 = vpop.f32.mrf.mxu0 }
 0x47d   :  { %v926_v9 = vpop.xlane.xlu2 %925  ;;  %v3440_v20 = vpop.f32.mrf.mxu1 }
 0x47e   :  { %v927_v11 = vadd.f32 %v3249_v14, %v926_v9 }
 0x480   :  { %v928_v15 = vadd.f32 %v3389_v18, %v927_v11  ;;  %v1071_v18 = vmul.f32 %v3137_v32, %v1065_v17 }
 0x482   :  { %v929_v24 = vmul.f32 %v928_v15, %v3191_v54  ;;  %1208 = vrot.lane.b32.xlu0 %v928_v15, %s2795_s9  ;;  %v3444_v27 = vpop.f32.mrf.mxu3  ;;  %v1072_v13 = vadd.f32 %v1071_v18, %v3151_v35  ;;  %s2799_s9 = smov 125  }
 0x484   :  { %v939_v28 = vadd.f32 %v937_v8, %v929_v24 }
 0x485   :  { %v1155_v7 = vpop.f32.mrf.mxu0  ;;  %v1175_v12 = vpop.f32.mrf.mxu1 }
 0x486   :  { %v948_v22 = vsub.f32 %v939_v28, %v946_v21  ;;  %v1180_v2 = vadd.f32 %v1155_v7, %v1072_v13  ;;  %v1181_v60 = vadd.f32 %v1175_v12, %v1074_v62 }
 0x488   :  { %950 = vrot.lane.b32.xlu1 %v948_v22, %s2798_s7  ;;  %v1191_v37 = vmul.f32 0.5, %v1181_v60 }
 0x48a   :  { %v1115_v48 = vpop.f32.mrf.mxu2  ;;  %v1135_v39 = vpop.f32.mrf.mxu3 }
 0x48b   :  { %v1178_v3 = vadd.f32 %v1115_v48, %v1068_v34  ;;  %v1179_v5 = vadd.f32 %v1135_v39, %v1070_v46  ;;  %v3473_v46 = vld [vmem:[%s4110_s16] ss:$0 sm:$0xff] }
 0x48c   :  { %4149 = vst [vmem:[#allocation16_spill] sm:$0xff] %v3473_v46  ;;  %v516_v48 = vmul.f32 %v3473_v46, %v3346_v30 }
 0x48d   :  { %v1182_v63 = vmul.f32 0.5, %v1178_v3  ;;  %v1186_v1 = vmul.f32 0.5, %v1179_v5  ;;  %v776_v3 = vmul.f32 %v3473_v46, %v3422_v40 }
 0x48e   :  { %v517_v39 = vsel %vm70_vm3, %v516_v48, 0.0 }
 0x48f   :  { %2647 = vtanh.f32 %v1182_v63  ;;  %v25_v63 = vstv %s4111_s17 }
 0x490   :  { %2649 = vtanh.f32 %v1186_v1  ;;  %26 = vst [vmem:[#allocation8] sm:$0x1] %v25_v63 }
 0x491   :  { %2651 = vtanh.f32 %v1180_v2 }
 0x492   :  { %2653 = vtanh.f32 %v1191_v37 }
 0x495   :  { %v2648_v42 = vpop.eup %2647 }
 0x496   :  { %v2650_v44 = vpop.eup %2649  ;;  %v1184_v45 = vmul.f32 0.5, %v2648_v42 }
 0x497   :  { %v1188_v33 = vmul.f32 0.5, %v2650_v44  ;;  %v2652_v6 = vpop.eup %2651 }
 0x498   :  { %v1185_v10 = vadd.f32 0.5, %v1184_v45  ;;  %v2654_v15 = vpop.eup %2653  ;;  %v1045_v45 = vadd.f32 %v3334_v49, %v3440_v20 }
 0x499   :  { %v1189_v8 = vadd.f32 0.5, %v1188_v33  ;;  %v1193_v24 = vmul.f32 0.5, %v2654_v15 }
 0x49a   :  { %v1196_v9 = vmul.f32 %v2652_v6, %v1185_v10 }
 0x49b   :  { %v1195_v11 = vmul.f32 %v1189_v8, %v920_v38  ;;  %v1194_v28 = vadd.f32 0.5, %v1193_v24 }
 0x49d   :  { %v3455_v17 = vadd.f32 %v1196_v9, %v1195_v11  }
 0x49f   :  { %2655 = vtanh.f32 %v3455_v17 }
 0x4a5   :  { %v2656_v21 = vpop.eup %2655 }
 0x4a6   :  { %v3458_v41 = vmul.f32 %v2656_v21, %v1194_v28  }
 0x4a8   :  { %v1200_v26 = vmul.f32 %v3218_v43, %v3458_v41 }
 0x4aa   :  { %v1201_v22 = vsel %vm67_vm0, %v1200_v26, 0.0 }
 0x4ab   :  { %1202 = vadd.xlane.f32.xlu2 %v1201_v22 }
 0x4f4   :  { %v1209_v38 = vpop.permute.xlu0 %1208 }
 0x4f5   :  { %v1211_v34 = vmul.f32 %v1209_v38, %v3191_v54 }
 0x4fa   :  { %v951_v18 = vpop.permute.xlu1 %950 }
 0x4fb   :  { %v953_v50 = vmul.f32 %v951_v18, %v3191_v54  ;;  %v3502_v18 = vld [vmem:[#allocation8] ss:$0 sm:$0xff] }
 0x4fc   :  { %4150 = vst [vmem:[#allocation17_spill] sm:$0xff] %v3502_v18 }
 0x4fd   :  { %960 = vperm.xlu0 %2574, %v953_v50   ;;  %1217 = vrot.lane.b32.xlu1 %v953_v50, %s2796_s2 }
 0x505   :  { %1213 = vrot.lane.b32.xlu0 %v1211_v34, %s2796_s2 }
 0x506   :  { %2577 = vset.pattern.permute.xlu0 %v2789_v0  ;;  %v777_v0 = vsel %vm70_vm3, %v776_v3, 0.0 }
 0x50d   :  { %524 = vrot.lane.b32.xlu0 %v3282_v51, %s2799_s9 }
 0x527   :  { %518 = vadd.xlane.f32.xlu1 %v517_v39 }
 0x537   :  { %778 = vadd.xlane.f32.xlu0 %v777_v0 }
 0x56f   :  { %v961_v5 = vpop.permute.xlu0 %960  ;;  %v1218_v7 = vpop.permute.xlu1 %1217 }
 0x570   :  { %v1029_v51 = vmul.f32 %v3307_v53, %v961_v5  ;;  %v1036_v12 = vmul.f32 %v3312_v29, %v961_v5  ;;  %v1220_v13 = vmul.f32 %v1218_v7, %v3203_v55  ;;  %v1043_v42 = vmul.f32 %v3329_v61, %v961_v5 }
 0x572   :  { %v1030_v62 = vadd.f32 %v1029_v51, %v3444_v27  ;;  %v1037_v30 = vadd.f32 %v1036_v12, %v3438_v19  ;;  %1222 = vrot.lane.b32.xlu2 %v1220_v13, %s2797_s5  ;;  %v1044_v10 = vadd.f32 %v3339_v4, %v1043_v42 }
 0x574   :  { %v1031_v1 = vadd.f32 %v1030_v62, %v3314_v31  ;;  %v1038_v2 = vadd.f32 %v1037_v30, %v3316_v36 }
 0x576   :  { %v1032_v60 = vmul.f32 0.5, %v1031_v1  ;;  %v1039_v37 = vmul.f32 0.5, %v1038_v2 }
 0x577   :  { %v1214_v26 = vpop.permute.xlu0 %1213 }
 0x578   :  { %2657 = vtanh.f32 %v1032_v60 }
 0x579   :  { %2659 = vtanh.f32 %v1039_v37 }
 0x57a   :  { %781 = vrot.lane.b32.xlu2 %v3383_v16, %s2799_s9 }
 0x57e   :  { %v2658_v27 = vpop.eup %2657 }
 0x57f   :  { %v1034_v19 = vmul.f32 0.5, %v2658_v27  ;;  %v2660_v44 = vpop.eup %2659  ;;  %v525_v34 = vpop.permute.xlu0 %524 }
 0x580   :  { %v1041_v8 = vmul.f32 0.5, %v2660_v44 }
 0x581   :  { %v1035_v33 = vadd.f32 0.5, %v1034_v19 }
 0x582   :  { %1058 = vrot.lane.b32.xlu2 %v953_v50, %s2799_s9  ;;  %v1042_v11 = vadd.f32 0.5, %v1041_v8 }
 0x583   :  { %v1046_v6 = vmul.f32 %v1045_v45, %v1035_v33 }
 0x584   :  { %v1049_v16 = vsub.f32 1.0, %v1042_v11  ;;  %v1051_v28 = vmul.f32 %v1042_v11, %v3422_v40  ;;  %v1203_v40 = vpop.xlane.xlu2 %1202 }
 0x585   :  { %v1047_v9 = vadd.f32 %v1046_v6, %v1044_v10  ;;  %v1204_v39 = vadd.f32 %v3249_v14, %v1203_v40 }
 0x587   :  { %2661 = vtanh.f32 %v1047_v9  ;;  %v1205_v3 = vadd.f32 %v3400_v25, %v1204_v39  }
 0x589   :  { %v1206_v0 = vmul.f32 %v1205_v3, %v3191_v54 }
 0x58b   :  { %v1216_v5 = vadd.f32 %v1214_v26, %v1206_v0 }
 0x58d   :  { %v2662_v15 = vpop.eup %2661 }
 0x58e   :  { %v1050_v24 = vmul.f32 %v2662_v15, %v1049_v16 }
 0x590   :  { %v1052_v21 = vadd.f32 %v1051_v28, %v1050_v24  }
 0x592   :  { %v1053_v22 = vmul.f32 %v3473_v46, %v1052_v21 }
 0x594   :  { %v1054_v20 = vsel %vm70_vm3, %v1053_v22, 0.0 }
 0x595   :  { %1055 = vadd.xlane.f32.xlu1 %v1054_v20 }
 0x59a   :  { %v519_v50 = vpop.xlane.xlu1 %518 }
 0x59b   :  { %v523_v38 = vadd.f32 %v3502_v18, %v519_v50 }
 0x59d   :  { %v527_v48 = vadd.f32 %v525_v34, %v523_v38 }
 0x59f   :  { %678 = vst.msk [vmem:[%s4112_s18] sm:$0xff] %vm72_vm1, %v527_v48 }
 0x5aa   :  { %v779_v12 = vpop.xlane.xlu0 %778 }
 0x5ab   :  { %v780_v13 = vadd.f32 %v3502_v18, %v779_v12 }
 0x5cc   :  { %v1223_v7 = vpop.permute.xlu2 %1222 }
 0x5cd   :  { %v1225_v51 = vsub.f32 %v1216_v5, %v1223_v7 }
 0x5cf   :  { %1227 = vrot.lane.b32.xlu1 %v1225_v51, %s2798_s7  ;;  %s3536_s7 = smov 0  }
 0x5d4   :  { %v782_v62 = vpop.permute.xlu2 %781 }
 0x5d5   :  { %v784_v30 = vadd.f32 %v782_v62, %v780_v13 }
 0x5d7   :  { %2446 = vst.msk [vmem:[%s4112_s18 + $0x8] sm:$0xff] %vm72_vm1, %v784_v30 }
 0x5dc   :  { %v1059_v1 = vpop.permute.xlu2 %1058 }
 0x608   :  { %v1056_v63 = vpop.xlane.xlu1 %1055 }
 0x609   :  { %v1057_v25 = vadd.f32 %v3502_v18, %v1056_v63 }
 0x60b   :  { %v1061_v2 = vadd.f32 %v1059_v1, %v1057_v25 }
 0x60d   :  { %2455 = vst.msk [vmem:[%s4112_s18 + $0x10] sm:$0xff] %vm72_vm1, %v1061_v2 }
 0x641   :  { %v1228_v60 = vpop.permute.xlu1 %1227 }
 0x642   :  { %v1230_v37 = vmul.f32 %v1228_v60, %v3191_v54  }
 0x643 LB: > { %4151 = vst [vmem:[#allocation18_spill] sm:$0xff] %v2771_v37  ;;  %v3555_v27 = vld [vmem:[%s4105_s13] sm:$0xff]  ;;  %v3560_v19 = vld [vmem:[%s4105_s13 + $0x10] sm:$0xff]  ;;  %v3572_v44 = vld [vmem:[%s4098_s4 + $0x98] sm:$0xff]  ;;  %v4116_v38 = vmov 3   ;;  %s2500_s29 = sshll.u32 %s2787_s7, 5  ;;  %s2787_s7 = sphi %s3536_s7, %s1238_s7   ;;  %v2783_v41 = vphi %v3458_v41, %v4178_v41   ;;  %v2779_v17 = vphi %v3455_v17, %v4177_v17   ;;  %v2775_v3 = vphi %v1205_v3, %v4176_v3   ;;  %v2771_v37 = vphi %v1230_v37, %v4175_v37   ;;  %v2767_v21 = vphi %v1052_v21, %v4174_v21  }
 0x644   : > { %v3565_v42 = vld [vmem:[%s4098_s4 + $0x80] sm:$0xff]  ;;  %1278 = vmatpush.msra.mxu0 %v3555_v27  ;;  %1318 = vmatpush.msra.mxu2 %v3560_v19  ;;  %v3582_v33 = vld [vmem:[%s4105_s13 + $0x8] sm:$0xff]  ;;  %v3590_v10 = vld [vmem:[%s4098_s4 + $0x78] sm:$0xff]  ;;  %s2801_s30 = smov 1   ;;  %s3708_s8 = scalar_lea.vmem %s4101_s0, %s2500_s29  ;;  %v4115_v0 = vmov 0  }
 0x645   : > { %v3577_v45 = vld [vmem:[%s4098_s4 + $0x60] sm:$0xff]  ;;  %1403 = vmatpush.msra.mxu3 %v3565_v42  ;;  %2462 = vmatmul.msk.f32.vlgmr.msra.gmra.mxu0 %vm70_vm3, %v2767_v21  ;;  %v3602_v8 = vld [vmem:[%s4098_s4 + $0x88] sm:$0xff]  ;;  %v3610_v9 = vld [vmem:[%s4098_s4 + $0x58] sm:$0xff]  ;;  %s2803_s10 = smov 127   ;;  %s2804_s20 = smov 126  }
 0x646   : > { %1463 = vmatpush.msrb.mxu2 %v3572_v44  ;;  %1298 = vmatpush.msra.mxu1 %v3582_v33  ;;  %v3597_v6 = vld [vmem:[%s4098_s4 + $0x40] sm:$0xff]  ;;  %v3615_v11 = vld [vmem:[%s4098_s4 + $0x90] sm:$0xff]  ;;  %v3628_v15 = vld [vmem:[%s4098_s4 + $0x68] sm:$0xff]  ;;  %s2805_s21 = smov 3   ;;  %s2806_s22 = smov 125  }
 0x647   : > { %2464 = vmatmul.msk.f32.vlgmr.msra.gmra.mxu2 %vm70_vm3, %v2767_v21  ;;  %1404 = vmatpush.msra.mxu3 %v3577_v45  ;;  %v3623_v16 = vld [vmem:[%s4098_s4 + $0x20] sm:$0xff]  ;;  %v3635_v24 = vld [vmem:[%s4098_s4 + $0x38] sm:$0xff]  ;;  %v3640_v28 = vld [vmem:[%s4098_s4 + $0x70] sm:$0xff]  ;;  %s2403_s23 = scalar_lea.vmem %s4112_s18, %s2500_s29  ;;  %s1238_s7 = sadd.s32 1, %s2787_s7  }
 0x648   : > { %1464 = vmatpush.msrb.mxu2 %v3590_v10  ;;  %2463 = vmatmul.msk.f32.vlgmr.msra.gmra.mxu1 %vm70_vm3, %v2767_v21  ;;  %v3647_v26 = vld [vmem:[%s4098_s4] sm:$0xff]  ;;  %v3654_v22 = vld [vmem:[%s4098_s4 + $0x18] sm:$0xff]  ;;  %v3661_v20 = vld [vmem:[%s4098_s4 + $0x48] sm:$0xff]  ;;  %p1235_p0 = scmp.ge.s32.totalorder %s1238_s7, 255  }
 0x649   : > { %1405 = vmatpush.msra.mxu3 %v3597_v6  ;;  %1423 = vmatpush.msrb.mxu0 %v3602_v8  ;;  %v3666_v50 = vld [vmem:[%s4098_s4 + $0x50] sm:$0xff]  ;;  %v3675_v34 = vld [vmem:[%s4098_s4 + $0x28] sm:$0xff]  ;;  %v4153_v29 = vld [vmem:[#allocation11_spill] sm:$0xff] }
 0x64a   : > { %1465 = vmatpush.msrb.mxu2 %v3610_v9  ;;  %1443 = vmatpush.msrb.mxu1 %v3615_v11  ;;  %v3680_v48 = vld [vmem:[%s4098_s4 + $0x30] sm:$0xff]  ;;  %v3689_v40 = vld [vmem:[%s4098_s4 + $0x8] sm:$0xff]  ;;  %v4158_v49 = vld [vmem:[#allocation15_spill] sm:$0xff] }
 0x64b   : > { %1406 = vmatpush.msra.mxu3 %v3623_v16  ;;  %1424 = vmatpush.msrb.mxu0 %v3628_v15  ;;  %v3694_v39 = vld [vmem:[%s4098_s4 + $0x10] sm:$0xff]  ;;  %v4154_v31 = vld [vmem:[#allocation12_spill] sm:$0xff] }
 0x64c   : > { %1466 = vmatpush.msrb.mxu2 %v3635_v24  ;;  %1444 = vmatpush.msrb.mxu1 %v3640_v28  ;;  %v4152_v53 = vld [vmem:[#allocation10_spill] sm:$0xff]  ;;  %v4155_v36 = vld [vmem:[#allocation13_spill] sm:$0xff] }
 0x64d   : > { %1407 = vmatpush.msra.mxu3 %v3647_v26  ;;  %2663 = vset.pattern.permute.xlu0 %v4116_v38  ;;  %v4156_v55 = vld [vmem:[#allocation9_spill] sm:$0xff]  ;;  %v4157_v61 = vld [vmem:[#allocation14_spill] sm:$0xff] }
 0x64e   : > { %1467 = vmatpush.msrb.mxu2 %v3654_v22  ;;  %2465 = vmatmul.msk.f32.vlgmr.msra.gmra.mxu3 %vm67_vm0, %v2783_v41 }
 0x64f   : > { %1425 = vmatpush.msrb.mxu0 %v3661_v20  ;;  %1445 = vmatpush.msrb.mxu1 %v3666_v50 }
 0x650   : > { %1254 = vperm.xlu0 %2663, %v2771_v37   ;;  %2468 = vmatmul.msk.f32.vlgmr.msrb.gmra.mxu2 %vm67_vm0, %v2783_v41 }
 0x651   : > { %1426 = vmatpush.msrb.mxu0 %v3675_v34  ;;  %1446 = vmatpush.msrb.mxu1 %v3680_v48 }
 0x652   : > { %1502 = vrot.lane.b32.xlu1 %v2775_v3, %s2801_s30  ;;  %1548 = vmatpush.msrb.mxu3 %v3555_v27  ;;  %v3715_v3 = vld [vmem:[%s3708_s8 + $0x20] sm:$0xff] }
 0x653   : > { %1427 = vmatpush.msrb.mxu0 %v3689_v40  ;;  %1447 = vmatpush.msrb.mxu1 %v3694_v39 }
 0x654   : > { %2466 = vmatmul.msk.f32.vlgmr.msrb.gmra.mxu0 %vm67_vm0, %v2783_v41  ;;  %2467 = vmatmul.msk.f32.vlgmr.msrb.gmra.mxu1 %vm67_vm0, %v2783_v41 }
 0x655   : > { %1568 = vmatpush.msra.mxu0 %v3582_v33  ;;  %1588 = vmatpush.msra.mxu1 %v3560_v19 }
 0x656   : > { %1653 = vmatpush.msra.mxu2 %v3565_v42  ;;  %1673 = vmatpush.msra.mxu3 %v3602_v8 }
 0x657   : > { %1693 = vmatpush.msrb.mxu0 %v3615_v11  ;;  %1713 = vmatpush.msrb.mxu1 %v3572_v44 }
 0x658   : > { %2664 = vset.pattern.permute.xlu0 %v4115_v0  ;;  %1654 = vmatpush.msra.mxu2 %v3577_v45 }
 0x659   : > { %1358 = vperm.xlu0 %2664, %v3715_v3   ;;  %1674 = vmatpush.msra.mxu3 %v3628_v15 }
 0x65a   : > { %1511 = vrot.lane.b32.xlu1 %v2771_v37, %s2803_s10  ;;  %1694 = vmatpush.msrb.mxu0 %v3640_v28 }
 0x65b   : > { %1714 = vmatpush.msrb.mxu1 %v3590_v10  ;;  %1655 = vmatpush.msra.mxu2 %v3597_v6 }
 0x65c   : > { %1675 = vmatpush.msra.mxu3 %v3661_v20  ;;  %1695 = vmatpush.msrb.mxu0 %v3666_v50 }
 0x65d   : > { %1715 = vmatpush.msrb.mxu1 %v3610_v9  ;;  %1656 = vmatpush.msra.mxu2 %v3623_v16 }
 0x65e   : > { %1676 = vmatpush.msra.mxu3 %v3675_v34  ;;  %1696 = vmatpush.msrb.mxu0 %v3680_v48 }
 0x65f   : > { %1716 = vmatpush.msrb.mxu1 %v3635_v24  ;;  %1657 = vmatpush.msra.mxu2 %v3647_v26 }
 0x660   : > { %1677 = vmatpush.msra.mxu3 %v3689_v40  ;;  %1697 = vmatpush.msrb.mxu0 %v3694_v39 }
 0x661   : > { %1717 = vmatpush.msrb.mxu1 %v3654_v22  ;;  %2665 = vset.pattern.permute.xlu1 %v4115_v0 }
 0x662   : > { %2666 = vset.pattern.permute.xlu0 %v4116_v38  ;;  %1798 = vmatpush.msrb.mxu2 %v3555_v27 }
 0x663   : > { %2667 = vset.pattern.permute.xlu2 %v4115_v0 }
 0x6c2   : > { %v1255_v41 = vpop.permute.xlu0 %1254  ;;  %v1280_v5 = vpop.f32.mrf.mxu0 }
 0x6c3   : > { %v1323_v7 = vmul.f32 %v4152_v53, %v1255_v41  ;;  %v1330_v51 = vmul.f32 %v4153_v29, %v1255_v41 }
 0x6c4   : > { %v3747_v12 = vpop.permute.xlu1 %1502 }
 0x6c5   : > { %v1324_v13 = vadd.f32 %v1323_v7, %v1280_v5  ;;  %v1300_v62 = vpop.f32.mrf.mxu1 }
 0x6c6   : > { %v1331_v30 = vadd.f32 %v1330_v51, %v1300_v62 }
 0x6c7   : > { %v1325_v63 = vadd.f32 %v1324_v13, %v4154_v31 }
 0x6c8   : > { %v1332_v25 = vadd.f32 %v1331_v30, %v4155_v36  ;;  %v1337_v30 = vmul.f32 %v4157_v61, %v1255_v41 }
 0x6c9   : > { %v1326_v1 = vmul.f32 0.5, %v1325_v63 }
 0x6ca   : > { %v1333_v2 = vmul.f32 0.5, %v1332_v25  ;;  %v1320_v60 = vpop.f32.mrf.mxu2 }
 0x6cb   : > { %2670 = vtanh.f32 %v1326_v1  ;;  %v1359_v23 = vpop.permute.xlu0 %1358  ;;  %v1339_v63 = vadd.f32 %v4158_v49, %v1320_v60  ;;  %v1338_v60 = vadd.f32 %v3339_v4, %v1337_v30 }
 0x6cc   : > { %v1361_v0 = vmul.f32 %v3087_v52, %v1359_v23  ;;  %v1363_v38 = vmul.f32 %v3098_v56, %v1359_v23  ;;  %v1512_v18 = vpop.permute.xlu1 %1511  ;;  %v1365_v46 = vmul.f32 %v3137_v32, %v1359_v23  ;;  %2672 = vtanh.f32 %v1333_v2 }
 0x6cd   : > { %v1514_v5 = vmul.f32 %v1512_v18, %v4156_v55  ;;  %v1367_v13 = vmul.f32 %v3188_v47, %v1359_v23  ;;  %v3764_v55 = vld [vmem:[%s3708_s8 + $0x28] sm:$0xff] }
 0x6ce   : > { %v1362_v7 = vadd.f32 %v1361_v0, %v3100_v57  ;;  %v1364_v51 = vadd.f32 %v1363_v38, %v3104_v59  ;;  %v1366_v18 = vadd.f32 %v1365_v46, %v3151_v35 }
 0x6cf   : > { %1516 = vrot.lane.b32.xlu1 %v1514_v5, %s2804_s20  ;;  %v1368_v38 = vadd.f32 %v1367_v13, %v3194_v58 }
 0x6d1   : > { %v2671_v62 = vpop.eup %2670  ;;  %v1409_v25 = vpop.f32.mrf.mxu3 }
 0x6d2   : > { %v1429_v1 = vpop.f32.mrf.mxu0  ;;  %v1328_v2 = vmul.f32 0.5, %v2671_v62  ;;  %v1472_v37 = vadd.f32 %v1409_v25, %v1362_v7  ;;  %v1449_v36 = vpop.f32.mrf.mxu1 }
 0x6d3   : > { %v1473_v0 = vadd.f32 %v1429_v1, %v1364_v51  ;;  %v1469_v23 = vpop.f32.mrf.mxu2  ;;  %v2673_v31 = vpop.eup %2672  ;;  %v1474_v41 = vadd.f32 %v1449_v36, %v1366_v18 }
 0x6d4   : > { %v1329_v29 = vadd.f32 0.5, %v1328_v2  ;;  %v1476_v5 = vmul.f32 0.5, %v1472_v37  ;;  %v1475_v61 = vadd.f32 %v1469_v23, %v1368_v38  ;;  %v1335_v46 = vmul.f32 0.5, %v2673_v31 }
 0x6d5   : > { %v1480_v53 = vmul.f32 0.5, %v1473_v0 }
 0x6d6   : > { %v1340_v49 = vmul.f32 %v1339_v63, %v1329_v29  ;;  %2674 = vtanh.f32 %v1476_v5  ;;  %v1485_v51 = vmul.f32 0.5, %v1475_v61  ;;  %v1336_v13 = vadd.f32 0.5, %v1335_v46 }
 0x6d7   : > { %2676 = vtanh.f32 %v1480_v53  ;;  %1628 = vperm.xlu1 %2665, %v3764_v55  }
 0x6d8   : > { %v1341_v7 = vadd.f32 %v1340_v49, %v1338_v60  ;;  %2678 = vtanh.f32 %v1474_v41  ;;  %v1343_v18 = vsub.f32 1.0, %v1336_v13  ;;  %v1345_v31 = vmul.f32 %v2767_v21, %v1336_v13 }
 0x6da   : > { %2680 = vtanh.f32 %v1341_v7 }
 0x6db   : > { %2682 = vtanh.f32 %v1485_v51 }
 0x6dc   : > { %v2675_v62 = vpop.eup %2674 }
 0x6dd   : > { %v2677_v37 = vpop.eup %2676  ;;  %v1478_v25 = vmul.f32 0.5, %v2675_v62 }
 0x6de   : > { %v1482_v1 = vmul.f32 0.5, %v2677_v37  ;;  %v2679_v36 = vpop.eup %2678 }
 0x6df   : > { %v1479_v30 = vadd.f32 0.5, %v1478_v25 }
 0x6e0   : > { %v2681_v29 = vpop.eup %2680  ;;  %v1483_v63 = vadd.f32 0.5, %v1482_v1 }
 0x6e1   : > { %v1344_v53 = vmul.f32 %v2681_v29, %v1343_v18  ;;  %v1490_v2 = vmul.f32 %v2679_v36, %v1479_v30  ;;  %v2683_v61 = vpop.eup %2682 }
 0x6e2   : > { %v1489_v49 = vmul.f32 %v2779_v17, %v1483_v63  ;;  %v1487_v21 = vmul.f32 0.5, %v2683_v61 }
 0x6e3   : > { %v3770_v0 = vadd.f32 %v1345_v31, %v1344_v53 }
 0x6e4   : > { %v3772_v38 = vadd.f32 %v1490_v2, %v1489_v49  ;;  %v1488_v17 = vadd.f32 0.5, %v1487_v21 }
 0x6e5   : > { %2469 = vmatmul.msk.f32.vlgmr.msrb.gmra.mxu3 %vm70_vm3, %v3770_v0  ;;  %2470 = vmatmul.msk.f32.vlgmr.msra.gmra.mxu0 %vm70_vm3, %v3770_v0 }
 0x6e6   : > { %2684 = vtanh.f32 %v3772_v38  ;;  %2471 = vmatmul.msk.f32.vlgmr.msra.gmra.mxu1 %vm70_vm3, %v3770_v0  ;;  %1818 = vmatpush.msrb.mxu3 %v3582_v33 }
 0x6e7   : > { %1903 = vmatpush.msra.mxu1 %v3565_v42  ;;  %1838 = vmatpush.msra.mxu0 %v3560_v19 }
 0x6e9   : > { %1904 = vmatpush.msra.mxu1 %v3577_v45 }
 0x6eb   : > { %1905 = vmatpush.msra.mxu1 %v3597_v6 }
 0x6ec   : > { %v2685_v23 = vpop.eup %2684 }
 0x6ed   : > { %v1493_v5 = vmul.f32 %v2685_v23, %v1488_v17  ;;  %1906 = vmatpush.msra.mxu1 %v3623_v16 }
 0x6ef   : > { %2472 = vmatmul.msk.f32.vlgmr.msra.gmra.mxu2 %vm67_vm0, %v1493_v5  ;;  %2473 = vmatmul.msk.f32.vlgmr.msra.gmra.mxu3 %vm67_vm0, %v1493_v5  ;;  %v1494_v41 = vmul.f32 %v3218_v43, %v1493_v5 }
 0x6f0   : > { %2474 = vmatmul.msk.f32.vlgmr.msrb.gmra.mxu0 %vm67_vm0, %v1493_v5  ;;  %2475 = vmatmul.msk.f32.vlgmr.msrb.gmra.mxu1 %vm67_vm0, %v1493_v5 }
 0x6f1   : > { %v1495_v60 = vsel %vm67_vm0, %v1494_v41, 0.0  ;;  %1907 = vmatpush.msra.mxu1 %v3647_v26  ;;  %1923 = vmatpush.msra.mxu2 %v3602_v8 }
 0x6f2   : > { %1496 = vadd.xlane.f32.xlu2 %v1495_v60  ;;  %1943 = vmatpush.msra.mxu3 %v3615_v11 }
 0x6f3   : > { %1963 = vmatpush.msrb.mxu0 %v3572_v44  ;;  %1924 = vmatpush.msra.mxu2 %v3628_v15 }
 0x6f4   : > { %1944 = vmatpush.msra.mxu3 %v3640_v28  ;;  %2048 = vmatpush.msrb.mxu1 %v3555_v27  ;;  %v1505_v27 = vmul.f32 %v3747_v12, %v3191_v54 }
 0x6f5   : > { %1964 = vmatpush.msrb.mxu0 %v3590_v10  ;;  %1925 = vmatpush.msra.mxu2 %v3661_v20 }
 0x6f6   : > { %1945 = vmatpush.msra.mxu3 %v3666_v50 }
 0x6f7   : > { %1965 = vmatpush.msrb.mxu0 %v3610_v9  ;;  %1926 = vmatpush.msra.mxu2 %v3675_v34 }
 0x6f8   : > { %1946 = vmatpush.msra.mxu3 %v3680_v48 }
 0x6f9   : > { %1966 = vmatpush.msrb.mxu0 %v3635_v24  ;;  %1927 = vmatpush.msra.mxu2 %v3689_v40 }
 0x6fa   : > { %1947 = vmatpush.msra.mxu3 %v3694_v39 }
 0x6fb   : > { %1967 = vmatpush.msrb.mxu0 %v3654_v22 }
 0x70a   : > { %1507 = vrot.lane.b32.xlu2 %v1505_v27, %s2803_s10 }
 0x741   : > { %v1517_v46 = vpop.permute.xlu1 %1516 }
 0x749   : > { %v1629_v62 = vpop.permute.xlu1 %1628 }
 0x74a   : > { %v1631_v25 = vmul.f32 %v3087_v52, %v1629_v62  ;;  %v1633_v1 = vmul.f32 %v3098_v56, %v1629_v62  ;;  %v1635_v30 = vmul.f32 %v3137_v32, %v1629_v62 }
 0x74c   : > { %v1632_v31 = vadd.f32 %v1631_v25, %v3100_v57  ;;  %v1634_v53 = vadd.f32 %v1633_v1, %v3104_v59  ;;  %v1636_v21 = vadd.f32 %v1635_v30, %v3151_v35 }
 0x762   : > { %v3820_v36 = vpop.f32.mrf.mxu0 }
 0x763   : > { %v3822_v12 = vpop.f32.mrf.mxu1 }
 0x765   : > { %v1497_v7 = vpop.xlane.xlu2 %1496 }
 0x766   : > { %v1498_v51 = vadd.f32 %v3249_v14, %v1497_v7 }
 0x768   : > { %v1499_v13 = vadd.f32 %v3715_v3, %v1498_v51  ;;  %v3815_v37 = vpop.f32.mrf.mxu3  ;;  %v1637_v3 = vmul.f32 %v3188_v47, %v1629_v62 }
 0x76a   : > { %1752 = vrot.lane.b32.xlu1 %v1499_v13, %s2801_s30  ;;  %v1500_v18 = vmul.f32 %v1499_v13, %v3191_v54  ;;  %v1638_v17 = vadd.f32 %v1637_v3, %v3194_v58 }
 0x76d   : > { %v1508_v29 = vpop.permute.xlu2 %1507  ;;  %v1699_v41 = vpop.f32.mrf.mxu0 }
 0x76e   : > { %v1510_v63 = vadd.f32 %v1508_v29, %v1500_v18  ;;  %v1719_v60 = vpop.f32.mrf.mxu1  ;;  %v1724_v51 = vadd.f32 %v1699_v41, %v1636_v21  ;;  %v4159_v41 = vmov 3  }
 0x76f   : > { %v1725_v13 = vadd.f32 %v1719_v60, %v1638_v17 }
 0x770   : > { %v1519_v2 = vsub.f32 %v1510_v63, %v1517_v46 }
 0x771   : > { %v1735_v46 = vmul.f32 0.5, %v1725_v13 }
 0x772   : > { %v1659_v49 = vpop.f32.mrf.mxu2  ;;  %v1679_v61 = vpop.f32.mrf.mxu3  ;;  %1521 = vrot.lane.b32.xlu0 %v1519_v2, %s2805_s21 }
 0x773   : > { %v1722_v23 = vadd.f32 %v1659_v49, %v1632_v31  ;;  %v1723_v5 = vadd.f32 %v1679_v61, %v1634_v53 }
 0x775   : > { %v1726_v27 = vmul.f32 0.5, %v1722_v23  ;;  %v1730_v7 = vmul.f32 0.5, %v1723_v5 }
 0x777   : > { %2686 = vtanh.f32 %v1726_v27 }
 0x778   : > { %2688 = vtanh.f32 %v1730_v7 }
 0x779   : > { %2690 = vtanh.f32 %v1724_v51  ;;  %v4161_v51 = vld [vmem:[#allocation10_spill] sm:$0xff] }
 0x77a   : > { %2692 = vtanh.f32 %v1735_v46  ;;  %v4162_v46 = vld [vmem:[#allocation11_spill] sm:$0xff] }
 0x77d   : > { %v2687_v62 = vpop.eup %2686 }
 0x77e   : > { %v2689_v25 = vpop.eup %2688  ;;  %v1728_v1 = vmul.f32 0.5, %v2687_v62 }
 0x77f   : > { %v1732_v18 = vmul.f32 0.5, %v2689_v25  ;;  %v2691_v29 = vpop.eup %2690 }
 0x780   : > { %v1729_v30 = vadd.f32 0.5, %v1728_v1  ;;  %v2693_v53 = vpop.eup %2692 }
 0x781   : > { %v1733_v3 = vadd.f32 0.5, %v1732_v18  ;;  %v1737_v49 = vmul.f32 0.5, %v2693_v53  ;;  %v4163_v18 = vld [vmem:[#allocation12_spill] sm:$0xff] }
 0x782   : > { %v1740_v63 = vmul.f32 %v2691_v29, %v1729_v30  ;;  %v4164_v29 = vld [vmem:[#allocation13_spill] sm:$0xff] }
 0x783   : > { %v1739_v31 = vmul.f32 %v1733_v3, %v3772_v38  ;;  %v1738_v61 = vadd.f32 0.5, %v1737_v49  ;;  %v3845_v38 = vld [vmem:[%s3708_s8 + $0x38] sm:$0xff] }
 0x785   : > { %v3833_v2 = vadd.f32 %v1740_v63, %v1739_v31 }
 0x787   : > { %2694 = vtanh.f32 %v3833_v2 }
 0x78d   : > { %v2695_v21 = vpop.eup %2694 }
 0x78e   : > { %v1743_v17 = vmul.f32 %v2695_v21, %v1738_v61  ;;  %v4165_v61 = vld [vmem:[#allocation14_spill] sm:$0xff] }
 0x790   : > { %2479 = vmatmul.msk.f32.vlgmr.msra.gmra.mxu1 %vm67_vm0, %v1743_v17  ;;  %v1744_v23 = vmul.f32 %v3218_v43, %v1743_v17 }
 0x791   : > { %2173 = vmatpush.msra.mxu1 %v3602_v8 }
 0x792   : > { %v1745_v5 = vsel %vm67_vm0, %v1744_v23, 0.0 }
 0x793   : > { %2174 = vmatpush.msra.mxu1 %v3628_v15 }
 0x794   : > { %1746 = vadd.xlane.f32.xlu1 %v1745_v5  ;;  %v4166_v5 = vld [vmem:[#allocation15_spill] sm:$0xff] }
 0x795   : > { %2175 = vmatpush.msra.mxu1 %v3661_v20 }
 0x797   : > { %2176 = vmatpush.msra.mxu1 %v3675_v34 }
 0x799   : > { %2177 = vmatpush.msra.mxu1 %v3689_v40  ;;  %v4160_v40 = vld [vmem:[#allocation9_spill] sm:$0xff] }
 0x7ad   : > { %2128 = vperm.xlu1 %2665, %v3845_v38  }
 0x7b5   : > { %2668 = vset.pattern.permute.xlu1 %v4159_v41  ;;  %v1609_v41 = vadd.f32 %v4166_v5, %v3822_v12 }
 0x7dc   : > { %v1753_v15 = vpop.permute.xlu1 %1752 }
 0x7dd   : > { %v1755_v20 = vmul.f32 %v1753_v15, %v3191_v54 }
 0x7e4   : > { %v1522_v60 = vpop.permute.xlu0 %1521 }
 0x7e5   : > { %v3850_v8 = vmul.f32 %v1522_v60, %v3191_v54 }
 0x7e7   : > { %1761 = vrot.lane.b32.xlu2 %v3850_v8, %s2803_s10  ;;  %1527 = vperm.xlu0 %2666, %v3850_v8  }
 0x7ef   : > { %1757 = vrot.lane.b32.xlu2 %v1755_v20, %s2803_s10 }
 0x841   : > { %v1762_v34 = vpop.permute.xlu2 %1761 }
 0x842   : > { %v1764_v27 = vmul.f32 %v1762_v34, %v4160_v40 }
 0x844   : > { %1766 = vrot.lane.b32.xlu0 %v1764_v27, %s2804_s20 }
 0x859   : > { %v1528_v7 = vpop.permute.xlu0 %1527 }
 0x85a   : > { %v1593_v13 = vmul.f32 %v4161_v51, %v1528_v7  ;;  %v1600_v62 = vmul.f32 %v4162_v46, %v1528_v7  ;;  %v1607_v21 = vmul.f32 %v4165_v61, %v1528_v7 }
 0x85c   : > { %v1594_v25 = vadd.f32 %v1593_v13, %v3815_v37  ;;  %v1601_v1 = vadd.f32 %v1600_v62, %v3820_v36  ;;  %v1608_v37 = vadd.f32 %v3339_v4, %v1607_v21 }
 0x85e   : > { %v1595_v30 = vadd.f32 %v1594_v25, %v4163_v18  ;;  %v1602_v3 = vadd.f32 %v1601_v1, %v4164_v29 }
 0x860   : > { %v1596_v63 = vmul.f32 0.5, %v1595_v30  ;;  %v1603_v31 = vmul.f32 0.5, %v1602_v3  ;;  %v1909_v30 = vpop.f32.mrf.mxu1 }
 0x862   : > { %2696 = vtanh.f32 %v1596_v63  ;;  %v4167_v63 = vmov 0  }
 0x863   : > { %2698 = vtanh.f32 %v1603_v31 }
 0x868   : > { %v2697_v53 = vpop.eup %2696 }
 0x869   : > { %v1598_v49 = vmul.f32 0.5, %v2697_v53  ;;  %v2699_v23 = vpop.eup %2698 }
 0x86a   : > { %v1605_v15 = vmul.f32 0.5, %v2699_v23 }
 0x86b   : > { %v1599_v60 = vadd.f32 0.5, %v1598_v49 }
 0x86c   : > { %v1606_v34 = vadd.f32 0.5, %v1605_v15 }
 0x86d   : > { %v1610_v36 = vmul.f32 %v1609_v41, %v1599_v60 }
 0x86e   : > { %v1613_v27 = vsub.f32 1.0, %v1606_v34  ;;  %v1615_v25 = vmul.f32 %v1606_v34, %v3770_v0 }
 0x86f   : > { %v1611_v20 = vadd.f32 %v1610_v36, %v1608_v37 }
 0x871   : > { %2700 = vtanh.f32 %v1611_v20 }
 0x877   : > { %v2701_v13 = vpop.eup %2700 }
 0x878   : > { %v1614_v62 = vmul.f32 %v2701_v13, %v1613_v27 }
 0x87a   : > { %v3870_v1 = vadd.f32 %v1615_v25, %v1614_v62 }
 0x87c   : > { %2476 = vmatmul.msk.f32.vlgmr.msrb.gmra.mxu2 %vm70_vm3, %v3870_v1  ;;  %2477 = vmatmul.msk.f32.vlgmr.msrb.gmra.mxu3 %vm70_vm3, %v3870_v1 }
 0x87d   : > { %2478 = vmatmul.msk.f32.vlgmr.msra.gmra.mxu0 %vm70_vm3, %v3870_v1  ;;  %2068 = vmatpush.msrb.mxu2 %v3582_v33 }
 0x87e   : > { %2153 = vmatpush.msra.mxu0 %v3565_v42  ;;  %2088 = vmatpush.msrb.mxu3 %v3560_v19  ;;  %v1747_v19 = vpop.xlane.xlu1 %1746 }
 0x87f   : > { %v1748_v42 = vadd.f32 %v3249_v14, %v1747_v19 }
 0x880   : > { %2154 = vmatpush.msra.mxu0 %v3577_v45  ;;  %v1758_v45 = vpop.permute.xlu2 %1757 }
 0x882   : > { %2155 = vmatpush.msra.mxu0 %v3597_v6 }
 0x884   : > { %2480 = vmatmul.msk.f32.vlgmr.msra.gmra.mxu2 %vm67_vm0, %v1743_v17  ;;  %2481 = vmatmul.msk.f32.vlgmr.msra.gmra.mxu3 %vm67_vm0, %v1743_v17 }
 0x885   : > { %2482 = vmatmul.msk.f32.vlgmr.msrb.gmra.mxu0 %vm67_vm0, %v1743_v17  ;;  %2193 = vmatpush.msra.mxu2 %v3615_v11 }
 0x886   : > { %2156 = vmatpush.msra.mxu0 %v3623_v16  ;;  %2213 = vmatpush.msra.mxu3 %v3572_v44  ;;  %v1749_v44 = vadd.f32 %v3764_v55, %v1748_v42 }
 0x887   : > { %2194 = vmatpush.msra.mxu2 %v3640_v28 }
 0x888   : > { %2157 = vmatpush.msra.mxu0 %v3647_v26  ;;  %2214 = vmatpush.msra.mxu3 %v3590_v10  ;;  %v1750_v33 = vmul.f32 %v1749_v44, %v3191_v54 }
 0x889   : > { %2195 = vmatpush.msra.mxu2 %v3666_v50 }
 0x88a   : > { %2215 = vmatpush.msra.mxu3 %v3610_v9  ;;  %v1760_v10 = vadd.f32 %v1758_v45, %v1750_v33  ;;  %v3903_v9 = vld [vmem:[%s3708_s8 + $0x30] sm:$0xff] }
 0x88b   : > { %2196 = vmatpush.msra.mxu2 %v3680_v48 }
 0x88c   : > { %2216 = vmatpush.msra.mxu3 %v3635_v24 }
 0x88d   : > { %2197 = vmatpush.msra.mxu2 %v3694_v39 }
 0x88e   : > { %2217 = vmatpush.msra.mxu3 %v3654_v22 }
 0x8b6   : > { %v1767_v6 = vpop.permute.xlu0 %1766 }
 0x8b7   : > { %v1769_v11 = vsub.f32 %v1760_v10, %v1767_v6 }
 0x8b9   : > { %1771 = vrot.lane.b32.xlu2 %v1769_v11, %s2805_s21 }
 0x8c1   : > { %1878 = vperm.xlu2 %2667, %v3903_v9  }
 0x8fa   : > { %v3912_v55 = vpop.f32.mrf.mxu0 }
 0x8ff   : > { %v1800_v28 = vpop.f32.mrf.mxu2  ;;  %v1820_v26 = vpop.f32.mrf.mxu3 }
 0x902   : > { %v1969_v60 = vpop.f32.mrf.mxu0 }
 0x907   : > { %v1929_v3 = vpop.f32.mrf.mxu2  ;;  %v1949_v37 = vpop.f32.mrf.mxu3 }
 0x913   : > { %v1772_v16 = vpop.permute.xlu2 %1771 }
 0x914   : > { %v3907_v24 = vmul.f32 %v1772_v16, %v3191_v54 }
 0x916   : > { %2011 = vrot.lane.b32.xlu2 %v3907_v24, %s2803_s10  ;;  %1777 = vperm.xlu0 %2666, %v3907_v24  }
 0x91b   : > { %v1879_v22 = vpop.permute.xlu2 %1878 }
 0x91c   : > { %v1881_v50 = vmul.f32 %v3087_v52, %v1879_v22  ;;  %v1883_v48 = vmul.f32 %v3098_v56, %v1879_v22  ;;  %v1885_v39 = vmul.f32 %v3137_v32, %v1879_v22  ;;  %v1887_v12 = vmul.f32 %v3188_v47, %v1879_v22 }
 0x91e   : > { %v1882_v17 = vadd.f32 %v1881_v50, %v3100_v57  ;;  %v1884_v7 = vadd.f32 %v1883_v48, %v3104_v59  ;;  %2002 = vrot.lane.b32.xlu0 %v1749_v44, %s2801_s30  ;;  %v1886_v31 = vadd.f32 %v1885_v39, %v3151_v35  ;;  %v1888_v53 = vadd.f32 %v1887_v12, %v3194_v58  ;;  %v4168_v39 = vld [vmem:[#allocation18_spill] sm:$0xff] }
 0x91f   : > { %2669 = vset.pattern.permute.xlu0 %v4167_v63 }
 0x920   : > { %v1972_v49 = vadd.f32 %v1909_v30, %v1882_v17  ;;  %v1973_v21 = vadd.f32 %v1929_v3, %v1884_v7  ;;  %v1974_v36 = vadd.f32 %v1949_v37, %v1886_v31  ;;  %v1975_v15 = vadd.f32 %v1969_v60, %v1888_v53 }
 0x922   : > { %v1976_v23 = vmul.f32 0.5, %v1972_v49  ;;  %v1980_v41 = vmul.f32 0.5, %v1973_v21  ;;  %v1985_v20 = vmul.f32 0.5, %v1975_v15 }
 0x924   : > { %2702 = vtanh.f32 %v1976_v23 }
 0x925   : > { %2704 = vtanh.f32 %v1980_v41 }
 0x926   : > { %2706 = vtanh.f32 %v1974_v36  ;;  %v1859_v36 = vadd.f32 %v4166_v5, %v3912_v55 }
 0x927   : > { %2708 = vtanh.f32 %v1985_v20 }
 0x92a   : > { %v2703_v34 = vpop.eup %2702 }
 0x92b   : > { %v2705_v27 = vpop.eup %2704  ;;  %v1978_v13 = vmul.f32 0.5, %v2703_v34 }
 0x92c   : > { %v1982_v62 = vmul.f32 0.5, %v2705_v27  ;;  %v2707_v19 = vpop.eup %2706 }
 0x92d   : > { %v1979_v25 = vadd.f32 0.5, %v1978_v13  ;;  %v2709_v33 = vpop.eup %2708 }
 0x92e   : > { %v1983_v42 = vadd.f32 0.5, %v1982_v62  ;;  %v1987_v6 = vmul.f32 0.5, %v2709_v33 }
 0x92f   : > { %v1990_v44 = vmul.f32 %v2707_v19, %v1979_v25 }
 0x930   : > { %v1989_v45 = vmul.f32 %v1983_v42, %v3833_v2  ;;  %v1988_v11 = vadd.f32 0.5, %v1987_v6 }
 0x932   : > { %v3925_v10 = vadd.f32 %v1990_v44, %v1989_v45 }
 0x934   : > { %2710 = vtanh.f32 %v3925_v10 }
 0x93a   : > { %v2711_v16 = vpop.eup %2710 }
 0x93b   : > { %v1993_v22 = vmul.f32 %v2711_v16, %v1988_v11 }
 0x93d   : > { %2486 = vmatmul.msk.f32.vlgmr.msra.gmra.mxu0 %vm67_vm0, %v1993_v22  ;;  %v1994_v50 = vmul.f32 %v3218_v43, %v1993_v22 }
 0x93f   : > { %v1995_v48 = vsel %vm67_vm0, %v1994_v50, 0.0 }
 0x948   : > { %1996 = vadd.xlane.f32.xlu0 %v1995_v48 }
 0x95c   : > { %1352 = vrot.lane.b32.xlu0 %v4168_v39, %s2806_s22 }
 0x970   : > { %v2012_v23 = vpop.permute.xlu2 %2011 }
 0x988   : > { %v1778_v2 = vpop.permute.xlu0 %1777 }
 0x989   : > { %v1843_v12 = vmul.f32 %v4161_v51, %v1778_v2  ;;  %v1850_v17 = vmul.f32 %v4162_v46, %v1778_v2  ;;  %v1857_v37 = vmul.f32 %v4165_v61, %v1778_v2  ;;  %v2129_v2 = vpop.permute.xlu1 %2128 }
 0x98b   : > { %v1844_v7 = vadd.f32 %v1843_v12, %v1800_v28  ;;  %v1851_v30 = vadd.f32 %v1850_v17, %v1820_v26  ;;  %v2014_v28 = vmul.f32 %v2012_v23, %v4160_v40  ;;  %v1858_v20 = vadd.f32 %v3339_v4, %v1857_v37 }
 0x98c   : > { %v2131_v12 = vmul.f32 %v3087_v52, %v2129_v2  ;;  %v2135_v23 = vmul.f32 %v3137_v32, %v2129_v2 }
 0x98d   : > { %v1845_v3 = vadd.f32 %v1844_v7, %v4163_v18  ;;  %v1852_v63 = vadd.f32 %v1851_v30, %v4164_v29 }
 0x98e   : > { %v2136_v37 = vadd.f32 %v2135_v23, %v3151_v35 }
 0x98f   : > { %v1846_v31 = vmul.f32 0.5, %v1845_v3  ;;  %v1853_v53 = vmul.f32 0.5, %v1852_v63 }
 0x990   : > { %v2003_v49 = vpop.permute.xlu0 %2002 }
 0x991   : > { %2712 = vtanh.f32 %v1846_v31  ;;  %v2005_v21 = vmul.f32 %v2003_v49, %v3191_v54 }
 0x992   : > { %2714 = vtanh.f32 %v1853_v53 }
 0x993   : > { %2007 = vrot.lane.b32.xlu2 %v2005_v21, %s2803_s10 }
 0x997   : > { %v2713_v41 = vpop.eup %2712 }
 0x998   : > { %v1848_v60 = vmul.f32 0.5, %v2713_v41  ;;  %v2715_v26 = vpop.eup %2714  ;;  %v2137_v41 = vmul.f32 %v3188_v47, %v2129_v2 }
 0x999   : > { %v1855_v27 = vmul.f32 0.5, %v2715_v26 }
 0x99a   : > { %v1849_v15 = vadd.f32 0.5, %v1848_v60  ;;  %v2138_v26 = vadd.f32 %v2137_v41, %v3194_v58 }
 0x99b   : > { %2016 = vrot.lane.b32.xlu2 %v2014_v28, %s2804_s20  ;;  %v1856_v62 = vadd.f32 0.5, %v1855_v27 }
 0x99c   : > { %v1860_v34 = vmul.f32 %v1859_v36, %v1849_v15 }
 0x99d   : > { %v1863_v25 = vsub.f32 1.0, %v1856_v62  ;;  %v1865_v44 = vmul.f32 %v1856_v62, %v3870_v1 }
 0x99e   : > { %v1861_v13 = vadd.f32 %v1860_v34, %v1858_v20 }
 0x9a0   : > { %2716 = vtanh.f32 %v1861_v13 }
 0x9a6   : > { %v2717_v19 = vpop.eup %2716 }
 0x9a7   : > { %v1864_v42 = vmul.f32 %v2717_v19, %v1863_v25 }
 0x9a9   : > { %v3946_v45 = vadd.f32 %v1865_v44, %v1864_v42 }
 0x9ab   : > { %2483 = vmatmul.msk.f32.vlgmr.msrb.gmra.mxu1 %vm70_vm3, %v3946_v45  ;;  %2484 = vmatmul.msk.f32.vlgmr.msrb.gmra.mxu2 %vm70_vm3, %v3946_v45 }
 0x9ac   : > { %2485 = vmatmul.msk.f32.vlgmr.msrb.gmra.mxu3 %vm70_vm3, %v3946_v45 }
 0x9b3   : > { %2487 = vmatmul.msk.f32.vlgmr.msra.gmra.mxu1 %vm67_vm0, %v1993_v22  ;;  %2488 = vmatmul.msk.f32.vlgmr.msra.gmra.mxu2 %vm67_vm0, %v1993_v22 }
 0x9b4   : > { %2489 = vmatmul.msk.f32.vlgmr.msra.gmra.mxu3 %vm67_vm0, %v1993_v22  ;;  %v2132_v22 = vadd.f32 %v2131_v12, %v3100_v57 }
 0x9ba   : > { %v2159_v17 = vpop.f32.mrf.mxu0 }
 0x9bb   : > { %v1997_v55 = vpop.xlane.xlu0 %1996  ;;  %v2222_v30 = vadd.f32 %v2159_v17, %v2132_v22 }
 0x9bc   : > { %v1998_v33 = vadd.f32 %v3249_v14, %v1997_v55 }
 0x9bd   : > { %v2226_v3 = vmul.f32 0.5, %v2222_v30 }
 0x9be   : > { %v1999_v11 = vadd.f32 %v3903_v9, %v1998_v33  ;;  %v2133_v9 = vmul.f32 %v3098_v56, %v2129_v2  ;;  %v4180_v56 = vld [vmem:[#allocation10_spill] sm:$0xff] (%p1235_p0) }
 0x9bf   : > { %2718 = vtanh.f32 %v2226_v3 }
 0x9c0   : > { %v2000_v16 = vmul.f32 %v1999_v11, %v3191_v54  ;;  %v2134_v53 = vadd.f32 %v2133_v9, %v3104_v59  ;;  %v4181_v59 = vld [vmem:[#allocation11_spill] sm:$0xff] (%p1235_p0) }
 0x9c5   : > { %v2719_v36 = vpop.eup %2718 }
 0x9c6   : > { %v2228_v27 = vmul.f32 0.5, %v2719_v36 }
 0x9c8   : > { %v2229_v19 = vadd.f32 0.5, %v2228_v27 }
 0x9ed   : > { %v2008_v6 = vpop.permute.xlu2 %2007 }
 0x9ee   : > { %v2010_v50 = vadd.f32 %v2008_v6, %v2000_v16 }
 0x9f5   : > { %v2017_v48 = vpop.permute.xlu2 %2016 }
 0x9f6   : > { %v2019_v39 = vsub.f32 %v2010_v50, %v2017_v48 }
 0x9f8   : > { %2021 = vrot.lane.b32.xlu2 %v2019_v39, %s2805_s21 }
 0xa00   : > { %2252 = vrot.lane.b32.xlu2 %v1999_v11, %s2801_s30 }
 0xa28   : > { %v3964_v7 = vpop.f32.mrf.mxu1 }
 0xa2e   : > { %v3967_v63 = vpop.f32.mrf.mxu2 }
 0xa2f   : > { %v3969_v31 = vpop.f32.mrf.mxu3 }
 0xa30   : > { %v2179_v49 = vpop.f32.mrf.mxu1 }
 0xa31   : > { %v2223_v21 = vadd.f32 %v2179_v49, %v2134_v53 }
 0xa33   : > { %v2230_v60 = vmul.f32 0.5, %v2223_v21 }
 0xa35   : > { %2720 = vtanh.f32 %v2230_v60 }
 0xa36   : > { %v2199_v28 = vpop.f32.mrf.mxu2 }
 0xa37   : > { %v2224_v15 = vadd.f32 %v2199_v28, %v2136_v37  ;;  %v2219_v20 = vpop.f32.mrf.mxu3 }
 0xa38   : > { %v2225_v34 = vadd.f32 %v2219_v20, %v2138_v26 }
 0xa39   : > { %2722 = vtanh.f32 %v2224_v15 }
 0xa3a   : > { %v2235_v13 = vmul.f32 0.5, %v2225_v34 }
 0xa3b   : > { %v2721_v62 = vpop.eup %2720 }
 0xa3c   : > { %v2232_v25 = vmul.f32 0.5, %v2721_v62  ;;  %2724 = vtanh.f32 %v2235_v13 }
 0xa3e   : > { %v2233_v42 = vadd.f32 0.5, %v2232_v25  ;;  %v1353_v25 = vpop.permute.xlu0 %1352 }
 0xa3f   : > { %v2723_v44 = vpop.eup %2722 }
 0xa40   : > { %v2239_v55 = vmul.f32 %v2233_v42, %v3925_v10  ;;  %v2240_v33 = vmul.f32 %v2723_v44, %v2229_v19 }
 0xa42   : > { %v2725_v6 = vpop.eup %2724  ;;  %v3977_v17 = vadd.f32 %v2240_v33, %v2239_v55  }
 0xa43   : > { %v2237_v16 = vmul.f32 0.5, %v2725_v6 }
 0xa44   : > { %v4169_v11 = vmov %v3977_v17  ;;  %v4171_v17 = vld [vmem:[#allocation16_spill] sm:$0xff] }
 0xa45   : > { %2726 = vtanh.f32 %v4169_v11  ;;  %v2238_v50 = vadd.f32 0.5, %v2237_v16  ;;  %v1347_v30 = vmul.f32 %v4171_v17, %v3770_v0  ;;  %v1617_v9 = vmul.f32 %v4171_v17, %v3870_v1  ;;  %v4173_v16 = vld [vmem:[#allocation17_spill] sm:$0xff]  ;;  %2389 = vst.msk [vmem:[#allocation3] sm:$0xff] (%p1235_p0), %vm67_vm0, %v4169_v11 }
 0xa46   : > { %v1867_v0 = vmul.f32 %v4171_v17, %v3946_v45 }
 0xa47   : > { %v1348_v3 = vsel %vm70_vm3, %v1347_v30, 0.0  ;;  %v1618_v53 = vsel %vm70_vm3, %v1617_v9, 0.0 }
 0xa48   : > { %v1868_v1 = vsel %vm70_vm3, %v1867_v0, 0.0 }
 0xa4b   : > { %v2727_v48 = vpop.eup %2726 }
 0xa4c   : > { %v3980_v41 = vmul.f32 %v2727_v48, %v2238_v50  }
 0xa4e   : > { %v4170_v39 = vmov %v3980_v41 }
 0xa4f   : > { %v2244_v2 = vmul.f32 %v3218_v43, %v4170_v39  ;;  %2388 = vst.msk [vmem:[#allocation2] sm:$0xff] (%p1235_p0), %vm67_vm0, %v4170_v39  ;;  %v4182_v43 = vld [vmem:[#allocation12_spill] sm:$0xff] (%p1235_p0) }
 0xa51   : > { %v2245_v12 = vsel %vm67_vm0, %v2244_v2, 0.0 }
 0xa52   : > { %2246 = vadd.xlane.f32.xlu0 %v2245_v12  ;;  %v2022_v22 = vpop.permute.xlu2 %2021 }
 0xa53   : > { %v2024_v10 = vmul.f32 %v2022_v22, %v3191_v54 }
 0xa55   : > { %2027 = vperm.xlu1 %2668, %v2024_v10   ;;  %2261 = vrot.lane.b32.xlu2 %v2024_v10, %s2803_s10 }
 0xa5a   : > { %v2253_v49 = vpop.permute.xlu2 %2252 }
 0xa5b   : > { %v2255_v21 = vmul.f32 %v2253_v49, %v3191_v54 }
 0xa66   : > { %1622 = vrot.lane.b32.xlu0 %v3850_v8, %s2806_s22 }
 0xa6e   : > { %2122 = vrot.lane.b32.xlu0 %v2024_v10, %s2806_s22 }
 0xa7e   : > { %1349 = vadd.xlane.f32.xlu2 %v1348_v3 }
 0xa7f   : > { %1619 = vadd.xlane.f32.xlu1 %v1618_v53 }
 0xa96   : > { %2257 = vrot.lane.b32.xlu2 %v2255_v21, %s2803_s10 }
 0xaaf   : > { %v2262_v8 = vpop.permute.xlu2 %2261 }
 0xab0   : > { %v2264_v23 = vmul.f32 %v2262_v8, %v4160_v40 }
 0xab2   : > { %2266 = vrot.lane.b32.xlu1 %v2264_v23, %s2804_s20 }
 0xaba   : > { %1872 = vrot.lane.b32.xlu1 %v3907_v24, %s2806_s22 }
 0xabf   : > { %1869 = vadd.xlane.f32.xlu2 %v1868_v1 }
 0xac7   : > { %v2028_v41 = vpop.permute.xlu1 %2027 }
 0xac8   : > { %v2093_v60 = vmul.f32 %v4161_v51, %v2028_v41  ;;  %v2100_v37 = vmul.f32 %v4162_v46, %v2028_v41  ;;  %v2107_v27 = vmul.f32 %v4165_v61, %v2028_v41  ;;  %v2109_v51 = vadd.f32 %v4166_v5, %v3969_v31  ;;  %v2247_v31 = vpop.xlane.xlu0 %2246 }
 0xac9   : > { %v2248_v10 = vadd.f32 %v3249_v14, %v2247_v31 }
 0xaca   : > { %v2094_v28 = vadd.f32 %v2093_v60, %v3964_v7  ;;  %v2101_v40 = vadd.f32 %v2100_v37, %v3967_v63  ;;  %v2108_v7 = vadd.f32 %v3339_v4, %v2107_v27 }
 0xacb   : > { %v2249_v30 = vadd.f32 %v3845_v38, %v2248_v10  }
 0xacc   : > { %v2095_v26 = vadd.f32 %v2094_v28, %v4163_v18  ;;  %v2102_v36 = vadd.f32 %v2101_v40, %v4164_v29  ;;  %v2287_v40 = vld [vmem:[%s4105_s13] sm:$0xff] (%p1235_p0) }
 0xacd   : > { %v2250_v9 = vmul.f32 %v2249_v30, %v3191_v54  ;;  %2308 = vmatpush.msra.mxu0 (%p1235_p0), %v2287_v40  ;;  %2391 = vst.msk [vmem:[#allocation5] sm:$0xff] (%p1235_p0), %vm72_vm1, %v2249_v30 }
 0xace   : > { %v2096_v24 = vmul.f32 0.5, %v2095_v26  ;;  %v2103_v15 = vmul.f32 0.5, %v2102_v36  ;;  %v2288_v26 = vld [vmem:[%s4105_s13 + $0x8] sm:$0xff] (%p1235_p0)  ;;  %v4179_v36 = vmov (%p1235_p0), 3  }
 0xacf   :  { %2734 = vset.pattern.permute.xlu0 (%p1235_p0), %v4179_v36  ;;  %2328 = vmatpush.msra.mxu1 (%p1235_p0), %v2288_v26 }
 0xad0   : > { %2728 = vtanh.f32 %v2096_v24  ;;  %v2289_v24 = vld [vmem:[%s4105_s13 + $0x10] sm:$0xff] (%p1235_p0) }
 0xad1   : > { %2730 = vtanh.f32 %v2103_v15  ;;  %2348 = vmatpush.msra.mxu2 (%p1235_p0), %v2289_v24 }
 0xad6   : > { %v2729_v20 = vpop.eup %2728 }
 0xad7   : > { %v2098_v34 = vmul.f32 0.5, %v2729_v20  ;;  %v2731_v13 = vpop.eup %2730 }
 0xad8   : > { %v2105_v62 = vmul.f32 0.5, %v2731_v13  ;;  %v1623_v2 = vpop.permute.xlu0 %1622  ;;  %v4184_v13 = vld [vmem:[#allocation14_spill] sm:$0xff] (%p1235_p0) }
 0xad9   : > { %v2099_v46 = vadd.f32 0.5, %v2098_v34 }
 0xada   : > { %v2106_v29 = vadd.f32 0.5, %v2105_v62 }
 0xadb   : > { %v2110_v63 = vmul.f32 %v2109_v51, %v2099_v46 }
 0xadc   : > { %v2113_v19 = vsub.f32 1.0, %v2106_v29  ;;  %v2115_v55 = vmul.f32 %v2106_v29, %v3946_v45 }
 0xadd   : > { %v2111_v18 = vadd.f32 %v2110_v63, %v2108_v7  ;;  %v4185_v7 = vld [vmem:[#allocation15_spill] sm:$0xff] (%p1235_p0) }
 0xadf   : > { %2732 = vtanh.f32 %v2111_v18 }
 0xae0   : > { %v2123_v60 = vpop.permute.xlu0 %2122 }
 0xae5   : > { %v2733_v42 = vpop.eup %2732 }
 0xae6   : > { %v2114_v44 = vmul.f32 %v2733_v42, %v2113_v19 }
 0xae8   : > { %v4016_v21 = vadd.f32 %v2115_v55, %v2114_v44  }
 0xaea   : > { %v4172_v61 = vmov %v4016_v21 }
 0xaeb   : > { %v2117_v5 = vmul.f32 %v4171_v17, %v4172_v61  ;;  %2496 = vmatmul.msk.f32.vlgmr.msra.gmra.mxu0 (%p1235_p0), %vm70_vm3, %v4172_v61  ;;  %2497 = vmatmul.msk.f32.vlgmr.msra.gmra.mxu1 (%p1235_p0), %vm70_vm3, %v4172_v61 }
 0xaec   :  { %2498 = vmatmul.msk.f32.vlgmr.msra.gmra.mxu2 (%p1235_p0), %vm70_vm3, %v4172_v61 }
 0xaed   : > { %v2118_v33 = vsel %vm70_vm3, %v2117_v5, 0.0 }
 0xaee   : > { %2119 = vadd.xlane.f32.xlu1 %v2118_v33 }
 0xaf1   : > { %v1350_v6 = vpop.xlane.xlu2 %1349 }
 0xaf2   : > { %v1351_v50 = vadd.f32 %v4173_v16, %v1350_v6  ;;  %v1620_v48 = vpop.xlane.xlu1 %1619 }
 0xaf3   : > { %v1621_v45 = vadd.f32 %v4173_v16, %v1620_v48 }
 0xaf4   : > { %v1355_v12 = vadd.f32 %v1353_v25, %v1351_v50 }
 0xaf5   : > { %v1625_v22 = vadd.f32 %v1623_v2, %v1621_v45  ;;  %v4187_v2 = vld [vmem:[#allocation17_spill] sm:$0xff] (%p1235_p0) }
 0xaf6   : > { %2492 = vst.msk [vmem:[%s2403_s23 + $0x18] sm:$0xff] %vm72_vm1, %v1355_v12 }
 0xaf7   : > { %2493 = vst.msk [vmem:[%s2403_s23 + $0x20] sm:$0xff] %vm72_vm1, %v1625_v22 }
 0xaf9   : > { %v2258_v17 = vpop.permute.xlu2 %2257 }
 0xafa   : > { %v2260_v3 = vadd.f32 %v2258_v17, %v2250_v9  ;;  %v4177_v17 = vmov %v4169_v11  ;;  %v4183_v11 = vld [vmem:[#allocation13_spill] sm:$0xff] (%p1235_p0) }
 0xb24   : > { %v2267_v53 = vpop.permute.xlu1 %2266 }
 0xb25   : > { %v2269_v49 = vsub.f32 %v2260_v3, %v2267_v53  ;;  %v4176_v3 = vmov %v2249_v30 }
 0xb27   : > { %2271 = vrot.lane.b32.xlu0 %v2269_v49, %s2805_s21 }
 0xb2c   : > { %v1873_v23 = vpop.permute.xlu1 %1872 }
 0xb32   : > { %v1870_v21 = vpop.xlane.xlu2 %1869 }
 0xb33   : > { %v1871_v8 = vadd.f32 %v4173_v16, %v1870_v21  ;;  %v4174_v21 = vmov %v4172_v61 }
 0xb35   : > { %v1875_v0 = vadd.f32 %v1873_v23, %v1871_v8 }
 0xb37   : > { %2494 = vst.msk [vmem:[%s2403_s23 + $0x28] sm:$0xff] %vm72_vm1, %v1875_v0 }
 0xb61   : > { %v2120_v1 = vpop.xlane.xlu1 %2119 }
 0xb62   : > { %v2121_v41 = vadd.f32 %v4173_v16, %v2120_v1  ;;  %v4186_v16 = vld [vmem:[#allocation16_spill] sm:$0xff] (%p1235_p0) }
 0xb64   : > { %v2125_v38 = vadd.f32 %v2123_v60, %v2121_v41  ;;  %v4178_v41 = vmov %v4170_v39 }
 0xb66   : > { %2495 = vst.msk [vmem:[%s2403_s23 + $0x30] sm:$0xff] %vm72_vm1, %v2125_v38 }
 0xb68   :  { %v2310_v35 = vpop.f32.mrf.mxu0 (%p1235_p0)  ;;  %v2330_v47 = vpop.f32.mrf.mxu1 (%p1235_p0) }
 0xb6f   :  { %v2350_v34 = vpop.f32.mrf.mxu2 (%p1235_p0) }
 0xb70   :  { %v2369_v63 = vadd.f32 (%p1235_p0), %v4185_v7, %v2350_v34 }
 0xb98   :  { %1237 = sbr.rel (!%p1235_p0) target bundleno = 1603 (0x643), region = 111 }
 0xb99   : > { %v2272_v37 = vpop.permute.xlu0 %2271 }
 0xb9a   : > { %v2274_v28 = vmul.f32 %v2272_v37, %v3191_v54  }
 0xb9c   : > { %v4175_v37 = vmov %v2274_v28  ;;  %2382 = vrot.lane.b32.xlu1 (%p1235_p0), %v2274_v28, %s2799_s9  ;;  %2284 = vperm.xlu0 (%p1235_p0), %2734, %v2274_v28  }
 0xc0e   :  { %v2285_v52 = vpop.permute.xlu0 %2284  ;;  %v2383_v45 = vpop.permute.xlu1 %2382 }
 0xc0f   :  { %v2353_v57 = vmul.f32 %v4180_v56, %v2285_v52  ;;  %v2360_v32 = vmul.f32 %v4181_v59, %v2285_v52  ;;  %v2367_v51 = vmul.f32 %v4184_v13, %v2285_v52  ;;  %2392 = vst.msk [vmem:[#allocation6] sm:$0xff] %vm72_vm1, %v2383_v45 }
 0xc11   :  { %v2354_v54 = vadd.f32 %v2353_v57, %v2310_v35  ;;  %v2361_v58 = vadd.f32 %v2360_v32, %v2330_v47  ;;  %v2368_v29 = vadd.f32 %v3339_v4, %v2367_v51 }
 0xc13   :  { %v2355_v14 = vadd.f32 %v2354_v54, %v4182_v43  ;;  %v2362_v39 = vadd.f32 %v2361_v58, %v4183_v11 }
 0xc15   :  { %v2356_v15 = vmul.f32 0.5, %v2355_v14  ;;  %v2363_v20 = vmul.f32 0.5, %v2362_v39 }
 0xc17   :  { %2735 = vtanh.f32 %v2356_v15 }
 0xc18   :  { %2737 = vtanh.f32 %v2363_v20 }
 0xc1d   :  { %v2736_v27 = vpop.eup %2735 }
 0xc1e   :  { %v2358_v46 = vmul.f32 0.5, %v2736_v27  ;;  %v2738_v62 = vpop.eup %2737 }
 0xc1f   :  { %v2365_v19 = vmul.f32 0.5, %v2738_v62 }
 0xc20   :  { %v2359_v18 = vadd.f32 0.5, %v2358_v46 }
 0xc21   :  { %v2366_v44 = vadd.f32 0.5, %v2365_v19 }
 0xc22   :  { %v2370_v25 = vmul.f32 %v2369_v63, %v2359_v18 }
 0xc23   :  { %v2373_v55 = vsub.f32 1.0, %v2366_v44  ;;  %v2375_v33 = vmul.f32 %v2366_v44, %v4172_v61 }
 0xc24   :  { %v2371_v42 = vadd.f32 %v2370_v25, %v2368_v29 }
 0xc26   :  { %2739 = vtanh.f32 %v2371_v42 }
 0xc2c   :  { %v2740_v5 = vpop.eup %2739 }
 0xc2d   :  { %v2374_v31 = vmul.f32 %v2740_v5, %v2373_v55 }
 0xc2f   :  { %v2376_v6 = vadd.f32 %v2375_v33, %v2374_v31 }
 0xc31   :  { %v2377_v50 = vmul.f32 %v4186_v16, %v2376_v6  ;;  %2390 = vst.msk [vmem:[#allocation4] sm:$0xff] %vm70_vm3, %v2376_v6 }
 0xc33   :  { %v2378_v48 = vsel %vm70_vm3, %v2377_v50, 0.0 }
 0xc34   :  { %2379 = vadd.xlane.f32.xlu0 %v2378_v48 }
 0xca7   :  { %v2380_v4 = vpop.xlane.xlu0 %2379 }
 0xca8   :  { %v2381_v12 = vadd.f32 %v4187_v2, %v2380_v4 }
 0xcaa   :  { %v2385_v22 = vadd.f32 %v2383_v45, %v2381_v12 }
 0xcac   :  { %2499 = vst.msk [vmem:[%s4112_s18 + $0x1ff8] sm:$0xff] %vm72_vm1, %v2385_v22 }

</bundles_post_ra>
